<compile_context>
chip_gen: v6e
topology: v6e:2x2x1
jax: 0.10.0
libtpu: 0.0.40
codegen_flags: <defaults>
</compile_context>

<pallas_src>
import functools

import jax
import jax.numpy as jnp
from jax.experimental import pallas as pl
from jax.experimental.pallas import tpu as pltpu

# Large finite negative instead of -inf so a fully-masked softmax row degrades gracefully.
MASK_VALUE = -1e30
LN_EPS = 1e-5          # PyTorch LayerNorm default

_PARALLEL = pltpu.CompilerParams(dimension_semantics=("parallel",))


# ----------------------------------------------------------------------------- in-kernel helpers

def _layer_norm(x, g, b, eps):
    mean = jnp.mean(x, axis=-1, keepdims=True)
    var = jnp.mean(jnp.square(x - mean), axis=-1, keepdims=True)
    return (x - mean) * jax.lax.rsqrt(var + eps) * g + b


def _mha_heads(q, k, v, H, scale, causal_bias, key_bias):
    """q: (Lq, d) f32, k/v: (Lk, d) f32 -> concatenated head outputs (Lq, d) f32.

    Static loop over heads; per-head q/k/v are lane slices (no (L,H,Dh)->(H,L,Dh)
    transposes / relayouts).  Scores via dot_general contracting last-last (q . k^T).
    """
    Lq, d = q.shape
    Dh = d // H
    outs = []
    for h in range(H):
        lo, hi = h * Dh, (h + 1) * Dh
        qh = q[:, lo:hi]
        kh = k[:, lo:hi]
        vh = v[:, lo:hi]
        s = jax.lax.dot_general(qh, kh, (((1,), (1,)), ((), ())),
                                preferred_element_type=jnp.float32) * scale
        if causal_bias is not None:
            s = s + causal_bias
        if key_bias is not None:
            s = s + key_bias                               # (1, Lk) broadcast
        p = jnp.exp(s - jnp.max(s, axis=-1, keepdims=True))
        p = p / jnp.sum(p, axis=-1, keepdims=True)         # exact divide (numerical parity)
        outs.append(jnp.dot(p, vh, preferred_element_type=jnp.float32))
    return jnp.concatenate(outs, axis=-1)                  # (Lq, d)


def _bf16(x):
    return x.astype(jnp.bfloat16)


# ----------------------------------------------------------------------------- kernels

def _encoder_kernel(kb_ref, x_ref,
                    wqkv_ref, bqkv_ref, wo_ref, bo_ref, g1_ref, b1_ref,
                    w1_ref, bb1_ref, w2_ref, bb2_ref, g2_ref, b2_ref,
                    gf_ref, bf_ref, o_ref, *, H, scale, num_layers, eps):
    x = x_ref[0]                                           # (S, d) f32
    d = x.shape[1]
    key_bias = kb_ref[0]                                   # (1, S) additive key-padding bias

    for l in range(num_layers):                            # static unroll over layers
        # --- self-attention (fused QKV projection, weights bf16, accumulate f32) ---
        qkv = jnp.dot(_bf16(x), wqkv_ref[l],
                      preferred_element_type=jnp.float32) + bqkv_ref[l]
        heads = _mha_heads(qkv[:, :d], qkv[:, d:2 * d], qkv[:, 2 * d:],
                           H, scale, None, key_bias)
        attn = jnp.dot(_bf16(heads), wo_ref[l],
                       preferred_element_type=jnp.float32) + bo_ref[l]
        x = _layer_norm(x + attn, g1_ref[l], b1_ref[l], eps)

        # --- feed-forward (relu, PyTorch default activation) ---
        h1 = jnp.dot(_bf16(x), w1_ref[l],
                     preferred_element_type=jnp.float32) + bb1_ref[l]
        h1 = jnp.maximum(h1, 0.0)
        y = jnp.dot(_bf16(h1), w2_ref[l],
                    preferred_element_type=jnp.float32) + bb2_ref[l]
        x = _layer_norm(x + y, g2_ref[l], b2_ref[l], eps)

    # final encoder LayerNorm fused in (no extra pallas_call / HBM round trip)
    o_ref[0] = _layer_norm(x, gf_ref[...], bf_ref[...], eps)


def _decoder_kernel(y_ref, m_ref,
                    s_wqkv_ref, s_bqkv_ref, s_wo_ref, s_bo_ref, g1_ref, b1_ref,
                    c_wq_ref, c_bq_ref, c_wkv_ref, c_bkv_ref, c_wo_ref, c_bo_ref,
                    g2_ref, b2_ref,
                    f_w1_ref, f_b1_ref, f_w2_ref, f_b2_ref, g3_ref, b3_ref,
                    gf_ref, bf_ref, fc_w_ref, fc_b_ref, o_ref,
                    *, H, scale, num_layers, eps):
    y = y_ref[0]                                           # (T, d) decoder stream, f32
    mem = m_ref[0]                                         # (S, d) encoder memory, f32
    T, d = y.shape

    # causal (subsequent) mask built in-kernel, shared by every layer / head
    row = jax.lax.broadcasted_iota(jnp.int32, (T, T), 0)
    col = jax.lax.broadcasted_iota(jnp.int32, (T, T), 1)
    causal_bias = jnp.where(col > row, MASK_VALUE, 0.0).astype(jnp.float32)

    for l in range(num_layers):                            # static unroll over layers
        # --- causal self-attention ---
        qkv = jnp.dot(_bf16(y), s_wqkv_ref[l],
                      preferred_element_type=jnp.float32) + s_bqkv_ref[l]
        heads = _mha_heads(qkv[:, :d], qkv[:, d:2 * d], qkv[:, 2 * d:],
                           H, scale, causal_bias, None)
        attn = jnp.dot(_bf16(heads), s_wo_ref[l],
                       preferred_element_type=jnp.float32) + s_bo_ref[l]
        y = _layer_norm(y + attn, g1_ref[l], b1_ref[l], eps)

        # --- cross-attention (memory_key_padding_mask is None in the reference call) ---
        qc = jnp.dot(_bf16(y), c_wq_ref[l],
                     preferred_element_type=jnp.float32) + c_bq_ref[l]
        kvc = jnp.dot(_bf16(mem), c_wkv_ref[l],
                      preferred_element_type=jnp.float32) + c_bkv_ref[l]
        heads_c = _mha_heads(qc, kvc[:, :d], kvc[:, d:], H, scale, None, None)
        attn_c = jnp.dot(_bf16(heads_c), c_wo_ref[l],
                         preferred_element_type=jnp.float32) + c_bo_ref[l]
        y = _layer_norm(y + attn_c, g2_ref[l], b2_ref[l], eps)

        # --- feed-forward ---
        h1 = jnp.dot(_bf16(y), f_w1_ref[l],
                     preferred_element_type=jnp.float32) + f_b1_ref[l]
        h1 = jnp.maximum(h1, 0.0)
        z = jnp.dot(_bf16(h1), f_w2_ref[l],
                    preferred_element_type=jnp.float32) + f_b2_ref[l]
        y = _layer_norm(y + z, g3_ref[l], b3_ref[l], eps)

    # final decoder LayerNorm + vocab projection fused in; fc_w is pre-padded so the
    # output block (1, T, Vp) is lane-dense (unmasked stores).
    y = _layer_norm(y, gf_ref[...], bf_ref[...], eps)
    o_ref[0] = jnp.dot(_bf16(y), fc_w_ref[...],
                       preferred_element_type=jnp.float32) + fc_b_ref[...]


# ----------------------------------------------------------------------------- wrappers

def _full_spec(arr):
    """Whole-array block with a constant index_map (weights stay resident, DMA'd once)."""
    zeros = (0,) * arr.ndim
    return pl.BlockSpec(arr.shape, lambda b, _z=zeros: _z)


_ENC_WEIGHT_NAMES = ["wqkv", "bqkv", "wo", "bo", "g1", "b1",
                     "w1", "bb1", "w2", "bb2", "g2", "b2", "gf", "bf"]

_DEC_WEIGHT_NAMES = ["s_wqkv", "s_bqkv", "s_wo", "s_bo", "g1", "b1",
                     "c_wq", "c_bq", "c_wkv", "c_bkv", "c_wo", "c_bo", "g2", "b2",
                     "f_w1", "f_b1", "f_w2", "f_b2", "g3", "b3",
                     "gf", "bf", "fc_w", "fc_b"]


def encoder_forward(x, key_bias, enc_p, num_heads, eps=LN_EPS):
    N, S, d = x.shape
    E = enc_p["wqkv"].shape[0]
    scale = 1.0 / ((d // num_heads) ** 0.5)
    weights = [enc_p[n] for n in _ENC_WEIGHT_NAMES]

    kernel = functools.partial(_encoder_kernel, H=num_heads, scale=scale,
                               num_layers=E, eps=eps)
    in_specs = [
        pl.BlockSpec((1, 1, S), lambda b: (b, 0, 0)),      # per-batch key-padding bias row
        pl.BlockSpec((1, S, d), lambda b: (b, 0, 0)),      # per-batch activation
    ] + [_full_spec(w) for w in weights]

    # NOTE: memory output (1, S, d) with d=32 is a masked store, but it is tiny; the big
    # (vocab) output in the decoder kernel is lane-dense.
    return pl.pallas_call(
        kernel,
        out_shape=jax.ShapeDtypeStruct((N, S, d), jnp.float32),
        grid=(N,),
        in_specs=in_specs,
        out_specs=pl.BlockSpec((1, S, d), lambda b: (b, 0, 0)),
        compiler_params=_PARALLEL,
    )(key_bias, x, *weights)


def decoder_forward(y, memory, dec_p, num_heads, eps=LN_EPS):
    N, T, d = y.shape
    S = memory.shape[1]
    D = dec_p["s_wqkv"].shape[0]
    Vp = dec_p["fc_w"].shape[1]                            # padded (lane-dense) vocab dim
    scale = 1.0 / ((d // num_heads) ** 0.5)
    weights = [dec_p[n] for n in _DEC_WEIGHT_NAMES]

    kernel = functools.partial(_decoder_kernel, H=num_heads, scale=scale,
                               num_layers=D, eps=eps)
    in_specs = [
        pl.BlockSpec((1, T, d), lambda b: (b, 0, 0)),      # per-batch decoder stream
        pl.BlockSpec((1, S, d), lambda b: (b, 0, 0)),      # per-batch encoder memory
    ] + [_full_spec(w) for w in weights]

    return pl.pallas_call(
        kernel,
        out_shape=jax.ShapeDtypeStruct((N, T, Vp), jnp.float32),
        grid=(N,),
        in_specs=in_specs,
        out_specs=pl.BlockSpec((1, T, Vp), lambda b: (b, 0, 0)),
        compiler_params=_PARALLEL,
    )(y, memory, *weights)


# ----------------------------------------------------------------------------- weight packing

def pack_params(params, cfg):
    """One-time packing: QKV/KV concat, bias reshape, LN reshape, vocab lane-padding,
    bf16 cast of all MXU weights, stacking across layers.  Done once, outside the forward."""
    d = cfg["embedding_size"]
    V = cfg["trg_vocab_size"]
    Vp = ((V + 127) // 128) * 128

    def qkv_w(a):
        return jnp.concatenate([a["wq"], a["wk"], a["wv"]], axis=1).astype(jnp.bfloat16)

    def qkv_b(a):
        return jnp.concatenate([a["bq"], a["bk"], a["bv"]]).reshape(1, 3 * d)

    def kv_w(a):
        return jnp.concatenate([a["wk"], a["wv"]], axis=1).astype(jnp.bfloat16)

    def kv_b(a):
        return jnp.concatenate([a["bk"], a["bv"]]).reshape(1, 2 * d)

    def stack(fn, layers):
        return jnp.stack([fn(lp) for lp in layers])

    enc_layers = params["encoder_layers"]
    dec_layers = params["decoder_layers"]

    enc = dict(
        wqkv=stack(lambda lp: qkv_w(lp["self_attn"]), enc_layers),
        bqkv=stack(lambda lp: qkv_b(lp["self_attn"]), enc_layers),
        wo=stack(lambda lp: lp["self_attn"]["wo"].astype(jnp.bfloat16), enc_layers),
        bo=stack(lambda lp: lp["self_attn"]["bo"].reshape(1, d), enc_layers),
        g1=stack(lambda lp: lp["norm1_g"].reshape(1, d), enc_layers),
        b1=stack(lambda lp: lp["norm1_b"].reshape(1, d), enc_layers),
        w1=stack(lambda lp: lp["lin1_w"].astype(jnp.bfloat16), enc_layers),
        bb1=stack(lambda lp: lp["lin1_b"].reshape(1, -1), enc_layers),
        w2=stack(lambda lp: lp["lin2_w"].astype(jnp.bfloat16), enc_layers),
        bb2=stack(lambda lp: lp["lin2_b"].reshape(1, d), enc_layers),
        g2=stack(lambda lp: lp["norm2_g"].reshape(1, d), enc_layers),
        b2=stack(lambda lp: lp["norm2_b"].reshape(1, d), enc_layers),
        gf=params["enc_norm_g"].reshape(1, d),
        bf=params["enc_norm_b"].reshape(1, d),
    )

    dec = dict(
        s_wqkv=stack(lambda lp: qkv_w(lp["self_attn"]), dec_layers),
        s_bqkv=stack(lambda lp: qkv_b(lp["self_attn"]), dec_layers),
        s_wo=stack(lambda lp: lp["self_attn"]["wo"].astype(jnp.bfloat16), dec_layers),
        s_bo=stack(lambda lp: lp["self_attn"]["bo"].reshape(1, d), dec_layers),
        g1=stack(lambda lp: lp["norm1_g"].reshape(1, d), dec_layers),
        b1=stack(lambda lp: lp["norm1_b"].reshape(1, d), dec_layers),
        c_wq=stack(lambda lp: lp["cross_attn"]["wq"].astype(jnp.bfloat16), dec_layers),
        c_bq=stack(lambda lp: lp["cross_attn"]["bq"].reshape(1, d), dec_layers),
        c_wkv=stack(lambda lp: kv_w(lp["cross_attn"]), dec_layers),
        c_bkv=stack(lambda lp: kv_b(lp["cross_attn"]), dec_layers),
        c_wo=stack(lambda lp: lp["cross_attn"]["wo"].astype(jnp.bfloat16), dec_layers),
        c_bo=stack(lambda lp: lp["cross_attn"]["bo"].reshape(1, d), dec_layers),
        g2=stack(lambda lp: lp["norm2_g"].reshape(1, d), dec_layers),
        b2=stack(lambda lp: lp["norm2_b"].reshape(1, d), dec_layers),
        f_w1=stack(lambda lp: lp["lin1_w"].astype(jnp.bfloat16), dec_layers),
        f_b1=stack(lambda lp: lp["lin1_b"].reshape(1, -1), dec_layers),
        f_w2=stack(lambda lp: lp["lin2_w"].astype(jnp.bfloat16), dec_layers),
        f_b2=stack(lambda lp: lp["lin2_b"].reshape(1, d), dec_layers),
        g3=stack(lambda lp: lp["norm3_g"].reshape(1, d), dec_layers),
        b3=stack(lambda lp: lp["norm3_b"].reshape(1, d), dec_layers),
        gf=params["dec_norm_g"].reshape(1, d),
        bf=params["dec_norm_b"].reshape(1, d),
        fc_w=jnp.pad(params["fc_out_w"], ((0, 0), (0, Vp - V))).astype(jnp.bfloat16),
        fc_b=jnp.pad(params["fc_out_b"], (0, Vp - V)).reshape(1, Vp),
    )

    return dict(
        src_word_emb=params["src_word_emb"], src_pos_emb=params["src_pos_emb"],
        trg_word_emb=params["trg_word_emb"], trg_pos_emb=params["trg_pos_emb"],
        enc=enc, dec=dec,
    )


# ----------------------------------------------------------------------------- model glue

def make_transformer_forward(cfg):
    H = cfg["num_heads"]
    pad_idx = cfg["pad_idx"]
    V = cfg["trg_vocab_size"]

    def fwd(packed, src, trg):
        N, S = src.shape
        _, T = trg.shape

        src_pos = jnp.arange(S)[None, :]
        trg_pos = jnp.arange(T)[None, :]

        # embeddings (gather = XLA glue); dropout is identity (eval semantics)
        embed_src = packed["src_word_emb"][src] + packed["src_pos_emb"][src_pos]
        embed_trg = packed["trg_word_emb"][trg] + packed["trg_pos_emb"][trg_pos]

        # (N, 1, S) additive source key-padding bias (src_key_padding_mask equivalent);
        # the causal tgt_mask is built inside the decoder kernel.
        key_bias = jnp.where(src == pad_idx, MASK_VALUE, 0.0).astype(jnp.float32)[:, None, :]

        memory = encoder_forward(embed_src, key_bias, packed["enc"], H)
        logits_padded = decoder_forward(embed_trg, memory, packed["dec"], H)
        return logits_padded[:, :, :V]

    return jax.jit(fwd)


# ----------------------------------------------------------------------------- params (raw, PyTorch-like)

def _init_linear(key, fan_in, fan_out, scale=0.05):
    kw, kb = jax.random.split(key)
    w = jax.random.normal(kw, (fan_in, fan_out), jnp.float32) * scale
    b = jax.random.normal(kb, (fan_out,), jnp.float32) * scale
    return w, b


def _init_mha(key, d):
    ks = jax.random.split(key, 4)
    wq, bq = _init_linear(ks[0], d, d)
    wk, bk = _init_linear(ks[1], d, d)
    wv, bv = _init_linear(ks[2], d, d)
    wo, bo = _init_linear(ks[3], d, d)
    return dict(wq=wq, bq=bq, wk=wk, bk=bk, wv=wv, bv=bv, wo=wo, bo=bo)


def _init_enc_layer(key, d, dff):
    ks = jax.random.split(key, 3)
    lin1_w, lin1_b = _init_linear(ks[1], d, dff)
    lin2_w, lin2_b = _init_linear(ks[2], dff, d)
    return dict(self_attn=_init_mha(ks[0], d),
                lin1_w=lin1_w, lin1_b=lin1_b, lin2_w=lin2_w, lin2_b=lin2_b,
                norm1_g=jnp.ones((d,), jnp.float32), norm1_b=jnp.zeros((d,), jnp.float32),
                norm2_g=jnp.ones((d,), jnp.float32), norm2_b=jnp.zeros((d,), jnp.float32))


def _init_dec_layer(key, d, dff):
    ks = jax.random.split(key, 4)
    lin1_w, lin1_b = _init_linear(ks[2], d, dff)
    lin2_w, lin2_b = _init_linear(ks[3], dff, d)
    return dict(self_attn=_init_mha(ks[0], d), cross_attn=_init_mha(ks[1], d),
                lin1_w=lin1_w, lin1_b=lin1_b, lin2_w=lin2_w, lin2_b=lin2_b,
                norm1_g=jnp.ones((d,), jnp.float32), norm1_b=jnp.zeros((d,), jnp.float32),
                norm2_g=jnp.ones((d,), jnp.float32), norm2_b=jnp.zeros((d,), jnp.float32),
                norm3_g=jnp.ones((d,), jnp.float32), norm3_b=jnp.zeros((d,), jnp.float32))


def init_params(key, cfg):
    d = cfg["embedding_size"]
    E, D = cfg["num_encoder_layers"], cfg["num_decoder_layers"]
    keys = jax.random.split(key, 5 + E + D)
    it = iter(keys)
    params = dict(
        src_word_emb=jax.random.normal(next(it), (cfg["src_vocab_size"], d), jnp.float32) * 0.05,
        src_pos_emb=jax.random.normal(next(it), (cfg["max_len"], d), jnp.float32) * 0.05,
        trg_word_emb=jax.random.normal(next(it), (cfg["trg_vocab_size"], d), jnp.float32) * 0.05,
        trg_pos_emb=jax.random.normal(next(it), (cfg["max_len"], d), jnp.float32) * 0.05,
        enc_norm_g=jnp.ones((d,), jnp.float32), enc_norm_b=jnp.zeros((d,), jnp.float32),
        dec_norm_g=jnp.ones((d,), jnp.float32), dec_norm_b=jnp.zeros((d,), jnp.float32),
    )
    params["encoder_layers"] = [
        _init_enc_layer(next(it), d, cfg["forward_expansion"]) for _ in range(E)]
    params["decoder_layers"] = [
        _init_dec_layer(next(it), d, cfg["forward_expansion"]) for _ in range(D)]
    fc_w, fc_b = _init_linear(next(it), d, cfg["trg_vocab_size"])
    params["fc_out_w"], params["fc_out_b"] = fc_w, fc_b
    return params


# ----------------------------------------------------------------------------- main

if __name__ == "__main__":
    cfg = dict(
        embedding_size=32,
        src_vocab_size=50,
        trg_vocab_size=48,
        pad_idx=0,
        num_heads=4,
        num_encoder_layers=2,
        num_decoder_layers=2,
        forward_expansion=64,   # dim_feedforward
        dropout=0.0,
        max_len=16,
    )

    key = jax.random.PRNGKey(0)
    k_params, k_src, k_trg = jax.random.split(key, 3)
    params = init_params(k_params, cfg)
    packed = jax.tree_util.tree_map(lambda x: x, pack_params(params, cfg))  # packed once

    N, S, T = 2, 8, 8
    src = jax.random.randint(k_src, (N, S), 1, cfg["src_vocab_size"], dtype=jnp.int32)
    src = src.at[:, -2:].set(cfg["pad_idx"])   # exercise the source key-padding mask
    trg = jax.random.randint(k_trg, (N, T), 1, cfg["trg_vocab_size"], dtype=jnp.int32)

    fwd = make_transformer_forward(cfg)
    out = fwd(packed, src, trg)
    out = jax.block_until_ready(out)

    assert out.shape == (N, T, cfg["trg_vocab_size"]), out.shape
    assert bool(jnp.all(jnp.isfinite(out)))
    print("KERNEL_OK")
</pallas_src>

<mosaic_0001>
module attributes {stable_mosaic.version = 11 : i64} {
  func.func @_encoder_kernel(%arg0: i32, %arg1: memref<1x1x8xf32, #tpu.memory_space<vmem>>, %arg2: memref<1x8x32xf32, #tpu.memory_space<vmem>>, %arg3: memref<2x32x96xbf16, #tpu.memory_space<vmem>>, %arg4: memref<2x1x96xf32, #tpu.memory_space<vmem>>, %arg5: memref<2x32x32xbf16, #tpu.memory_space<vmem>>, %arg6: memref<2x1x32xf32, #tpu.memory_space<vmem>>, %arg7: memref<2x1x32xf32, #tpu.memory_space<vmem>>, %arg8: memref<2x1x32xf32, #tpu.memory_space<vmem>>, %arg9: memref<2x32x64xbf16, #tpu.memory_space<vmem>>, %arg10: memref<2x1x64xf32, #tpu.memory_space<vmem>>, %arg11: memref<2x64x32xbf16, #tpu.memory_space<vmem>>, %arg12: memref<2x1x32xf32, #tpu.memory_space<vmem>>, %arg13: memref<2x1x32xf32, #tpu.memory_space<vmem>>, %arg14: memref<2x1x32xf32, #tpu.memory_space<vmem>>, %arg15: memref<1x32xf32, #tpu.memory_space<vmem>>, %arg16: memref<1x32xf32, #tpu.memory_space<vmem>>, %arg17: memref<1x8x32xf32, #tpu.memory_space<vmem>>) attributes {dimension_semantics = [#tpu.dimension_semantics<parallel>], iteration_bounds = array<i64: 2>, scalar_prefetch = 0 : i64, scratch_operands = 0 : i64, tpu.core_type = #tpu.core_type<tc>, window_params = [{transform_indices = @transform_0, window_bounds = array<i64: 1, 1, 8>}, {transform_indices = @transform_1, window_bounds = array<i64: 1, 8, 32>}, {pipeline_mode = #tpu.pipeline_mode<synchronous>, transform_indices = @transform_2, window_bounds = array<i64: 2, 32, 96>}, {pipeline_mode = #tpu.pipeline_mode<synchronous>, transform_indices = @transform_3, window_bounds = array<i64: 2, 1, 96>}, {pipeline_mode = #tpu.pipeline_mode<synchronous>, transform_indices = @transform_4, window_bounds = array<i64: 2, 32, 32>}, {pipeline_mode = #tpu.pipeline_mode<synchronous>, transform_indices = @transform_5, window_bounds = array<i64: 2, 1, 32>}, {pipeline_mode = #tpu.pipeline_mode<synchronous>, transform_indices = @transform_6, window_bounds = array<i64: 2, 1, 32>}, {pipeline_mode = #tpu.pipeline_mode<synchronous>, transform_indices = @transform_7, window_bounds = array<i64: 2, 1, 32>}, {pipeline_mode = #tpu.pipeline_mode<synchronous>, transform_indices = @transform_8, window_bounds = array<i64: 2, 32, 64>}, {pipeline_mode = #tpu.pipeline_mode<synchronous>, transform_indices = @transform_9, window_bounds = array<i64: 2, 1, 64>}, {pipeline_mode = #tpu.pipeline_mode<synchronous>, transform_indices = @transform_10, window_bounds = array<i64: 2, 64, 32>}, {pipeline_mode = #tpu.pipeline_mode<synchronous>, transform_indices = @transform_11, window_bounds = array<i64: 2, 1, 32>}, {pipeline_mode = #tpu.pipeline_mode<synchronous>, transform_indices = @transform_12, window_bounds = array<i64: 2, 1, 32>}, {pipeline_mode = #tpu.pipeline_mode<synchronous>, transform_indices = @transform_13, window_bounds = array<i64: 2, 1, 32>}, {pipeline_mode = #tpu.pipeline_mode<synchronous>, transform_indices = @transform_14, window_bounds = array<i64: 1, 32>}, {pipeline_mode = #tpu.pipeline_mode<synchronous>, transform_indices = @transform_15, window_bounds = array<i64: 1, 32>}, {transform_indices = @transform_16, window_bounds = array<i64: 1, 8, 32>}]} {
    %c0 = arith.constant 0 : index
    %c0_0 = arith.constant 0 : index
    %c0_1 = arith.constant 0 : index
    %0 = vector.load %arg2[%c0, %c0_0, %c0_1] : memref<1x8x32xf32, #tpu.memory_space<vmem>>, vector<1x8x32xf32>
    %1 = vector.shape_cast %0 : vector<1x8x32xf32> to vector<8x32xf32>
    %c0_2 = arith.constant 0 : index
    %c0_3 = arith.constant 0 : index
    %c0_4 = arith.constant 0 : index
    %2 = vector.load %arg1[%c0_2, %c0_3, %c0_4] : memref<1x1x8xf32, #tpu.memory_space<vmem>>, vector<1x1x8xf32>
    %3 = vector.shape_cast %2 : vector<1x1x8xf32> to vector<1x8xf32>
    %4 = arith.truncf %1 : vector<8x32xf32> to vector<8x32xbf16>
    %c0_5 = arith.constant 0 : index
    %c0_6 = arith.constant 0 : index
    %c0_7 = arith.constant 0 : index
    %5 = vector.load %arg3[%c0_5, %c0_6, %c0_7] : memref<2x32x96xbf16, #tpu.memory_space<vmem>>, vector<1x32x96xbf16>
    %6 = vector.shape_cast %5 : vector<1x32x96xbf16> to vector<32x96xbf16>
    %cst = arith.constant dense<0.000000e+00> : vector<8x96xf32>
    %7 = tpu.matmul %4, %6, %cst {dimension_numbers = #tpu.dot_dimension_numbers<[1], [0], [0], [1], [0, 0, 1, 1], [], []>} : vector<8x32xbf16>, vector<32x96xbf16>, vector<8x96xf32> -> vector<8x96xf32>
    %c0_8 = arith.constant 0 : index
    %c0_9 = arith.constant 0 : index
    %c0_10 = arith.constant 0 : index
    %8 = vector.load %arg4[%c0_8, %c0_9, %c0_10] : memref<2x1x96xf32, #tpu.memory_space<vmem>>, vector<1x1x96xf32>
    %9 = vector.shape_cast %8 : vector<1x1x96xf32> to vector<1x96xf32>
    %10 = vector.broadcast %9 : vector<1x96xf32> to vector<8x96xf32>
    %11 = arith.addf %7, %10 : vector<8x96xf32>
    %12 = vector.extract_strided_slice %11 {offsets = [0, 0], sizes = [8, 32], strides = [1, 1]} : vector<8x96xf32> to vector<8x32xf32>
    %13 = vector.extract_strided_slice %11 {offsets = [0, 32], sizes = [8, 32], strides = [1, 1]} : vector<8x96xf32> to vector<8x32xf32>
    %14 = vector.extract_strided_slice %11 {offsets = [0, 64], sizes = [8, 32], strides = [1, 1]} : vector<8x96xf32> to vector<8x32xf32>
    %15 = vector.extract_strided_slice %12 {offsets = [0, 0], sizes = [8, 8], strides = [1, 1]} : vector<8x32xf32> to vector<8x8xf32>
    %16 = vector.extract_strided_slice %13 {offsets = [0, 0], sizes = [8, 8], strides = [1, 1]} : vector<8x32xf32> to vector<8x8xf32>
    %17 = vector.extract_strided_slice %14 {offsets = [0, 0], sizes = [8, 8], strides = [1, 1]} : vector<8x32xf32> to vector<8x8xf32>
    %cst_11 = arith.constant dense<0.000000e+00> : vector<8x8xf32>
    %18 = tpu.matmul %15, %16, %cst_11 {dimension_numbers = #tpu.dot_dimension_numbers<[1], [1], [0], [0], [0, 0, 1, 0], [], []>} : vector<8x8xf32>, vector<8x8xf32>, vector<8x8xf32> -> vector<8x8xf32>
    %cst_12 = arith.constant 0.353553385 : f32
    %19 = vector.broadcast %cst_12 : f32 to vector<8x8xf32>
    %20 = arith.mulf %18, %19 : vector<8x8xf32>
    %21 = vector.broadcast %3 : vector<1x8xf32> to vector<8x8xf32>
    %22 = arith.addf %20, %21 : vector<8x8xf32>
    %cst_13 = arith.constant dense<0xFF800000> : vector<8xf32>
    %23 = vector.multi_reduction <maximumf>, %22, %cst_13 [1] : vector<8x8xf32> to vector<8xf32>
    %24 = vector.shape_cast %23 : vector<8xf32> to vector<8x1xf32>
    %25 = vector.broadcast %24 : vector<8x1xf32> to vector<8x8xf32>
    %26 = arith.subf %22, %25 : vector<8x8xf32>
    %27 = math.exp %26 : vector<8x8xf32>
    %cst_14 = arith.constant dense<0.000000e+00> : vector<8xf32>
    %28 = vector.multi_reduction <add>, %27, %cst_14 [1] : vector<8x8xf32> to vector<8xf32>
    %29 = vector.shape_cast %28 : vector<8xf32> to vector<8x1xf32>
    %30 = vector.broadcast %29 : vector<8x1xf32> to vector<8x8xf32>
    %31 = arith.divf %27, %30 : vector<8x8xf32>
    %cst_15 = arith.constant dense<0.000000e+00> : vector<8x8xf32>
    %32 = tpu.matmul %31, %17, %cst_15 {dimension_numbers = #tpu.dot_dimension_numbers<[1], [0], [0], [1], [0, 0, 1, 1], [], []>} : vector<8x8xf32>, vector<8x8xf32>, vector<8x8xf32> -> vector<8x8xf32>
    %33 = vector.extract_strided_slice %12 {offsets = [0, 8], sizes = [8, 8], strides = [1, 1]} : vector<8x32xf32> to vector<8x8xf32>
    %34 = vector.extract_strided_slice %13 {offsets = [0, 8], sizes = [8, 8], strides = [1, 1]} : vector<8x32xf32> to vector<8x8xf32>
    %35 = vector.extract_strided_slice %14 {offsets = [0, 8], sizes = [8, 8], strides = [1, 1]} : vector<8x32xf32> to vector<8x8xf32>
    %cst_16 = arith.constant dense<0.000000e+00> : vector<8x8xf32>
    %36 = tpu.matmul %33, %34, %cst_16 {dimension_numbers = #tpu.dot_dimension_numbers<[1], [1], [0], [0], [0, 0, 1, 0], [], []>} : vector<8x8xf32>, vector<8x8xf32>, vector<8x8xf32> -> vector<8x8xf32>
    %cst_17 = arith.constant 0.353553385 : f32
    %37 = vector.broadcast %cst_17 : f32 to vector<8x8xf32>
    %38 = arith.mulf %36, %37 : vector<8x8xf32>
    %39 = vector.broadcast %3 : vector<1x8xf32> to vector<8x8xf32>
    %40 = arith.addf %38, %39 : vector<8x8xf32>
    %cst_18 = arith.constant dense<0xFF800000> : vector<8xf32>
    %41 = vector.multi_reduction <maximumf>, %40, %cst_18 [1] : vector<8x8xf32> to vector<8xf32>
    %42 = vector.shape_cast %41 : vector<8xf32> to vector<8x1xf32>
    %43 = vector.broadcast %42 : vector<8x1xf32> to vector<8x8xf32>
    %44 = arith.subf %40, %43 : vector<8x8xf32>
    %45 = math.exp %44 : vector<8x8xf32>
    %cst_19 = arith.constant dense<0.000000e+00> : vector<8xf32>
    %46 = vector.multi_reduction <add>, %45, %cst_19 [1] : vector<8x8xf32> to vector<8xf32>
    %47 = vector.shape_cast %46 : vector<8xf32> to vector<8x1xf32>
    %48 = vector.broadcast %47 : vector<8x1xf32> to vector<8x8xf32>
    %49 = arith.divf %45, %48 : vector<8x8xf32>
    %cst_20 = arith.constant dense<0.000000e+00> : vector<8x8xf32>
    %50 = tpu.matmul %49, %35, %cst_20 {dimension_numbers = #tpu.dot_dimension_numbers<[1], [0], [0], [1], [0, 0, 1, 1], [], []>} : vector<8x8xf32>, vector<8x8xf32>, vector<8x8xf32> -> vector<8x8xf32>
    %51 = vector.extract_strided_slice %12 {offsets = [0, 16], sizes = [8, 8], strides = [1, 1]} : vector<8x32xf32> to vector<8x8xf32>
    %52 = vector.extract_strided_slice %13 {offsets = [0, 16], sizes = [8, 8], strides = [1, 1]} : vector<8x32xf32> to vector<8x8xf32>
    %53 = vector.extract_strided_slice %14 {offsets = [0, 16], sizes = [8, 8], strides = [1, 1]} : vector<8x32xf32> to vector<8x8xf32>
    %cst_21 = arith.constant dense<0.000000e+00> : vector<8x8xf32>
    %54 = tpu.matmul %51, %52, %cst_21 {dimension_numbers = #tpu.dot_dimension_numbers<[1], [1], [0], [0], [0, 0, 1, 0], [], []>} : vector<8x8xf32>, vector<8x8xf32>, vector<8x8xf32> -> vector<8x8xf32>
    %cst_22 = arith.constant 0.353553385 : f32
    %55 = vector.broadcast %cst_22 : f32 to vector<8x8xf32>
    %56 = arith.mulf %54, %55 : vector<8x8xf32>
    %57 = vector.broadcast %3 : vector<1x8xf32> to vector<8x8xf32>
    %58 = arith.addf %56, %57 : vector<8x8xf32>
    %cst_23 = arith.constant dense<0xFF800000> : vector<8xf32>
    %59 = vector.multi_reduction <maximumf>, %58, %cst_23 [1] : vector<8x8xf32> to vector<8xf32>
    %60 = vector.shape_cast %59 : vector<8xf32> to vector<8x1xf32>
    %61 = vector.broadcast %60 : vector<8x1xf32> to vector<8x8xf32>
    %62 = arith.subf %58, %61 : vector<8x8xf32>
    %63 = math.exp %62 : vector<8x8xf32>
    %cst_24 = arith.constant dense<0.000000e+00> : vector<8xf32>
    %64 = vector.multi_reduction <add>, %63, %cst_24 [1] : vector<8x8xf32> to vector<8xf32>
    %65 = vector.shape_cast %64 : vector<8xf32> to vector<8x1xf32>
    %66 = vector.broadcast %65 : vector<8x1xf32> to vector<8x8xf32>
    %67 = arith.divf %63, %66 : vector<8x8xf32>
    %cst_25 = arith.constant dense<0.000000e+00> : vector<8x8xf32>
    %68 = tpu.matmul %67, %53, %cst_25 {dimension_numbers = #tpu.dot_dimension_numbers<[1], [0], [0], [1], [0, 0, 1, 1], [], []>} : vector<8x8xf32>, vector<8x8xf32>, vector<8x8xf32> -> vector<8x8xf32>
    %69 = vector.extract_strided_slice %12 {offsets = [0, 24], sizes = [8, 8], strides = [1, 1]} : vector<8x32xf32> to vector<8x8xf32>
    %70 = vector.extract_strided_slice %13 {offsets = [0, 24], sizes = [8, 8], strides = [1, 1]} : vector<8x32xf32> to vector<8x8xf32>
    %71 = vector.extract_strided_slice %14 {offsets = [0, 24], sizes = [8, 8], strides = [1, 1]} : vector<8x32xf32> to vector<8x8xf32>
    %cst_26 = arith.constant dense<0.000000e+00> : vector<8x8xf32>
    %72 = tpu.matmul %69, %70, %cst_26 {dimension_numbers = #tpu.dot_dimension_numbers<[1], [1], [0], [0], [0, 0, 1, 0], [], []>} : vector<8x8xf32>, vector<8x8xf32>, vector<8x8xf32> -> vector<8x8xf32>
    %cst_27 = arith.constant 0.353553385 : f32
    %73 = vector.broadcast %cst_27 : f32 to vector<8x8xf32>
    %74 = arith.mulf %72, %73 : vector<8x8xf32>
    %75 = vector.broadcast %3 : vector<1x8xf32> to vector<8x8xf32>
    %76 = arith.addf %74, %75 : vector<8x8xf32>
    %cst_28 = arith.constant dense<0xFF800000> : vector<8xf32>
    %77 = vector.multi_reduction <maximumf>, %76, %cst_28 [1] : vector<8x8xf32> to vector<8xf32>
    %78 = vector.shape_cast %77 : vector<8xf32> to vector<8x1xf32>
    %79 = vector.broadcast %78 : vector<8x1xf32> to vector<8x8xf32>
    %80 = arith.subf %76, %79 : vector<8x8xf32>
    %81 = math.exp %80 : vector<8x8xf32>
    %cst_29 = arith.constant dense<0.000000e+00> : vector<8xf32>
    %82 = vector.multi_reduction <add>, %81, %cst_29 [1] : vector<8x8xf32> to vector<8xf32>
    %83 = vector.shape_cast %82 : vector<8xf32> to vector<8x1xf32>
    %84 = vector.broadcast %83 : vector<8x1xf32> to vector<8x8xf32>
    %85 = arith.divf %81, %84 : vector<8x8xf32>
    %cst_30 = arith.constant dense<0.000000e+00> : vector<8x8xf32>
    %86 = tpu.matmul %85, %71, %cst_30 {dimension_numbers = #tpu.dot_dimension_numbers<[1], [0], [0], [1], [0, 0, 1, 1], [], []>} : vector<8x8xf32>, vector<8x8xf32>, vector<8x8xf32> -> vector<8x8xf32>
    %87 = tpu.concatenate %32, %50, %68, %86 in 1 : vector<8x8xf32>, vector<8x8xf32>, vector<8x8xf32>, vector<8x8xf32> -> vector<8x32xf32>
    %88 = arith.truncf %87 : vector<8x32xf32> to vector<8x32xbf16>
    %c0_31 = arith.constant 0 : index
    %c0_32 = arith.constant 0 : index
    %c0_33 = arith.constant 0 : index
    %89 = vector.load %arg5[%c0_31, %c0_32, %c0_33] : memref<2x32x32xbf16, #tpu.memory_space<vmem>>, vector<1x32x32xbf16>
    %90 = vector.shape_cast %89 : vector<1x32x32xbf16> to vector<32x32xbf16>
    %cst_34 = arith.constant dense<0.000000e+00> : vector<8x32xf32>
    %91 = tpu.matmul %88, %90, %cst_34 {dimension_numbers = #tpu.dot_dimension_numbers<[1], [0], [0], [1], [0, 0, 1, 1], [], []>} : vector<8x32xbf16>, vector<32x32xbf16>, vector<8x32xf32> -> vector<8x32xf32>
    %c0_35 = arith.constant 0 : index
    %c0_36 = arith.constant 0 : index
    %c0_37 = arith.constant 0 : index
    %92 = vector.load %arg6[%c0_35, %c0_36, %c0_37] : memref<2x1x32xf32, #tpu.memory_space<vmem>>, vector<1x1x32xf32>
    %93 = vector.shape_cast %92 : vector<1x1x32xf32> to vector<1x32xf32>
    %94 = vector.broadcast %93 : vector<1x32xf32> to vector<8x32xf32>
    %95 = arith.addf %91, %94 : vector<8x32xf32>
    %96 = arith.addf %1, %95 : vector<8x32xf32>
    %c0_38 = arith.constant 0 : index
    %c0_39 = arith.constant 0 : index
    %c0_40 = arith.constant 0 : index
    %97 = vector.load %arg7[%c0_38, %c0_39, %c0_40] : memref<2x1x32xf32, #tpu.memory_space<vmem>>, vector<1x1x32xf32>
    %98 = vector.shape_cast %97 : vector<1x1x32xf32> to vector<1x32xf32>
    %c0_41 = arith.constant 0 : index
    %c0_42 = arith.constant 0 : index
    %c0_43 = arith.constant 0 : index
    %99 = vector.load %arg8[%c0_41, %c0_42, %c0_43] : memref<2x1x32xf32, #tpu.memory_space<vmem>>, vector<1x1x32xf32>
    %100 = vector.shape_cast %99 : vector<1x1x32xf32> to vector<1x32xf32>
    %cst_44 = arith.constant dense<0.000000e+00> : vector<8xf32>
    %101 = vector.multi_reduction <add>, %96, %cst_44 [1] : vector<8x32xf32> to vector<8xf32>
    %102 = vector.shape_cast %101 : vector<8xf32> to vector<8x1xf32>
    %cst_45 = arith.constant 3.200000e+01 : f32
    %103 = vector.broadcast %cst_45 : f32 to vector<8x1xf32>
    %104 = arith.divf %102, %103 : vector<8x1xf32>
    %105 = vector.broadcast %104 : vector<8x1xf32> to vector<8x32xf32>
    %106 = arith.subf %96, %105 : vector<8x32xf32>
    %107 = arith.mulf %106, %106 : vector<8x32xf32>
    %cst_46 = arith.constant dense<0.000000e+00> : vector<8xf32>
    %108 = vector.multi_reduction <add>, %107, %cst_46 [1] : vector<8x32xf32> to vector<8xf32>
    %109 = vector.shape_cast %108 : vector<8xf32> to vector<8x1xf32>
    %cst_47 = arith.constant 3.200000e+01 : f32
    %110 = vector.broadcast %cst_47 : f32 to vector<8x1xf32>
    %111 = arith.divf %109, %110 : vector<8x1xf32>
    %112 = vector.broadcast %104 : vector<8x1xf32> to vector<8x32xf32>
    %113 = arith.subf %96, %112 : vector<8x32xf32>
    %cst_48 = arith.constant 9.99999974E-6 : f32
    %114 = vector.broadcast %cst_48 : f32 to vector<8x1xf32>
    %115 = arith.addf %111, %114 : vector<8x1xf32>
    %116 = math.rsqrt %115 : vector<8x1xf32>
    %117 = vector.broadcast %116 : vector<8x1xf32> to vector<8x32xf32>
    %118 = arith.mulf %113, %117 : vector<8x32xf32>
    %119 = vector.broadcast %98 : vector<1x32xf32> to vector<8x32xf32>
    %120 = arith.mulf %118, %119 : vector<8x32xf32>
    %121 = vector.broadcast %100 : vector<1x32xf32> to vector<8x32xf32>
    %122 = arith.addf %120, %121 : vector<8x32xf32>
    %123 = arith.truncf %122 : vector<8x32xf32> to vector<8x32xbf16>
    %c0_49 = arith.constant 0 : index
    %c0_50 = arith.constant 0 : index
    %c0_51 = arith.constant 0 : index
    %124 = vector.load %arg9[%c0_49, %c0_50, %c0_51] : memref<2x32x64xbf16, #tpu.memory_space<vmem>>, vector<1x32x64xbf16>
    %125 = vector.shape_cast %124 : vector<1x32x64xbf16> to vector<32x64xbf16>
    %cst_52 = arith.constant dense<0.000000e+00> : vector<8x64xf32>
    %126 = tpu.matmul %123, %125, %cst_52 {dimension_numbers = #tpu.dot_dimension_numbers<[1], [0], [0], [1], [0, 0, 1, 1], [], []>} : vector<8x32xbf16>, vector<32x64xbf16>, vector<8x64xf32> -> vector<8x64xf32>
    %c0_53 = arith.constant 0 : index
    %c0_54 = arith.constant 0 : index
    %c0_55 = arith.constant 0 : index
    %127 = vector.load %arg10[%c0_53, %c0_54, %c0_55] : memref<2x1x64xf32, #tpu.memory_space<vmem>>, vector<1x1x64xf32>
    %128 = vector.shape_cast %127 : vector<1x1x64xf32> to vector<1x64xf32>
    %129 = vector.broadcast %128 : vector<1x64xf32> to vector<8x64xf32>
    %130 = arith.addf %126, %129 : vector<8x64xf32>
    %cst_56 = arith.constant 0.000000e+00 : f32
    %131 = vector.broadcast %cst_56 : f32 to vector<8x64xf32>
    %132 = arith.maximumf %130, %131 : vector<8x64xf32>
    %133 = arith.truncf %132 : vector<8x64xf32> to vector<8x64xbf16>
    %c0_57 = arith.constant 0 : index
    %c0_58 = arith.constant 0 : index
    %c0_59 = arith.constant 0 : index
    %134 = vector.load %arg11[%c0_57, %c0_58, %c0_59] : memref<2x64x32xbf16, #tpu.memory_space<vmem>>, vector<1x64x32xbf16>
    %135 = vector.shape_cast %134 : vector<1x64x32xbf16> to vector<64x32xbf16>
    %cst_60 = arith.constant dense<0.000000e+00> : vector<8x32xf32>
    %136 = tpu.matmul %133, %135, %cst_60 {dimension_numbers = #tpu.dot_dimension_numbers<[1], [0], [0], [1], [0, 0, 1, 1], [], []>} : vector<8x64xbf16>, vector<64x32xbf16>, vector<8x32xf32> -> vector<8x32xf32>
    %c0_61 = arith.constant 0 : index
    %c0_62 = arith.constant 0 : index
    %c0_63 = arith.constant 0 : index
    %137 = vector.load %arg12[%c0_61, %c0_62, %c0_63] : memref<2x1x32xf32, #tpu.memory_space<vmem>>, vector<1x1x32xf32>
    %138 = vector.shape_cast %137 : vector<1x1x32xf32> to vector<1x32xf32>
    %139 = vector.broadcast %138 : vector<1x32xf32> to vector<8x32xf32>
    %140 = arith.addf %136, %139 : vector<8x32xf32>
    %141 = arith.addf %122, %140 : vector<8x32xf32>
    %c0_64 = arith.constant 0 : index
    %c0_65 = arith.constant 0 : index
    %c0_66 = arith.constant 0 : index
    %142 = vector.load %arg13[%c0_64, %c0_65, %c0_66] : memref<2x1x32xf32, #tpu.memory_space<vmem>>, vector<1x1x32xf32>
    %143 = vector.shape_cast %142 : vector<1x1x32xf32> to vector<1x32xf32>
    %c0_67 = arith.constant 0 : index
    %c0_68 = arith.constant 0 : index
    %c0_69 = arith.constant 0 : index
    %144 = vector.load %arg14[%c0_67, %c0_68, %c0_69] : memref<2x1x32xf32, #tpu.memory_space<vmem>>, vector<1x1x32xf32>
    %145 = vector.shape_cast %144 : vector<1x1x32xf32> to vector<1x32xf32>
    %cst_70 = arith.constant dense<0.000000e+00> : vector<8xf32>
    %146 = vector.multi_reduction <add>, %141, %cst_70 [1] : vector<8x32xf32> to vector<8xf32>
    %147 = vector.shape_cast %146 : vector<8xf32> to vector<8x1xf32>
    %cst_71 = arith.constant 3.200000e+01 : f32
    %148 = vector.broadcast %cst_71 : f32 to vector<8x1xf32>
    %149 = arith.divf %147, %148 : vector<8x1xf32>
    %150 = vector.broadcast %149 : vector<8x1xf32> to vector<8x32xf32>
    %151 = arith.subf %141, %150 : vector<8x32xf32>
    %152 = arith.mulf %151, %151 : vector<8x32xf32>
    %cst_72 = arith.constant dense<0.000000e+00> : vector<8xf32>
    %153 = vector.multi_reduction <add>, %152, %cst_72 [1] : vector<8x32xf32> to vector<8xf32>
    %154 = vector.shape_cast %153 : vector<8xf32> to vector<8x1xf32>
    %cst_73 = arith.constant 3.200000e+01 : f32
    %155 = vector.broadcast %cst_73 : f32 to vector<8x1xf32>
    %156 = arith.divf %154, %155 : vector<8x1xf32>
    %157 = vector.broadcast %149 : vector<8x1xf32> to vector<8x32xf32>
    %158 = arith.subf %141, %157 : vector<8x32xf32>
    %cst_74 = arith.constant 9.99999974E-6 : f32
    %159 = vector.broadcast %cst_74 : f32 to vector<8x1xf32>
    %160 = arith.addf %156, %159 : vector<8x1xf32>
    %161 = math.rsqrt %160 : vector<8x1xf32>
    %162 = vector.broadcast %161 : vector<8x1xf32> to vector<8x32xf32>
    %163 = arith.mulf %158, %162 : vector<8x32xf32>
    %164 = vector.broadcast %143 : vector<1x32xf32> to vector<8x32xf32>
    %165 = arith.mulf %163, %164 : vector<8x32xf32>
    %166 = vector.broadcast %145 : vector<1x32xf32> to vector<8x32xf32>
    %167 = arith.addf %165, %166 : vector<8x32xf32>
    %168 = arith.truncf %167 : vector<8x32xf32> to vector<8x32xbf16>
    %c1 = arith.constant 1 : index
    %c0_75 = arith.constant 0 : index
    %c0_76 = arith.constant 0 : index
    %169 = vector.load %arg3[%c1, %c0_75, %c0_76] : memref<2x32x96xbf16, #tpu.memory_space<vmem>>, vector<1x32x96xbf16>
    %170 = vector.shape_cast %169 : vector<1x32x96xbf16> to vector<32x96xbf16>
    %cst_77 = arith.constant dense<0.000000e+00> : vector<8x96xf32>
    %171 = tpu.matmul %168, %170, %cst_77 {dimension_numbers = #tpu.dot_dimension_numbers<[1], [0], [0], [1], [0, 0, 1, 1], [], []>} : vector<8x32xbf16>, vector<32x96xbf16>, vector<8x96xf32> -> vector<8x96xf32>
    %c1_78 = arith.constant 1 : index
    %c0_79 = arith.constant 0 : index
    %c0_80 = arith.constant 0 : index
    %172 = vector.load %arg4[%c1_78, %c0_79, %c0_80] : memref<2x1x96xf32, #tpu.memory_space<vmem>>, vector<1x1x96xf32>
    %173 = vector.shape_cast %172 : vector<1x1x96xf32> to vector<1x96xf32>
    %174 = vector.broadcast %173 : vector<1x96xf32> to vector<8x96xf32>
    %175 = arith.addf %171, %174 : vector<8x96xf32>
    %176 = vector.extract_strided_slice %175 {offsets = [0, 0], sizes = [8, 32], strides = [1, 1]} : vector<8x96xf32> to vector<8x32xf32>
    %177 = vector.extract_strided_slice %175 {offsets = [0, 32], sizes = [8, 32], strides = [1, 1]} : vector<8x96xf32> to vector<8x32xf32>
    %178 = vector.extract_strided_slice %175 {offsets = [0, 64], sizes = [8, 32], strides = [1, 1]} : vector<8x96xf32> to vector<8x32xf32>
    %179 = vector.extract_strided_slice %176 {offsets = [0, 0], sizes = [8, 8], strides = [1, 1]} : vector<8x32xf32> to vector<8x8xf32>
    %180 = vector.extract_strided_slice %177 {offsets = [0, 0], sizes = [8, 8], strides = [1, 1]} : vector<8x32xf32> to vector<8x8xf32>
    %181 = vector.extract_strided_slice %178 {offsets = [0, 0], sizes = [8, 8], strides = [1, 1]} : vector<8x32xf32> to vector<8x8xf32>
    %cst_81 = arith.constant dense<0.000000e+00> : vector<8x8xf32>
    %182 = tpu.matmul %179, %180, %cst_81 {dimension_numbers = #tpu.dot_dimension_numbers<[1], [1], [0], [0], [0, 0, 1, 0], [], []>} : vector<8x8xf32>, vector<8x8xf32>, vector<8x8xf32> -> vector<8x8xf32>
    %cst_82 = arith.constant 0.353553385 : f32
    %183 = vector.broadcast %cst_82 : f32 to vector<8x8xf32>
    %184 = arith.mulf %182, %183 : vector<8x8xf32>
    %185 = vector.broadcast %3 : vector<1x8xf32> to vector<8x8xf32>
    %186 = arith.addf %184, %185 : vector<8x8xf32>
    %cst_83 = arith.constant dense<0xFF800000> : vector<8xf32>
    %187 = vector.multi_reduction <maximumf>, %186, %cst_83 [1] : vector<8x8xf32> to vector<8xf32>
    %188 = vector.shape_cast %187 : vector<8xf32> to vector<8x1xf32>
    %189 = vector.broadcast %188 : vector<8x1xf32> to vector<8x8xf32>
    %190 = arith.subf %186, %189 : vector<8x8xf32>
    %191 = math.exp %190 : vector<8x8xf32>
    %cst_84 = arith.constant dense<0.000000e+00> : vector<8xf32>
    %192 = vector.multi_reduction <add>, %191, %cst_84 [1] : vector<8x8xf32> to vector<8xf32>
    %193 = vector.shape_cast %192 : vector<8xf32> to vector<8x1xf32>
    %194 = vector.broadcast %193 : vector<8x1xf32> to vector<8x8xf32>
    %195 = arith.divf %191, %194 : vector<8x8xf32>
    %cst_85 = arith.constant dense<0.000000e+00> : vector<8x8xf32>
    %196 = tpu.matmul %195, %181, %cst_85 {dimension_numbers = #tpu.dot_dimension_numbers<[1], [0], [0], [1], [0, 0, 1, 1], [], []>} : vector<8x8xf32>, vector<8x8xf32>, vector<8x8xf32> -> vector<8x8xf32>
    %197 = vector.extract_strided_slice %176 {offsets = [0, 8], sizes = [8, 8], strides = [1, 1]} : vector<8x32xf32> to vector<8x8xf32>
    %198 = vector.extract_strided_slice %177 {offsets = [0, 8], sizes = [8, 8], strides = [1, 1]} : vector<8x32xf32> to vector<8x8xf32>
    %199 = vector.extract_strided_slice %178 {offsets = [0, 8], sizes = [8, 8], strides = [1, 1]} : vector<8x32xf32> to vector<8x8xf32>
    %cst_86 = arith.constant dense<0.000000e+00> : vector<8x8xf32>
    %200 = tpu.matmul %197, %198, %cst_86 {dimension_numbers = #tpu.dot_dimension_numbers<[1], [1], [0], [0], [0, 0, 1, 0], [], []>} : vector<8x8xf32>, vector<8x8xf32>, vector<8x8xf32> -> vector<8x8xf32>
    %cst_87 = arith.constant 0.353553385 : f32
    %201 = vector.broadcast %cst_87 : f32 to vector<8x8xf32>
    %202 = arith.mulf %200, %201 : vector<8x8xf32>
    %203 = vector.broadcast %3 : vector<1x8xf32> to vector<8x8xf32>
    %204 = arith.addf %202, %203 : vector<8x8xf32>
    %cst_88 = arith.constant dense<0xFF800000> : vector<8xf32>
    %205 = vector.multi_reduction <maximumf>, %204, %cst_88 [1] : vector<8x8xf32> to vector<8xf32>
    %206 = vector.shape_cast %205 : vector<8xf32> to vector<8x1xf32>
    %207 = vector.broadcast %206 : vector<8x1xf32> to vector<8x8xf32>
    %208 = arith.subf %204, %207 : vector<8x8xf32>
    %209 = math.exp %208 : vector<8x8xf32>
    %cst_89 = arith.constant dense<0.000000e+00> : vector<8xf32>
    %210 = vector.multi_reduction <add>, %209, %cst_89 [1] : vector<8x8xf32> to vector<8xf32>
    %211 = vector.shape_cast %210 : vector<8xf32> to vector<8x1xf32>
    %212 = vector.broadcast %211 : vector<8x1xf32> to vector<8x8xf32>
    %213 = arith.divf %209, %212 : vector<8x8xf32>
    %cst_90 = arith.constant dense<0.000000e+00> : vector<8x8xf32>
    %214 = tpu.matmul %213, %199, %cst_90 {dimension_numbers = #tpu.dot_dimension_numbers<[1], [0], [0], [1], [0, 0, 1, 1], [], []>} : vector<8x8xf32>, vector<8x8xf32>, vector<8x8xf32> -> vector<8x8xf32>
    %215 = vector.extract_strided_slice %176 {offsets = [0, 16], sizes = [8, 8], strides = [1, 1]} : vector<8x32xf32> to vector<8x8xf32>
    %216 = vector.extract_strided_slice %177 {offsets = [0, 16], sizes = [8, 8], strides = [1, 1]} : vector<8x32xf32> to vector<8x8xf32>
    %217 = vector.extract_strided_slice %178 {offsets = [0, 16], sizes = [8, 8], strides = [1, 1]} : vector<8x32xf32> to vector<8x8xf32>
    %cst_91 = arith.constant dense<0.000000e+00> : vector<8x8xf32>
    %218 = tpu.matmul %215, %216, %cst_91 {dimension_numbers = #tpu.dot_dimension_numbers<[1], [1], [0], [0], [0, 0, 1, 0], [], []>} : vector<8x8xf32>, vector<8x8xf32>, vector<8x8xf32> -> vector<8x8xf32>
    %cst_92 = arith.constant 0.353553385 : f32
    %219 = vector.broadcast %cst_92 : f32 to vector<8x8xf32>
    %220 = arith.mulf %218, %219 : vector<8x8xf32>
    %221 = vector.broadcast %3 : vector<1x8xf32> to vector<8x8xf32>
    %222 = arith.addf %220, %221 : vector<8x8xf32>
    %cst_93 = arith.constant dense<0xFF800000> : vector<8xf32>
    %223 = vector.multi_reduction <maximumf>, %222, %cst_93 [1] : vector<8x8xf32> to vector<8xf32>
    %224 = vector.shape_cast %223 : vector<8xf32> to vector<8x1xf32>
    %225 = vector.broadcast %224 : vector<8x1xf32> to vector<8x8xf32>
    %226 = arith.subf %222, %225 : vector<8x8xf32>
    %227 = math.exp %226 : vector<8x8xf32>
    %cst_94 = arith.constant dense<0.000000e+00> : vector<8xf32>
    %228 = vector.multi_reduction <add>, %227, %cst_94 [1] : vector<8x8xf32> to vector<8xf32>
    %229 = vector.shape_cast %228 : vector<8xf32> to vector<8x1xf32>
    %230 = vector.broadcast %229 : vector<8x1xf32> to vector<8x8xf32>
    %231 = arith.divf %227, %230 : vector<8x8xf32>
    %cst_95 = arith.constant dense<0.000000e+00> : vector<8x8xf32>
    %232 = tpu.matmul %231, %217, %cst_95 {dimension_numbers = #tpu.dot_dimension_numbers<[1], [0], [0], [1], [0, 0, 1, 1], [], []>} : vector<8x8xf32>, vector<8x8xf32>, vector<8x8xf32> -> vector<8x8xf32>
    %233 = vector.extract_strided_slice %176 {offsets = [0, 24], sizes = [8, 8], strides = [1, 1]} : vector<8x32xf32> to vector<8x8xf32>
    %234 = vector.extract_strided_slice %177 {offsets = [0, 24], sizes = [8, 8], strides = [1, 1]} : vector<8x32xf32> to vector<8x8xf32>
    %235 = vector.extract_strided_slice %178 {offsets = [0, 24], sizes = [8, 8], strides = [1, 1]} : vector<8x32xf32> to vector<8x8xf32>
    %cst_96 = arith.constant dense<0.000000e+00> : vector<8x8xf32>
    %236 = tpu.matmul %233, %234, %cst_96 {dimension_numbers = #tpu.dot_dimension_numbers<[1], [1], [0], [0], [0, 0, 1, 0], [], []>} : vector<8x8xf32>, vector<8x8xf32>, vector<8x8xf32> -> vector<8x8xf32>
    %cst_97 = arith.constant 0.353553385 : f32
    %237 = vector.broadcast %cst_97 : f32 to vector<8x8xf32>
    %238 = arith.mulf %236, %237 : vector<8x8xf32>
    %239 = vector.broadcast %3 : vector<1x8xf32> to vector<8x8xf32>
    %240 = arith.addf %238, %239 : vector<8x8xf32>
    %cst_98 = arith.constant dense<0xFF800000> : vector<8xf32>
    %241 = vector.multi_reduction <maximumf>, %240, %cst_98 [1] : vector<8x8xf32> to vector<8xf32>
    %242 = vector.shape_cast %241 : vector<8xf32> to vector<8x1xf32>
    %243 = vector.broadcast %242 : vector<8x1xf32> to vector<8x8xf32>
    %244 = arith.subf %240, %243 : vector<8x8xf32>
    %245 = math.exp %244 : vector<8x8xf32>
    %cst_99 = arith.constant dense<0.000000e+00> : vector<8xf32>
    %246 = vector.multi_reduction <add>, %245, %cst_99 [1] : vector<8x8xf32> to vector<8xf32>
    %247 = vector.shape_cast %246 : vector<8xf32> to vector<8x1xf32>
    %248 = vector.broadcast %247 : vector<8x1xf32> to vector<8x8xf32>
    %249 = arith.divf %245, %248 : vector<8x8xf32>
    %cst_100 = arith.constant dense<0.000000e+00> : vector<8x8xf32>
    %250 = tpu.matmul %249, %235, %cst_100 {dimension_numbers = #tpu.dot_dimension_numbers<[1], [0], [0], [1], [0, 0, 1, 1], [], []>} : vector<8x8xf32>, vector<8x8xf32>, vector<8x8xf32> -> vector<8x8xf32>
    %251 = tpu.concatenate %196, %214, %232, %250 in 1 : vector<8x8xf32>, vector<8x8xf32>, vector<8x8xf32>, vector<8x8xf32> -> vector<8x32xf32>
    %252 = arith.truncf %251 : vector<8x32xf32> to vector<8x32xbf16>
    %c1_101 = arith.constant 1 : index
    %c0_102 = arith.constant 0 : index
    %c0_103 = arith.constant 0 : index
    %253 = vector.load %arg5[%c1_101, %c0_102, %c0_103] : memref<2x32x32xbf16, #tpu.memory_space<vmem>>, vector<1x32x32xbf16>
    %254 = vector.shape_cast %253 : vector<1x32x32xbf16> to vector<32x32xbf16>
    %cst_104 = arith.constant dense<0.000000e+00> : vector<8x32xf32>
    %255 = tpu.matmul %252, %254, %cst_104 {dimension_numbers = #tpu.dot_dimension_numbers<[1], [0], [0], [1], [0, 0, 1, 1], [], []>} : vector<8x32xbf16>, vector<32x32xbf16>, vector<8x32xf32> -> vector<8x32xf32>
    %c1_105 = arith.constant 1 : index
    %c0_106 = arith.constant 0 : index
    %c0_107 = arith.constant 0 : index
    %256 = vector.load %arg6[%c1_105, %c0_106, %c0_107] : memref<2x1x32xf32, #tpu.memory_space<vmem>>, vector<1x1x32xf32>
    %257 = vector.shape_cast %256 : vector<1x1x32xf32> to vector<1x32xf32>
    %258 = vector.broadcast %257 : vector<1x32xf32> to vector<8x32xf32>
    %259 = arith.addf %255, %258 : vector<8x32xf32>
    %260 = arith.addf %167, %259 : vector<8x32xf32>
    %c1_108 = arith.constant 1 : index
    %c0_109 = arith.constant 0 : index
    %c0_110 = arith.constant 0 : index
    %261 = vector.load %arg7[%c1_108, %c0_109, %c0_110] : memref<2x1x32xf32, #tpu.memory_space<vmem>>, vector<1x1x32xf32>
    %262 = vector.shape_cast %261 : vector<1x1x32xf32> to vector<1x32xf32>
    %c1_111 = arith.constant 1 : index
    %c0_112 = arith.constant 0 : index
    %c0_113 = arith.constant 0 : index
    %263 = vector.load %arg8[%c1_111, %c0_112, %c0_113] : memref<2x1x32xf32, #tpu.memory_space<vmem>>, vector<1x1x32xf32>
    %264 = vector.shape_cast %263 : vector<1x1x32xf32> to vector<1x32xf32>
    %cst_114 = arith.constant dense<0.000000e+00> : vector<8xf32>
    %265 = vector.multi_reduction <add>, %260, %cst_114 [1] : vector<8x32xf32> to vector<8xf32>
    %266 = vector.shape_cast %265 : vector<8xf32> to vector<8x1xf32>
    %cst_115 = arith.constant 3.200000e+01 : f32
    %267 = vector.broadcast %cst_115 : f32 to vector<8x1xf32>
    %268 = arith.divf %266, %267 : vector<8x1xf32>
    %269 = vector.broadcast %268 : vector<8x1xf32> to vector<8x32xf32>
    %270 = arith.subf %260, %269 : vector<8x32xf32>
    %271 = arith.mulf %270, %270 : vector<8x32xf32>
    %cst_116 = arith.constant dense<0.000000e+00> : vector<8xf32>
    %272 = vector.multi_reduction <add>, %271, %cst_116 [1] : vector<8x32xf32> to vector<8xf32>
    %273 = vector.shape_cast %272 : vector<8xf32> to vector<8x1xf32>
    %cst_117 = arith.constant 3.200000e+01 : f32
    %274 = vector.broadcast %cst_117 : f32 to vector<8x1xf32>
    %275 = arith.divf %273, %274 : vector<8x1xf32>
    %276 = vector.broadcast %268 : vector<8x1xf32> to vector<8x32xf32>
    %277 = arith.subf %260, %276 : vector<8x32xf32>
    %cst_118 = arith.constant 9.99999974E-6 : f32
    %278 = vector.broadcast %cst_118 : f32 to vector<8x1xf32>
    %279 = arith.addf %275, %278 : vector<8x1xf32>
    %280 = math.rsqrt %279 : vector<8x1xf32>
    %281 = vector.broadcast %280 : vector<8x1xf32> to vector<8x32xf32>
    %282 = arith.mulf %277, %281 : vector<8x32xf32>
    %283 = vector.broadcast %262 : vector<1x32xf32> to vector<8x32xf32>
    %284 = arith.mulf %282, %283 : vector<8x32xf32>
    %285 = vector.broadcast %264 : vector<1x32xf32> to vector<8x32xf32>
    %286 = arith.addf %284, %285 : vector<8x32xf32>
    %287 = arith.truncf %286 : vector<8x32xf32> to vector<8x32xbf16>
    %c1_119 = arith.constant 1 : index
    %c0_120 = arith.constant 0 : index
    %c0_121 = arith.constant 0 : index
    %288 = vector.load %arg9[%c1_119, %c0_120, %c0_121] : memref<2x32x64xbf16, #tpu.memory_space<vmem>>, vector<1x32x64xbf16>
    %289 = vector.shape_cast %288 : vector<1x32x64xbf16> to vector<32x64xbf16>
    %cst_122 = arith.constant dense<0.000000e+00> : vector<8x64xf32>
    %290 = tpu.matmul %287, %289, %cst_122 {dimension_numbers = #tpu.dot_dimension_numbers<[1], [0], [0], [1], [0, 0, 1, 1], [], []>} : vector<8x32xbf16>, vector<32x64xbf16>, vector<8x64xf32> -> vector<8x64xf32>
    %c1_123 = arith.constant 1 : index
    %c0_124 = arith.constant 0 : index
    %c0_125 = arith.constant 0 : index
    %291 = vector.load %arg10[%c1_123, %c0_124, %c0_125] : memref<2x1x64xf32, #tpu.memory_space<vmem>>, vector<1x1x64xf32>
    %292 = vector.shape_cast %291 : vector<1x1x64xf32> to vector<1x64xf32>
    %293 = vector.broadcast %292 : vector<1x64xf32> to vector<8x64xf32>
    %294 = arith.addf %290, %293 : vector<8x64xf32>
    %cst_126 = arith.constant 0.000000e+00 : f32
    %295 = vector.broadcast %cst_126 : f32 to vector<8x64xf32>
    %296 = arith.maximumf %294, %295 : vector<8x64xf32>
    %297 = arith.truncf %296 : vector<8x64xf32> to vector<8x64xbf16>
    %c1_127 = arith.constant 1 : index
    %c0_128 = arith.constant 0 : index
    %c0_129 = arith.constant 0 : index
    %298 = vector.load %arg11[%c1_127, %c0_128, %c0_129] : memref<2x64x32xbf16, #tpu.memory_space<vmem>>, vector<1x64x32xbf16>
    %299 = vector.shape_cast %298 : vector<1x64x32xbf16> to vector<64x32xbf16>
    %cst_130 = arith.constant dense<0.000000e+00> : vector<8x32xf32>
    %300 = tpu.matmul %297, %299, %cst_130 {dimension_numbers = #tpu.dot_dimension_numbers<[1], [0], [0], [1], [0, 0, 1, 1], [], []>} : vector<8x64xbf16>, vector<64x32xbf16>, vector<8x32xf32> -> vector<8x32xf32>
    %c1_131 = arith.constant 1 : index
    %c0_132 = arith.constant 0 : index
    %c0_133 = arith.constant 0 : index
    %301 = vector.load %arg12[%c1_131, %c0_132, %c0_133] : memref<2x1x32xf32, #tpu.memory_space<vmem>>, vector<1x1x32xf32>
    %302 = vector.shape_cast %301 : vector<1x1x32xf32> to vector<1x32xf32>
    %303 = vector.broadcast %302 : vector<1x32xf32> to vector<8x32xf32>
    %304 = arith.addf %300, %303 : vector<8x32xf32>
    %305 = arith.addf %286, %304 : vector<8x32xf32>
    %c1_134 = arith.constant 1 : index
    %c0_135 = arith.constant 0 : index
    %c0_136 = arith.constant 0 : index
    %306 = vector.load %arg13[%c1_134, %c0_135, %c0_136] : memref<2x1x32xf32, #tpu.memory_space<vmem>>, vector<1x1x32xf32>
    %307 = vector.shape_cast %306 : vector<1x1x32xf32> to vector<1x32xf32>
    %c1_137 = arith.constant 1 : index
    %c0_138 = arith.constant 0 : index
    %c0_139 = arith.constant 0 : index
    %308 = vector.load %arg14[%c1_137, %c0_138, %c0_139] : memref<2x1x32xf32, #tpu.memory_space<vmem>>, vector<1x1x32xf32>
    %309 = vector.shape_cast %308 : vector<1x1x32xf32> to vector<1x32xf32>
    %cst_140 = arith.constant dense<0.000000e+00> : vector<8xf32>
    %310 = vector.multi_reduction <add>, %305, %cst_140 [1] : vector<8x32xf32> to vector<8xf32>
    %311 = vector.shape_cast %310 : vector<8xf32> to vector<8x1xf32>
    %cst_141 = arith.constant 3.200000e+01 : f32
    %312 = vector.broadcast %cst_141 : f32 to vector<8x1xf32>
    %313 = arith.divf %311, %312 : vector<8x1xf32>
    %314 = vector.broadcast %313 : vector<8x1xf32> to vector<8x32xf32>
    %315 = arith.subf %305, %314 : vector<8x32xf32>
    %316 = arith.mulf %315, %315 : vector<8x32xf32>
    %cst_142 = arith.constant dense<0.000000e+00> : vector<8xf32>
    %317 = vector.multi_reduction <add>, %316, %cst_142 [1] : vector<8x32xf32> to vector<8xf32>
    %318 = vector.shape_cast %317 : vector<8xf32> to vector<8x1xf32>
    %cst_143 = arith.constant 3.200000e+01 : f32
    %319 = vector.broadcast %cst_143 : f32 to vector<8x1xf32>
    %320 = arith.divf %318, %319 : vector<8x1xf32>
    %321 = vector.broadcast %313 : vector<8x1xf32> to vector<8x32xf32>
    %322 = arith.subf %305, %321 : vector<8x32xf32>
    %cst_144 = arith.constant 9.99999974E-6 : f32
    %323 = vector.broadcast %cst_144 : f32 to vector<8x1xf32>
    %324 = arith.addf %320, %323 : vector<8x1xf32>
    %325 = math.rsqrt %324 : vector<8x1xf32>
    %326 = vector.broadcast %325 : vector<8x1xf32> to vector<8x32xf32>
    %327 = arith.mulf %322, %326 : vector<8x32xf32>
    %328 = vector.broadcast %307 : vector<1x32xf32> to vector<8x32xf32>
    %329 = arith.mulf %327, %328 : vector<8x32xf32>
    %330 = vector.broadcast %309 : vector<1x32xf32> to vector<8x32xf32>
    %331 = arith.addf %329, %330 : vector<8x32xf32>
    %c0_145 = arith.constant 0 : index
    %c0_146 = arith.constant 0 : index
    %332 = vector.load %arg15[%c0_145, %c0_146] : memref<1x32xf32, #tpu.memory_space<vmem>>, vector<1x32xf32>
    %c0_147 = arith.constant 0 : index
    %c0_148 = arith.constant 0 : index
    %333 = vector.load %arg16[%c0_147, %c0_148] : memref<1x32xf32, #tpu.memory_space<vmem>>, vector<1x32xf32>
    %cst_149 = arith.constant dense<0.000000e+00> : vector<8xf32>
    %334 = vector.multi_reduction <add>, %331, %cst_149 [1] : vector<8x32xf32> to vector<8xf32>
    %335 = vector.shape_cast %334 : vector<8xf32> to vector<8x1xf32>
    %cst_150 = arith.constant 3.200000e+01 : f32
    %336 = vector.broadcast %cst_150 : f32 to vector<8x1xf32>
    %337 = arith.divf %335, %336 : vector<8x1xf32>
    %338 = vector.broadcast %337 : vector<8x1xf32> to vector<8x32xf32>
    %339 = arith.subf %331, %338 : vector<8x32xf32>
    %340 = arith.mulf %339, %339 : vector<8x32xf32>
    %cst_151 = arith.constant dense<0.000000e+00> : vector<8xf32>
    %341 = vector.multi_reduction <add>, %340, %cst_151 [1] : vector<8x32xf32> to vector<8xf32>
    %342 = vector.shape_cast %341 : vector<8xf32> to vector<8x1xf32>
    %cst_152 = arith.constant 3.200000e+01 : f32
    %343 = vector.broadcast %cst_152 : f32 to vector<8x1xf32>
    %344 = arith.divf %342, %343 : vector<8x1xf32>
    %345 = vector.broadcast %337 : vector<8x1xf32> to vector<8x32xf32>
    %346 = arith.subf %331, %345 : vector<8x32xf32>
    %cst_153 = arith.constant 9.99999974E-6 : f32
    %347 = vector.broadcast %cst_153 : f32 to vector<8x1xf32>
    %348 = arith.addf %344, %347 : vector<8x1xf32>
    %349 = math.rsqrt %348 : vector<8x1xf32>
    %350 = vector.broadcast %349 : vector<8x1xf32> to vector<8x32xf32>
    %351 = arith.mulf %346, %350 : vector<8x32xf32>
    %352 = vector.broadcast %332 : vector<1x32xf32> to vector<8x32xf32>
    %353 = arith.mulf %351, %352 : vector<8x32xf32>
    %354 = vector.broadcast %333 : vector<1x32xf32> to vector<8x32xf32>
    %355 = arith.addf %353, %354 : vector<8x32xf32>
    %c0_154 = arith.constant 0 : index
    %c0_155 = arith.constant 0 : index
    %c0_156 = arith.constant 0 : index
    %356 = vector.load %arg17[%c0_154, %c0_155, %c0_156] : memref<1x8x32xf32, #tpu.memory_space<vmem>>, vector<1x8x32xf32>
    %357 = vector.shape_cast %356 : vector<1x8x32xf32> to vector<8x32xf32>
    %358 = vector.shape_cast %355 : vector<8x32xf32> to vector<1x8x32xf32>
    tpu.vector_store %arg17[%c0_154, %c0_155, %c0_156], %358 {strides = array<i32>} : memref<1x8x32xf32, #tpu.memory_space<vmem>>, vector<1x8x32xf32>,
    return
  }
  func.func @transform_0(%arg0: i32) -> (i32, i32, i32) {
    %c0_i32 = arith.constant 0 : i32
    %c0_i32_0 = arith.constant 0 : i32
    %c0_i32_1 = arith.constant 0 : i32
    return %arg0, %c0_i32, %c0_i32_0 : i32, i32, i32
  }
  func.func @transform_1(%arg0: i32) -> (i32, i32, i32) {
    %c0_i32 = arith.constant 0 : i32
    %c0_i32_0 = arith.constant 0 : i32
    %c0_i32_1 = arith.constant 0 : i32
    return %arg0, %c0_i32, %c0_i32_0 : i32, i32, i32
  }
  func.func @transform_2(%arg0: i32) -> (i32, i32, i32) {
    %c0_i32 = arith.constant 0 : i32
    %c0_i32_0 = arith.constant 0 : i32
    %c0_i32_1 = arith.constant 0 : i32
    %c0_i32_2 = arith.constant 0 : i32
    return %c0_i32, %c0_i32_0, %c0_i32_1 : i32, i32, i32
  }
  func.func @transform_3(%arg0: i32) -> (i32, i32, i32) {
    %c0_i32 = arith.constant 0 : i32
    %c0_i32_0 = arith.constant 0 : i32
    %c0_i32_1 = arith.constant 0 : i32
    %c0_i32_2 = arith.constant 0 : i32
    return %c0_i32, %c0_i32_0, %c0_i32_1 : i32, i32, i32
  }
  func.func @transform_4(%arg0: i32) -> (i32, i32, i32) {
    %c0_i32 = arith.constant 0 : i32
    %c0_i32_0 = arith.constant 0 : i32
    %c0_i32_1 = arith.constant 0 : i32
    %c0_i32_2 = arith.constant 0 : i32
    return %c0_i32, %c0_i32_0, %c0_i32_1 : i32, i32, i32
  }
  func.func @transform_5(%arg0: i32) -> (i32, i32, i32) {
    %c0_i32 = arith.constant 0 : i32
    %c0_i32_0 = arith.constant 0 : i32
    %c0_i32_1 = arith.constant 0 : i32
    %c0_i32_2 = arith.constant 0 : i32
    return %c0_i32, %c0_i32_0, %c0_i32_1 : i32, i32, i32
  }
  func.func @transform_6(%arg0: i32) -> (i32, i32, i32) {
    %c0_i32 = arith.constant 0 : i32
    %c0_i32_0 = arith.constant 0 : i32
    %c0_i32_1 = arith.constant 0 : i32
    %c0_i32_2 = arith.constant 0 : i32
    return %c0_i32, %c0_i32_0, %c0_i32_1 : i32, i32, i32
  }
  func.func @transform_7(%arg0: i32) -> (i32, i32, i32) {
    %c0_i32 = arith.constant 0 : i32
    %c0_i32_0 = arith.constant 0 : i32
    %c0_i32_1 = arith.constant 0 : i32
    %c0_i32_2 = arith.constant 0 : i32
    return %c0_i32, %c0_i32_0, %c0_i32_1 : i32, i32, i32
  }
  func.func @transform_8(%arg0: i32) -> (i32, i32, i32) {
    %c0_i32 = arith.constant 0 : i32
    %c0_i32_0 = arith.constant 0 : i32
    %c0_i32_1 = arith.constant 0 : i32
    %c0_i32_2 = arith.constant 0 : i32
    return %c0_i32, %c0_i32_0, %c0_i32_1 : i32, i32, i32
  }
  func.func @transform_9(%arg0: i32) -> (i32, i32, i32) {
    %c0_i32 = arith.constant 0 : i32
    %c0_i32_0 = arith.constant 0 : i32
    %c0_i32_1 = arith.constant 0 : i32
    %c0_i32_2 = arith.constant 0 : i32
    return %c0_i32, %c0_i32_0, %c0_i32_1 : i32, i32, i32
  }
  func.func @transform_10(%arg0: i32) -> (i32, i32, i32) {
    %c0_i32 = arith.constant 0 : i32
    %c0_i32_0 = arith.constant 0 : i32
    %c0_i32_1 = arith.constant 0 : i32
    %c0_i32_2 = arith.constant 0 : i32
    return %c0_i32, %c0_i32_0, %c0_i32_1 : i32, i32, i32
  }
  func.func @transform_11(%arg0: i32) -> (i32, i32, i32) {
    %c0_i32 = arith.constant 0 : i32
    %c0_i32_0 = arith.constant 0 : i32
    %c0_i32_1 = arith.constant 0 : i32
    %c0_i32_2 = arith.constant 0 : i32
    return %c0_i32, %c0_i32_0, %c0_i32_1 : i32, i32, i32
  }
  func.func @transform_12(%arg0: i32) -> (i32, i32, i32) {
    %c0_i32 = arith.constant 0 : i32
    %c0_i32_0 = arith.constant 0 : i32
    %c0_i32_1 = arith.constant 0 : i32
    %c0_i32_2 = arith.constant 0 : i32
    return %c0_i32, %c0_i32_0, %c0_i32_1 : i32, i32, i32
  }
  func.func @transform_13(%arg0: i32) -> (i32, i32, i32) {
    %c0_i32 = arith.constant 0 : i32
    %c0_i32_0 = arith.constant 0 : i32
    %c0_i32_1 = arith.constant 0 : i32
    %c0_i32_2 = arith.constant 0 : i32
    return %c0_i32, %c0_i32_0, %c0_i32_1 : i32, i32, i32
  }
  func.func @transform_14(%arg0: i32) -> (i32, i32) {
    %c0_i32 = arith.constant 0 : i32
    %c0_i32_0 = arith.constant 0 : i32
    %c0_i32_1 = arith.constant 0 : i32
    return %c0_i32, %c0_i32_0 : i32, i32
  }
  func.func @transform_15(%arg0: i32) -> (i32, i32) {
    %c0_i32 = arith.constant 0 : i32
    %c0_i32_0 = arith.constant 0 : i32
    %c0_i32_1 = arith.constant 0 : i32
    return %c0_i32, %c0_i32_0 : i32, i32
  }
  func.func @transform_16(%arg0: i32) -> (i32, i32, i32) {
    %c0_i32 = arith.constant 0 : i32
    %c0_i32_0 = arith.constant 0 : i32
    %c0_i32_1 = arith.constant 0 : i32
    return %arg0, %c0_i32, %c0_i32_0 : i32, i32, i32
  }
}

module attributes {stable_mosaic.version = 11 : i64} {
  func.func @_decoder_kernel(%arg0: i32, %arg1: memref<1x8x32xf32, #tpu.memory_space<vmem>>, %arg2: memref<1x8x32xf32, #tpu.memory_space<vmem>>, %arg3: memref<2x32x96xbf16, #tpu.memory_space<vmem>>, %arg4: memref<2x1x96xf32, #tpu.memory_space<vmem>>, %arg5: memref<2x32x32xbf16, #tpu.memory_space<vmem>>, %arg6: memref<2x1x32xf32, #tpu.memory_space<vmem>>, %arg7: memref<2x1x32xf32, #tpu.memory_space<vmem>>, %arg8: memref<2x1x32xf32, #tpu.memory_space<vmem>>, %arg9: memref<2x32x32xbf16, #tpu.memory_space<vmem>>, %arg10: memref<2x1x32xf32, #tpu.memory_space<vmem>>, %arg11: memref<2x32x64xbf16, #tpu.memory_space<vmem>>, %arg12: memref<2x1x64xf32, #tpu.memory_space<vmem>>, %arg13: memref<2x32x32xbf16, #tpu.memory_space<vmem>>, %arg14: memref<2x1x32xf32, #tpu.memory_space<vmem>>, %arg15: memref<2x1x32xf32, #tpu.memory_space<vmem>>, %arg16: memref<2x1x32xf32, #tpu.memory_space<vmem>>, %arg17: memref<2x32x64xbf16, #tpu.memory_space<vmem>>, %arg18: memref<2x1x64xf32, #tpu.memory_space<vmem>>, %arg19: memref<2x64x32xbf16, #tpu.memory_space<vmem>>, %arg20: memref<2x1x32xf32, #tpu.memory_space<vmem>>, %arg21: memref<2x1x32xf32, #tpu.memory_space<vmem>>, %arg22: memref<2x1x32xf32, #tpu.memory_space<vmem>>, %arg23: memref<1x32xf32, #tpu.memory_space<vmem>>, %arg24: memref<1x32xf32, #tpu.memory_space<vmem>>, %arg25: memref<32x128xbf16, #tpu.memory_space<vmem>>, %arg26: memref<1x128xf32, #tpu.memory_space<vmem>>, %arg27: memref<1x8x128xf32, #tpu.memory_space<vmem>>) attributes {dimension_semantics = [#tpu.dimension_semantics<parallel>], iteration_bounds = array<i64: 2>, scalar_prefetch = 0 : i64, scratch_operands = 0 : i64, tpu.core_type = #tpu.core_type<tc>, window_params = [{transform_indices = @transform_0, window_bounds = array<i64: 1, 8, 32>}, {transform_indices = @transform_1, window_bounds = array<i64: 1, 8, 32>}, {pipeline_mode = #tpu.pipeline_mode<synchronous>, transform_indices = @transform_2, window_bounds = array<i64: 2, 32, 96>}, {pipeline_mode = #tpu.pipeline_mode<synchronous>, transform_indices = @transform_3, window_bounds = array<i64: 2, 1, 96>}, {pipeline_mode = #tpu.pipeline_mode<synchronous>, transform_indices = @transform_4, window_bounds = array<i64: 2, 32, 32>}, {pipeline_mode = #tpu.pipeline_mode<synchronous>, transform_indices = @transform_5, window_bounds = array<i64: 2, 1, 32>}, {pipeline_mode = #tpu.pipeline_mode<synchronous>, transform_indices = @transform_6, window_bounds = array<i64: 2, 1, 32>}, {pipeline_mode = #tpu.pipeline_mode<synchronous>, transform_indices = @transform_7, window_bounds = array<i64: 2, 1, 32>}, {pipeline_mode = #tpu.pipeline_mode<synchronous>, transform_indices = @transform_8, window_bounds = array<i64: 2, 32, 32>}, {pipeline_mode = #tpu.pipeline_mode<synchronous>, transform_indices = @transform_9, window_bounds = array<i64: 2, 1, 32>}, {pipeline_mode = #tpu.pipeline_mode<synchronous>, transform_indices = @transform_10, window_bounds = array<i64: 2, 32, 64>}, {pipeline_mode = #tpu.pipeline_mode<synchronous>, transform_indices = @transform_11, window_bounds = array<i64: 2, 1, 64>}, {pipeline_mode = #tpu.pipeline_mode<synchronous>, transform_indices = @transform_12, window_bounds = array<i64: 2, 32, 32>}, {pipeline_mode = #tpu.pipeline_mode<synchronous>, transform_indices = @transform_13, window_bounds = array<i64: 2, 1, 32>}, {pipeline_mode = #tpu.pipeline_mode<synchronous>, transform_indices = @transform_14, window_bounds = array<i64: 2, 1, 32>}, {pipeline_mode = #tpu.pipeline_mode<synchronous>, transform_indices = @transform_15, window_bounds = array<i64: 2, 1, 32>}, {pipeline_mode = #tpu.pipeline_mode<synchronous>, transform_indices = @transform_16, window_bounds = array<i64: 2, 32, 64>}, {pipeline_mode = #tpu.pipeline_mode<synchronous>, transform_indices = @transform_17, window_bounds = array<i64: 2, 1, 64>}, {pipeline_mode = #tpu.pipeline_mode<synchronous>, transform_indices = @transform_18, window_bounds = array<i64: 2, 64, 32>}, {pipeline_mode = #tpu.pipeline_mode<synchronous>, transform_indices = @transform_19, window_bounds = array<i64: 2, 1, 32>}, {pipeline_mode = #tpu.pipeline_mode<synchronous>, transform_indices = @transform_20, window_bounds = array<i64: 2, 1, 32>}, {pipeline_mode = #tpu.pipeline_mode<synchronous>, transform_indices = @transform_21, window_bounds = array<i64: 2, 1, 32>}, {pipeline_mode = #tpu.pipeline_mode<synchronous>, transform_indices = @transform_22, window_bounds = array<i64: 1, 32>}, {pipeline_mode = #tpu.pipeline_mode<synchronous>, transform_indices = @transform_23, window_bounds = array<i64: 1, 32>}, {pipeline_mode = #tpu.pipeline_mode<synchronous>, transform_indices = @transform_24, window_bounds = array<i64: 32, 128>}, {pipeline_mode = #tpu.pipeline_mode<synchronous>, transform_indices = @transform_25, window_bounds = array<i64: 1, 128>}, {transform_indices = @transform_26, window_bounds = array<i64: 1, 8, 128>}]} {
    %c0 = arith.constant 0 : index
    %c0_0 = arith.constant 0 : index
    %c0_1 = arith.constant 0 : index
    %0 = vector.load %arg1[%c0, %c0_0, %c0_1] : memref<1x8x32xf32, #tpu.memory_space<vmem>>, vector<1x8x32xf32>
    %1 = vector.shape_cast %0 : vector<1x8x32xf32> to vector<8x32xf32>
    %c0_2 = arith.constant 0 : index
    %c0_3 = arith.constant 0 : index
    %c0_4 = arith.constant 0 : index
    %2 = vector.load %arg2[%c0_2, %c0_3, %c0_4] : memref<1x8x32xf32, #tpu.memory_space<vmem>>, vector<1x8x32xf32>
    %3 = vector.shape_cast %2 : vector<1x8x32xf32> to vector<8x32xf32>
    %4 = tpu.iota {dimensions = array<i32: 0>} : vector<8x8xi32>
    %5 = tpu.iota {dimensions = array<i32: 1>} : vector<8x8xi32>
    %6 = arith.cmpi sgt, %5, %4 : vector<8x8xi32>
    %cst = arith.constant -1.000000e+30 : f32
    %cst_5 = arith.constant 0.000000e+00 : f32
    %7 = vector.broadcast %cst : f32 to vector<8x8xf32>
    %8 = vector.broadcast %cst_5 : f32 to vector<8x8xf32>
    %9 = arith.select %6, %7, %8 : vector<8x8xi1>, vector<8x8xf32>
    %10 = arith.truncf %1 : vector<8x32xf32> to vector<8x32xbf16>
    %c0_6 = arith.constant 0 : index
    %c0_7 = arith.constant 0 : index
    %c0_8 = arith.constant 0 : index
    %11 = vector.load %arg3[%c0_6, %c0_7, %c0_8] : memref<2x32x96xbf16, #tpu.memory_space<vmem>>, vector<1x32x96xbf16>
    %12 = vector.shape_cast %11 : vector<1x32x96xbf16> to vector<32x96xbf16>
    %cst_9 = arith.constant dense<0.000000e+00> : vector<8x96xf32>
    %13 = tpu.matmul %10, %12, %cst_9 {dimension_numbers = #tpu.dot_dimension_numbers<[1], [0], [0], [1], [0, 0, 1, 1], [], []>} : vector<8x32xbf16>, vector<32x96xbf16>, vector<8x96xf32> -> vector<8x96xf32>
    %c0_10 = arith.constant 0 : index
    %c0_11 = arith.constant 0 : index
    %c0_12 = arith.constant 0 : index
    %14 = vector.load %arg4[%c0_10, %c0_11, %c0_12] : memref<2x1x96xf32, #tpu.memory_space<vmem>>, vector<1x1x96xf32>
    %15 = vector.shape_cast %14 : vector<1x1x96xf32> to vector<1x96xf32>
    %16 = vector.broadcast %15 : vector<1x96xf32> to vector<8x96xf32>
    %17 = arith.addf %13, %16 : vector<8x96xf32>
    %18 = vector.extract_strided_slice %17 {offsets = [0, 0], sizes = [8, 32], strides = [1, 1]} : vector<8x96xf32> to vector<8x32xf32>
    %19 = vector.extract_strided_slice %17 {offsets = [0, 32], sizes = [8, 32], strides = [1, 1]} : vector<8x96xf32> to vector<8x32xf32>
    %20 = vector.extract_strided_slice %17 {offsets = [0, 64], sizes = [8, 32], strides = [1, 1]} : vector<8x96xf32> to vector<8x32xf32>
    %21 = vector.extract_strided_slice %18 {offsets = [0, 0], sizes = [8, 8], strides = [1, 1]} : vector<8x32xf32> to vector<8x8xf32>
    %22 = vector.extract_strided_slice %19 {offsets = [0, 0], sizes = [8, 8], strides = [1, 1]} : vector<8x32xf32> to vector<8x8xf32>
    %23 = vector.extract_strided_slice %20 {offsets = [0, 0], sizes = [8, 8], strides = [1, 1]} : vector<8x32xf32> to vector<8x8xf32>
    %cst_13 = arith.constant dense<0.000000e+00> : vector<8x8xf32>
    %24 = tpu.matmul %21, %22, %cst_13 {dimension_numbers = #tpu.dot_dimension_numbers<[1], [1], [0], [0], [0, 0, 1, 0], [], []>} : vector<8x8xf32>, vector<8x8xf32>, vector<8x8xf32> -> vector<8x8xf32>
    %cst_14 = arith.constant 0.353553385 : f32
    %25 = vector.broadcast %cst_14 : f32 to vector<8x8xf32>
    %26 = arith.mulf %24, %25 : vector<8x8xf32>
    %27 = arith.addf %26, %9 : vector<8x8xf32>
    %cst_15 = arith.constant dense<0xFF800000> : vector<8xf32>
    %28 = vector.multi_reduction <maximumf>, %27, %cst_15 [1] : vector<8x8xf32> to vector<8xf32>
    %29 = vector.shape_cast %28 : vector<8xf32> to vector<8x1xf32>
    %30 = vector.broadcast %29 : vector<8x1xf32> to vector<8x8xf32>
    %31 = arith.subf %27, %30 : vector<8x8xf32>
    %32 = math.exp %31 : vector<8x8xf32>
    %cst_16 = arith.constant dense<0.000000e+00> : vector<8xf32>
    %33 = vector.multi_reduction <add>, %32, %cst_16 [1] : vector<8x8xf32> to vector<8xf32>
    %34 = vector.shape_cast %33 : vector<8xf32> to vector<8x1xf32>
    %35 = vector.broadcast %34 : vector<8x1xf32> to vector<8x8xf32>
    %36 = arith.divf %32, %35 : vector<8x8xf32>
    %cst_17 = arith.constant dense<0.000000e+00> : vector<8x8xf32>
    %37 = tpu.matmul %36, %23, %cst_17 {dimension_numbers = #tpu.dot_dimension_numbers<[1], [0], [0], [1], [0, 0, 1, 1], [], []>} : vector<8x8xf32>, vector<8x8xf32>, vector<8x8xf32> -> vector<8x8xf32>
    %38 = vector.extract_strided_slice %18 {offsets = [0, 8], sizes = [8, 8], strides = [1, 1]} : vector<8x32xf32> to vector<8x8xf32>
    %39 = vector.extract_strided_slice %19 {offsets = [0, 8], sizes = [8, 8], strides = [1, 1]} : vector<8x32xf32> to vector<8x8xf32>
    %40 = vector.extract_strided_slice %20 {offsets = [0, 8], sizes = [8, 8], strides = [1, 1]} : vector<8x32xf32> to vector<8x8xf32>
    %cst_18 = arith.constant dense<0.000000e+00> : vector<8x8xf32>
    %41 = tpu.matmul %38, %39, %cst_18 {dimension_numbers = #tpu.dot_dimension_numbers<[1], [1], [0], [0], [0, 0, 1, 0], [], []>} : vector<8x8xf32>, vector<8x8xf32>, vector<8x8xf32> -> vector<8x8xf32>
    %cst_19 = arith.constant 0.353553385 : f32
    %42 = vector.broadcast %cst_19 : f32 to vector<8x8xf32>
    %43 = arith.mulf %41, %42 : vector<8x8xf32>
    %44 = arith.addf %43, %9 : vector<8x8xf32>
    %cst_20 = arith.constant dense<0xFF800000> : vector<8xf32>
    %45 = vector.multi_reduction <maximumf>, %44, %cst_20 [1] : vector<8x8xf32> to vector<8xf32>
    %46 = vector.shape_cast %45 : vector<8xf32> to vector<8x1xf32>
    %47 = vector.broadcast %46 : vector<8x1xf32> to vector<8x8xf32>
    %48 = arith.subf %44, %47 : vector<8x8xf32>
    %49 = math.exp %48 : vector<8x8xf32>
    %cst_21 = arith.constant dense<0.000000e+00> : vector<8xf32>
    %50 = vector.multi_reduction <add>, %49, %cst_21 [1] : vector<8x8xf32> to vector<8xf32>
    %51 = vector.shape_cast %50 : vector<8xf32> to vector<8x1xf32>
    %52 = vector.broadcast %51 : vector<8x1xf32> to vector<8x8xf32>
    %53 = arith.divf %49, %52 : vector<8x8xf32>
    %cst_22 = arith.constant dense<0.000000e+00> : vector<8x8xf32>
    %54 = tpu.matmul %53, %40, %cst_22 {dimension_numbers = #tpu.dot_dimension_numbers<[1], [0], [0], [1], [0, 0, 1, 1], [], []>} : vector<8x8xf32>, vector<8x8xf32>, vector<8x8xf32> -> vector<8x8xf32>
    %55 = vector.extract_strided_slice %18 {offsets = [0, 16], sizes = [8, 8], strides = [1, 1]} : vector<8x32xf32> to vector<8x8xf32>
    %56 = vector.extract_strided_slice %19 {offsets = [0, 16], sizes = [8, 8], strides = [1, 1]} : vector<8x32xf32> to vector<8x8xf32>
    %57 = vector.extract_strided_slice %20 {offsets = [0, 16], sizes = [8, 8], strides = [1, 1]} : vector<8x32xf32> to vector<8x8xf32>
    %cst_23 = arith.constant dense<0.000000e+00> : vector<8x8xf32>
    %58 = tpu.matmul %55, %56, %cst_23 {dimension_numbers = #tpu.dot_dimension_numbers<[1], [1], [0], [0], [0, 0, 1, 0], [], []>} : vector<8x8xf32>, vector<8x8xf32>, vector<8x8xf32> -> vector<8x8xf32>
    %cst_24 = arith.constant 0.353553385 : f32
    %59 = vector.broadcast %cst_24 : f32 to vector<8x8xf32>
    %60 = arith.mulf %58, %59 : vector<8x8xf32>
    %61 = arith.addf %60, %9 : vector<8x8xf32>
    %cst_25 = arith.constant dense<0xFF800000> : vector<8xf32>
    %62 = vector.multi_reduction <maximumf>, %61, %cst_25 [1] : vector<8x8xf32> to vector<8xf32>
    %63 = vector.shape_cast %62 : vector<8xf32> to vector<8x1xf32>
    %64 = vector.broadcast %63 : vector<8x1xf32> to vector<8x8xf32>
    %65 = arith.subf %61, %64 : vector<8x8xf32>
    %66 = math.exp %65 : vector<8x8xf32>
    %cst_26 = arith.constant dense<0.000000e+00> : vector<8xf32>
    %67 = vector.multi_reduction <add>, %66, %cst_26 [1] : vector<8x8xf32> to vector<8xf32>
    %68 = vector.shape_cast %67 : vector<8xf32> to vector<8x1xf32>
    %69 = vector.broadcast %68 : vector<8x1xf32> to vector<8x8xf32>
    %70 = arith.divf %66, %69 : vector<8x8xf32>
    %cst_27 = arith.constant dense<0.000000e+00> : vector<8x8xf32>
    %71 = tpu.matmul %70, %57, %cst_27 {dimension_numbers = #tpu.dot_dimension_numbers<[1], [0], [0], [1], [0, 0, 1, 1], [], []>} : vector<8x8xf32>, vector<8x8xf32>, vector<8x8xf32> -> vector<8x8xf32>
    %72 = vector.extract_strided_slice %18 {offsets = [0, 24], sizes = [8, 8], strides = [1, 1]} : vector<8x32xf32> to vector<8x8xf32>
    %73 = vector.extract_strided_slice %19 {offsets = [0, 24], sizes = [8, 8], strides = [1, 1]} : vector<8x32xf32> to vector<8x8xf32>
    %74 = vector.extract_strided_slice %20 {offsets = [0, 24], sizes = [8, 8], strides = [1, 1]} : vector<8x32xf32> to vector<8x8xf32>
    %cst_28 = arith.constant dense<0.000000e+00> : vector<8x8xf32>
    %75 = tpu.matmul %72, %73, %cst_28 {dimension_numbers = #tpu.dot_dimension_numbers<[1], [1], [0], [0], [0, 0, 1, 0], [], []>} : vector<8x8xf32>, vector<8x8xf32>, vector<8x8xf32> -> vector<8x8xf32>
    %cst_29 = arith.constant 0.353553385 : f32
    %76 = vector.broadcast %cst_29 : f32 to vector<8x8xf32>
    %77 = arith.mulf %75, %76 : vector<8x8xf32>
    %78 = arith.addf %77, %9 : vector<8x8xf32>
    %cst_30 = arith.constant dense<0xFF800000> : vector<8xf32>
    %79 = vector.multi_reduction <maximumf>, %78, %cst_30 [1] : vector<8x8xf32> to vector<8xf32>
    %80 = vector.shape_cast %79 : vector<8xf32> to vector<8x1xf32>
    %81 = vector.broadcast %80 : vector<8x1xf32> to vector<8x8xf32>
    %82 = arith.subf %78, %81 : vector<8x8xf32>
    %83 = math.exp %82 : vector<8x8xf32>
    %cst_31 = arith.constant dense<0.000000e+00> : vector<8xf32>
    %84 = vector.multi_reduction <add>, %83, %cst_31 [1] : vector<8x8xf32> to vector<8xf32>
    %85 = vector.shape_cast %84 : vector<8xf32> to vector<8x1xf32>
    %86 = vector.broadcast %85 : vector<8x1xf32> to vector<8x8xf32>
    %87 = arith.divf %83, %86 : vector<8x8xf32>
    %cst_32 = arith.constant dense<0.000000e+00> : vector<8x8xf32>
    %88 = tpu.matmul %87, %74, %cst_32 {dimension_numbers = #tpu.dot_dimension_numbers<[1], [0], [0], [1], [0, 0, 1, 1], [], []>} : vector<8x8xf32>, vector<8x8xf32>, vector<8x8xf32> -> vector<8x8xf32>
    %89 = tpu.concatenate %37, %54, %71, %88 in 1 : vector<8x8xf32>, vector<8x8xf32>, vector<8x8xf32>, vector<8x8xf32> -> vector<8x32xf32>
    %90 = arith.truncf %89 : vector<8x32xf32> to vector<8x32xbf16>
    %c0_33 = arith.constant 0 : index
    %c0_34 = arith.constant 0 : index
    %c0_35 = arith.constant 0 : index
    %91 = vector.load %arg5[%c0_33, %c0_34, %c0_35] : memref<2x32x32xbf16, #tpu.memory_space<vmem>>, vector<1x32x32xbf16>
    %92 = vector.shape_cast %91 : vector<1x32x32xbf16> to vector<32x32xbf16>
    %cst_36 = arith.constant dense<0.000000e+00> : vector<8x32xf32>
    %93 = tpu.matmul %90, %92, %cst_36 {dimension_numbers = #tpu.dot_dimension_numbers<[1], [0], [0], [1], [0, 0, 1, 1], [], []>} : vector<8x32xbf16>, vector<32x32xbf16>, vector<8x32xf32> -> vector<8x32xf32>
    %c0_37 = arith.constant 0 : index
    %c0_38 = arith.constant 0 : index
    %c0_39 = arith.constant 0 : index
    %94 = vector.load %arg6[%c0_37, %c0_38, %c0_39] : memref<2x1x32xf32, #tpu.memory_space<vmem>>, vector<1x1x32xf32>
    %95 = vector.shape_cast %94 : vector<1x1x32xf32> to vector<1x32xf32>
    %96 = vector.broadcast %95 : vector<1x32xf32> to vector<8x32xf32>
    %97 = arith.addf %93, %96 : vector<8x32xf32>
    %98 = arith.addf %1, %97 : vector<8x32xf32>
    %c0_40 = arith.constant 0 : index
    %c0_41 = arith.constant 0 : index
    %c0_42 = arith.constant 0 : index
    %99 = vector.load %arg7[%c0_40, %c0_41, %c0_42] : memref<2x1x32xf32, #tpu.memory_space<vmem>>, vector<1x1x32xf32>
    %100 = vector.shape_cast %99 : vector<1x1x32xf32> to vector<1x32xf32>
    %c0_43 = arith.constant 0 : index
    %c0_44 = arith.constant 0 : index
    %c0_45 = arith.constant 0 : index
    %101 = vector.load %arg8[%c0_43, %c0_44, %c0_45] : memref<2x1x32xf32, #tpu.memory_space<vmem>>, vector<1x1x32xf32>
    %102 = vector.shape_cast %101 : vector<1x1x32xf32> to vector<1x32xf32>
    %cst_46 = arith.constant dense<0.000000e+00> : vector<8xf32>
    %103 = vector.multi_reduction <add>, %98, %cst_46 [1] : vector<8x32xf32> to vector<8xf32>
    %104 = vector.shape_cast %103 : vector<8xf32> to vector<8x1xf32>
    %cst_47 = arith.constant 3.200000e+01 : f32
    %105 = vector.broadcast %cst_47 : f32 to vector<8x1xf32>
    %106 = arith.divf %104, %105 : vector<8x1xf32>
    %107 = vector.broadcast %106 : vector<8x1xf32> to vector<8x32xf32>
    %108 = arith.subf %98, %107 : vector<8x32xf32>
    %109 = arith.mulf %108, %108 : vector<8x32xf32>
    %cst_48 = arith.constant dense<0.000000e+00> : vector<8xf32>
    %110 = vector.multi_reduction <add>, %109, %cst_48 [1] : vector<8x32xf32> to vector<8xf32>
    %111 = vector.shape_cast %110 : vector<8xf32> to vector<8x1xf32>
    %cst_49 = arith.constant 3.200000e+01 : f32
    %112 = vector.broadcast %cst_49 : f32 to vector<8x1xf32>
    %113 = arith.divf %111, %112 : vector<8x1xf32>
    %114 = vector.broadcast %106 : vector<8x1xf32> to vector<8x32xf32>
    %115 = arith.subf %98, %114 : vector<8x32xf32>
    %cst_50 = arith.constant 9.99999974E-6 : f32
    %116 = vector.broadcast %cst_50 : f32 to vector<8x1xf32>
    %117 = arith.addf %113, %116 : vector<8x1xf32>
    %118 = math.rsqrt %117 : vector<8x1xf32>
    %119 = vector.broadcast %118 : vector<8x1xf32> to vector<8x32xf32>
    %120 = arith.mulf %115, %119 : vector<8x32xf32>
    %121 = vector.broadcast %100 : vector<1x32xf32> to vector<8x32xf32>
    %122 = arith.mulf %120, %121 : vector<8x32xf32>
    %123 = vector.broadcast %102 : vector<1x32xf32> to vector<8x32xf32>
    %124 = arith.addf %122, %123 : vector<8x32xf32>
    %125 = arith.truncf %124 : vector<8x32xf32> to vector<8x32xbf16>
    %c0_51 = arith.constant 0 : index
    %c0_52 = arith.constant 0 : index
    %c0_53 = arith.constant 0 : index
    %126 = vector.load %arg9[%c0_51, %c0_52, %c0_53] : memref<2x32x32xbf16, #tpu.memory_space<vmem>>, vector<1x32x32xbf16>
    %127 = vector.shape_cast %126 : vector<1x32x32xbf16> to vector<32x32xbf16>
    %cst_54 = arith.constant dense<0.000000e+00> : vector<8x32xf32>
    %128 = tpu.matmul %125, %127, %cst_54 {dimension_numbers = #tpu.dot_dimension_numbers<[1], [0], [0], [1], [0, 0, 1, 1], [], []>} : vector<8x32xbf16>, vector<32x32xbf16>, vector<8x32xf32> -> vector<8x32xf32>
    %c0_55 = arith.constant 0 : index
    %c0_56 = arith.constant 0 : index
    %c0_57 = arith.constant 0 : index
    %129 = vector.load %arg10[%c0_55, %c0_56, %c0_57] : memref<2x1x32xf32, #tpu.memory_space<vmem>>, vector<1x1x32xf32>
    %130 = vector.shape_cast %129 : vector<1x1x32xf32> to vector<1x32xf32>
    %131 = vector.broadcast %130 : vector<1x32xf32> to vector<8x32xf32>
    %132 = arith.addf %128, %131 : vector<8x32xf32>
    %133 = arith.truncf %3 : vector<8x32xf32> to vector<8x32xbf16>
    %c0_58 = arith.constant 0 : index
    %c0_59 = arith.constant 0 : index
    %c0_60 = arith.constant 0 : index
    %134 = vector.load %arg11[%c0_58, %c0_59, %c0_60] : memref<2x32x64xbf16, #tpu.memory_space<vmem>>, vector<1x32x64xbf16>
    %135 = vector.shape_cast %134 : vector<1x32x64xbf16> to vector<32x64xbf16>
    %cst_61 = arith.constant dense<0.000000e+00> : vector<8x64xf32>
    %136 = tpu.matmul %133, %135, %cst_61 {dimension_numbers = #tpu.dot_dimension_numbers<[1], [0], [0], [1], [0, 0, 1, 1], [], []>} : vector<8x32xbf16>, vector<32x64xbf16>, vector<8x64xf32> -> vector<8x64xf32>
    %c0_62 = arith.constant 0 : index
    %c0_63 = arith.constant 0 : index
    %c0_64 = arith.constant 0 : index
    %137 = vector.load %arg12[%c0_62, %c0_63, %c0_64] : memref<2x1x64xf32, #tpu.memory_space<vmem>>, vector<1x1x64xf32>
    %138 = vector.shape_cast %137 : vector<1x1x64xf32> to vector<1x64xf32>
    %139 = vector.broadcast %138 : vector<1x64xf32> to vector<8x64xf32>
    %140 = arith.addf %136, %139 : vector<8x64xf32>
    %141 = vector.extract_strided_slice %140 {offsets = [0, 0], sizes = [8, 32], strides = [1, 1]} : vector<8x64xf32> to vector<8x32xf32>
    %142 = vector.extract_strided_slice %140 {offsets = [0, 32], sizes = [8, 32], strides = [1, 1]} : vector<8x64xf32> to vector<8x32xf32>
    %143 = vector.extract_strided_slice %132 {offsets = [0, 0], sizes = [8, 8], strides = [1, 1]} : vector<8x32xf32> to vector<8x8xf32>
    %144 = vector.extract_strided_slice %141 {offsets = [0, 0], sizes = [8, 8], strides = [1, 1]} : vector<8x32xf32> to vector<8x8xf32>
    %145 = vector.extract_strided_slice %142 {offsets = [0, 0], sizes = [8, 8], strides = [1, 1]} : vector<8x32xf32> to vector<8x8xf32>
    %cst_65 = arith.constant dense<0.000000e+00> : vector<8x8xf32>
    %146 = tpu.matmul %143, %144, %cst_65 {dimension_numbers = #tpu.dot_dimension_numbers<[1], [1], [0], [0], [0, 0, 1, 0], [], []>} : vector<8x8xf32>, vector<8x8xf32>, vector<8x8xf32> -> vector<8x8xf32>
    %cst_66 = arith.constant 0.353553385 : f32
    %147 = vector.broadcast %cst_66 : f32 to vector<8x8xf32>
    %148 = arith.mulf %146, %147 : vector<8x8xf32>
    %cst_67 = arith.constant dense<0xFF800000> : vector<8xf32>
    %149 = vector.multi_reduction <maximumf>, %148, %cst_67 [1] : vector<8x8xf32> to vector<8xf32>
    %150 = vector.shape_cast %149 : vector<8xf32> to vector<8x1xf32>
    %151 = vector.broadcast %150 : vector<8x1xf32> to vector<8x8xf32>
    %152 = arith.subf %148, %151 : vector<8x8xf32>
    %153 = math.exp %152 : vector<8x8xf32>
    %cst_68 = arith.constant dense<0.000000e+00> : vector<8xf32>
    %154 = vector.multi_reduction <add>, %153, %cst_68 [1] : vector<8x8xf32> to vector<8xf32>
    %155 = vector.shape_cast %154 : vector<8xf32> to vector<8x1xf32>
    %156 = vector.broadcast %155 : vector<8x1xf32> to vector<8x8xf32>
    %157 = arith.divf %153, %156 : vector<8x8xf32>
    %cst_69 = arith.constant dense<0.000000e+00> : vector<8x8xf32>
    %158 = tpu.matmul %157, %145, %cst_69 {dimension_numbers = #tpu.dot_dimension_numbers<[1], [0], [0], [1], [0, 0, 1, 1], [], []>} : vector<8x8xf32>, vector<8x8xf32>, vector<8x8xf32> -> vector<8x8xf32>
    %159 = vector.extract_strided_slice %132 {offsets = [0, 8], sizes = [8, 8], strides = [1, 1]} : vector<8x32xf32> to vector<8x8xf32>
    %160 = vector.extract_strided_slice %141 {offsets = [0, 8], sizes = [8, 8], strides = [1, 1]} : vector<8x32xf32> to vector<8x8xf32>
    %161 = vector.extract_strided_slice %142 {offsets = [0, 8], sizes = [8, 8], strides = [1, 1]} : vector<8x32xf32> to vector<8x8xf32>
    %cst_70 = arith.constant dense<0.000000e+00> : vector<8x8xf32>
    %162 = tpu.matmul %159, %160, %cst_70 {dimension_numbers = #tpu.dot_dimension_numbers<[1], [1], [0], [0], [0, 0, 1, 0], [], []>} : vector<8x8xf32>, vector<8x8xf32>, vector<8x8xf32> -> vector<8x8xf32>
    %cst_71 = arith.constant 0.353553385 : f32
    %163 = vector.broadcast %cst_71 : f32 to vector<8x8xf32>
    %164 = arith.mulf %162, %163 : vector<8x8xf32>
    %cst_72 = arith.constant dense<0xFF800000> : vector<8xf32>
    %165 = vector.multi_reduction <maximumf>, %164, %cst_72 [1] : vector<8x8xf32> to vector<8xf32>
    %166 = vector.shape_cast %165 : vector<8xf32> to vector<8x1xf32>
    %167 = vector.broadcast %166 : vector<8x1xf32> to vector<8x8xf32>
    %168 = arith.subf %164, %167 : vector<8x8xf32>
    %169 = math.exp %168 : vector<8x8xf32>
    %cst_73 = arith.constant dense<0.000000e+00> : vector<8xf32>
    %170 = vector.multi_reduction <add>, %169, %cst_73 [1] : vector<8x8xf32> to vector<8xf32>
    %171 = vector.shape_cast %170 : vector<8xf32> to vector<8x1xf32>
    %172 = vector.broadcast %171 : vector<8x1xf32> to vector<8x8xf32>
    %173 = arith.divf %169, %172 : vector<8x8xf32>
    %cst_74 = arith.constant dense<0.000000e+00> : vector<8x8xf32>
    %174 = tpu.matmul %173, %161, %cst_74 {dimension_numbers = #tpu.dot_dimension_numbers<[1], [0], [0], [1], [0, 0, 1, 1], [], []>} : vector<8x8xf32>, vector<8x8xf32>, vector<8x8xf32> -> vector<8x8xf32>
    %175 = vector.extract_strided_slice %132 {offsets = [0, 16], sizes = [8, 8], strides = [1, 1]} : vector<8x32xf32> to vector<8x8xf32>
    %176 = vector.extract_strided_slice %141 {offsets = [0, 16], sizes = [8, 8], strides = [1, 1]} : vector<8x32xf32> to vector<8x8xf32>
    %177 = vector.extract_strided_slice %142 {offsets = [0, 16], sizes = [8, 8], strides = [1, 1]} : vector<8x32xf32> to vector<8x8xf32>
    %cst_75 = arith.constant dense<0.000000e+00> : vector<8x8xf32>
    %178 = tpu.matmul %175, %176, %cst_75 {dimension_numbers = #tpu.dot_dimension_numbers<[1], [1], [0], [0], [0, 0, 1, 0], [], []>} : vector<8x8xf32>, vector<8x8xf32>, vector<8x8xf32> -> vector<8x8xf32>
    %cst_76 = arith.constant 0.353553385 : f32
    %179 = vector.broadcast %cst_76 : f32 to vector<8x8xf32>
    %180 = arith.mulf %178, %179 : vector<8x8xf32>
    %cst_77 = arith.constant dense<0xFF800000> : vector<8xf32>
    %181 = vector.multi_reduction <maximumf>, %180, %cst_77 [1] : vector<8x8xf32> to vector<8xf32>
    %182 = vector.shape_cast %181 : vector<8xf32> to vector<8x1xf32>
    %183 = vector.broadcast %182 : vector<8x1xf32> to vector<8x8xf32>
    %184 = arith.subf %180, %183 : vector<8x8xf32>
    %185 = math.exp %184 : vector<8x8xf32>
    %cst_78 = arith.constant dense<0.000000e+00> : vector<8xf32>
    %186 = vector.multi_reduction <add>, %185, %cst_78 [1] : vector<8x8xf32> to vector<8xf32>
    %187 = vector.shape_cast %186 : vector<8xf32> to vector<8x1xf32>
    %188 = vector.broadcast %187 : vector<8x1xf32> to vector<8x8xf32>
    %189 = arith.divf %185, %188 : vector<8x8xf32>
    %cst_79 = arith.constant dense<0.000000e+00> : vector<8x8xf32>
    %190 = tpu.matmul %189, %177, %cst_79 {dimension_numbers = #tpu.dot_dimension_numbers<[1], [0], [0], [1], [0, 0, 1, 1], [], []>} : vector<8x8xf32>, vector<8x8xf32>, vector<8x8xf32> -> vector<8x8xf32>
    %191 = vector.extract_strided_slice %132 {offsets = [0, 24], sizes = [8, 8], strides = [1, 1]} : vector<8x32xf32> to vector<8x8xf32>
    %192 = vector.extract_strided_slice %141 {offsets = [0, 24], sizes = [8, 8], strides = [1, 1]} : vector<8x32xf32> to vector<8x8xf32>
    %193 = vector.extract_strided_slice %142 {offsets = [0, 24], sizes = [8, 8], strides = [1, 1]} : vector<8x32xf32> to vector<8x8xf32>
    %cst_80 = arith.constant dense<0.000000e+00> : vector<8x8xf32>
    %194 = tpu.matmul %191, %192, %cst_80 {dimension_numbers = #tpu.dot_dimension_numbers<[1], [1], [0], [0], [0, 0, 1, 0], [], []>} : vector<8x8xf32>, vector<8x8xf32>, vector<8x8xf32> -> vector<8x8xf32>
    %cst_81 = arith.constant 0.353553385 : f32
    %195 = vector.broadcast %cst_81 : f32 to vector<8x8xf32>
    %196 = arith.mulf %194, %195 : vector<8x8xf32>
    %cst_82 = arith.constant dense<0xFF800000> : vector<8xf32>
    %197 = vector.multi_reduction <maximumf>, %196, %cst_82 [1] : vector<8x8xf32> to vector<8xf32>
    %198 = vector.shape_cast %197 : vector<8xf32> to vector<8x1xf32>
    %199 = vector.broadcast %198 : vector<8x1xf32> to vector<8x8xf32>
    %200 = arith.subf %196, %199 : vector<8x8xf32>
    %201 = math.exp %200 : vector<8x8xf32>
    %cst_83 = arith.constant dense<0.000000e+00> : vector<8xf32>
    %202 = vector.multi_reduction <add>, %201, %cst_83 [1] : vector<8x8xf32> to vector<8xf32>
    %203 = vector.shape_cast %202 : vector<8xf32> to vector<8x1xf32>
    %204 = vector.broadcast %203 : vector<8x1xf32> to vector<8x8xf32>
    %205 = arith.divf %201, %204 : vector<8x8xf32>
    %cst_84 = arith.constant dense<0.000000e+00> : vector<8x8xf32>
    %206 = tpu.matmul %205, %193, %cst_84 {dimension_numbers = #tpu.dot_dimension_numbers<[1], [0], [0], [1], [0, 0, 1, 1], [], []>} : vector<8x8xf32>, vector<8x8xf32>, vector<8x8xf32> -> vector<8x8xf32>
    %207 = tpu.concatenate %158, %174, %190, %206 in 1 : vector<8x8xf32>, vector<8x8xf32>, vector<8x8xf32>, vector<8x8xf32> -> vector<8x32xf32>
    %208 = arith.truncf %207 : vector<8x32xf32> to vector<8x32xbf16>
    %c0_85 = arith.constant 0 : index
    %c0_86 = arith.constant 0 : index
    %c0_87 = arith.constant 0 : index
    %209 = vector.load %arg13[%c0_85, %c0_86, %c0_87] : memref<2x32x32xbf16, #tpu.memory_space<vmem>>, vector<1x32x32xbf16>
    %210 = vector.shape_cast %209 : vector<1x32x32xbf16> to vector<32x32xbf16>
    %cst_88 = arith.constant dense<0.000000e+00> : vector<8x32xf32>
    %211 = tpu.matmul %208, %210, %cst_88 {dimension_numbers = #tpu.dot_dimension_numbers<[1], [0], [0], [1], [0, 0, 1, 1], [], []>} : vector<8x32xbf16>, vector<32x32xbf16>, vector<8x32xf32> -> vector<8x32xf32>
    %c0_89 = arith.constant 0 : index
    %c0_90 = arith.constant 0 : index
    %c0_91 = arith.constant 0 : index
    %212 = vector.load %arg14[%c0_89, %c0_90, %c0_91] : memref<2x1x32xf32, #tpu.memory_space<vmem>>, vector<1x1x32xf32>
    %213 = vector.shape_cast %212 : vector<1x1x32xf32> to vector<1x32xf32>
    %214 = vector.broadcast %213 : vector<1x32xf32> to vector<8x32xf32>
    %215 = arith.addf %211, %214 : vector<8x32xf32>
    %216 = arith.addf %124, %215 : vector<8x32xf32>
    %c0_92 = arith.constant 0 : index
    %c0_93 = arith.constant 0 : index
    %c0_94 = arith.constant 0 : index
    %217 = vector.load %arg15[%c0_92, %c0_93, %c0_94] : memref<2x1x32xf32, #tpu.memory_space<vmem>>, vector<1x1x32xf32>
    %218 = vector.shape_cast %217 : vector<1x1x32xf32> to vector<1x32xf32>
    %c0_95 = arith.constant 0 : index
    %c0_96 = arith.constant 0 : index
    %c0_97 = arith.constant 0 : index
    %219 = vector.load %arg16[%c0_95, %c0_96, %c0_97] : memref<2x1x32xf32, #tpu.memory_space<vmem>>, vector<1x1x32xf32>
    %220 = vector.shape_cast %219 : vector<1x1x32xf32> to vector<1x32xf32>
    %cst_98 = arith.constant dense<0.000000e+00> : vector<8xf32>
    %221 = vector.multi_reduction <add>, %216, %cst_98 [1] : vector<8x32xf32> to vector<8xf32>
    %222 = vector.shape_cast %221 : vector<8xf32> to vector<8x1xf32>
    %cst_99 = arith.constant 3.200000e+01 : f32
    %223 = vector.broadcast %cst_99 : f32 to vector<8x1xf32>
    %224 = arith.divf %222, %223 : vector<8x1xf32>
    %225 = vector.broadcast %224 : vector<8x1xf32> to vector<8x32xf32>
    %226 = arith.subf %216, %225 : vector<8x32xf32>
    %227 = arith.mulf %226, %226 : vector<8x32xf32>
    %cst_100 = arith.constant dense<0.000000e+00> : vector<8xf32>
    %228 = vector.multi_reduction <add>, %227, %cst_100 [1] : vector<8x32xf32> to vector<8xf32>
    %229 = vector.shape_cast %228 : vector<8xf32> to vector<8x1xf32>
    %cst_101 = arith.constant 3.200000e+01 : f32
    %230 = vector.broadcast %cst_101 : f32 to vector<8x1xf32>
    %231 = arith.divf %229, %230 : vector<8x1xf32>
    %232 = vector.broadcast %224 : vector<8x1xf32> to vector<8x32xf32>
    %233 = arith.subf %216, %232 : vector<8x32xf32>
    %cst_102 = arith.constant 9.99999974E-6 : f32
    %234 = vector.broadcast %cst_102 : f32 to vector<8x1xf32>
    %235 = arith.addf %231, %234 : vector<8x1xf32>
    %236 = math.rsqrt %235 : vector<8x1xf32>
    %237 = vector.broadcast %236 : vector<8x1xf32> to vector<8x32xf32>
    %238 = arith.mulf %233, %237 : vector<8x32xf32>
    %239 = vector.broadcast %218 : vector<1x32xf32> to vector<8x32xf32>
    %240 = arith.mulf %238, %239 : vector<8x32xf32>
    %241 = vector.broadcast %220 : vector<1x32xf32> to vector<8x32xf32>
    %242 = arith.addf %240, %241 : vector<8x32xf32>
    %243 = arith.truncf %242 : vector<8x32xf32> to vector<8x32xbf16>
    %c0_103 = arith.constant 0 : index
    %c0_104 = arith.constant 0 : index
    %c0_105 = arith.constant 0 : index
    %244 = vector.load %arg17[%c0_103, %c0_104, %c0_105] : memref<2x32x64xbf16, #tpu.memory_space<vmem>>, vector<1x32x64xbf16>
    %245 = vector.shape_cast %244 : vector<1x32x64xbf16> to vector<32x64xbf16>
    %cst_106 = arith.constant dense<0.000000e+00> : vector<8x64xf32>
    %246 = tpu.matmul %243, %245, %cst_106 {dimension_numbers = #tpu.dot_dimension_numbers<[1], [0], [0], [1], [0, 0, 1, 1], [], []>} : vector<8x32xbf16>, vector<32x64xbf16>, vector<8x64xf32> -> vector<8x64xf32>
    %c0_107 = arith.constant 0 : index
    %c0_108 = arith.constant 0 : index
    %c0_109 = arith.constant 0 : index
    %247 = vector.load %arg18[%c0_107, %c0_108, %c0_109] : memref<2x1x64xf32, #tpu.memory_space<vmem>>, vector<1x1x64xf32>
    %248 = vector.shape_cast %247 : vector<1x1x64xf32> to vector<1x64xf32>
    %249 = vector.broadcast %248 : vector<1x64xf32> to vector<8x64xf32>
    %250 = arith.addf %246, %249 : vector<8x64xf32>
    %cst_110 = arith.constant 0.000000e+00 : f32
    %251 = vector.broadcast %cst_110 : f32 to vector<8x64xf32>
    %252 = arith.maximumf %250, %251 : vector<8x64xf32>
    %253 = arith.truncf %252 : vector<8x64xf32> to vector<8x64xbf16>
    %c0_111 = arith.constant 0 : index
    %c0_112 = arith.constant 0 : index
    %c0_113 = arith.constant 0 : index
    %254 = vector.load %arg19[%c0_111, %c0_112, %c0_113] : memref<2x64x32xbf16, #tpu.memory_space<vmem>>, vector<1x64x32xbf16>
    %255 = vector.shape_cast %254 : vector<1x64x32xbf16> to vector<64x32xbf16>
    %cst_114 = arith.constant dense<0.000000e+00> : vector<8x32xf32>
    %256 = tpu.matmul %253, %255, %cst_114 {dimension_numbers = #tpu.dot_dimension_numbers<[1], [0], [0], [1], [0, 0, 1, 1], [], []>} : vector<8x64xbf16>, vector<64x32xbf16>, vector<8x32xf32> -> vector<8x32xf32>
    %c0_115 = arith.constant 0 : index
    %c0_116 = arith.constant 0 : index
    %c0_117 = arith.constant 0 : index
    %257 = vector.load %arg20[%c0_115, %c0_116, %c0_117] : memref<2x1x32xf32, #tpu.memory_space<vmem>>, vector<1x1x32xf32>
    %258 = vector.shape_cast %257 : vector<1x1x32xf32> to vector<1x32xf32>
    %259 = vector.broadcast %258 : vector<1x32xf32> to vector<8x32xf32>
    %260 = arith.addf %256, %259 : vector<8x32xf32>
    %261 = arith.addf %242, %260 : vector<8x32xf32>
    %c0_118 = arith.constant 0 : index
    %c0_119 = arith.constant 0 : index
    %c0_120 = arith.constant 0 : index
    %262 = vector.load %arg21[%c0_118, %c0_119, %c0_120] : memref<2x1x32xf32, #tpu.memory_space<vmem>>, vector<1x1x32xf32>
    %263 = vector.shape_cast %262 : vector<1x1x32xf32> to vector<1x32xf32>
    %c0_121 = arith.constant 0 : index
    %c0_122 = arith.constant 0 : index
    %c0_123 = arith.constant 0 : index
    %264 = vector.load %arg22[%c0_121, %c0_122, %c0_123] : memref<2x1x32xf32, #tpu.memory_space<vmem>>, vector<1x1x32xf32>
    %265 = vector.shape_cast %264 : vector<1x1x32xf32> to vector<1x32xf32>
    %cst_124 = arith.constant dense<0.000000e+00> : vector<8xf32>
    %266 = vector.multi_reduction <add>, %261, %cst_124 [1] : vector<8x32xf32> to vector<8xf32>
    %267 = vector.shape_cast %266 : vector<8xf32> to vector<8x1xf32>
    %cst_125 = arith.constant 3.200000e+01 : f32
    %268 = vector.broadcast %cst_125 : f32 to vector<8x1xf32>
    %269 = arith.divf %267, %268 : vector<8x1xf32>
    %270 = vector.broadcast %269 : vector<8x1xf32> to vector<8x32xf32>
    %271 = arith.subf %261, %270 : vector<8x32xf32>
    %272 = arith.mulf %271, %271 : vector<8x32xf32>
    %cst_126 = arith.constant dense<0.000000e+00> : vector<8xf32>
    %273 = vector.multi_reduction <add>, %272, %cst_126 [1] : vector<8x32xf32> to vector<8xf32>
    %274 = vector.shape_cast %273 : vector<8xf32> to vector<8x1xf32>
    %cst_127 = arith.constant 3.200000e+01 : f32
    %275 = vector.broadcast %cst_127 : f32 to vector<8x1xf32>
    %276 = arith.divf %274, %275 : vector<8x1xf32>
    %277 = vector.broadcast %269 : vector<8x1xf32> to vector<8x32xf32>
    %278 = arith.subf %261, %277 : vector<8x32xf32>
    %cst_128 = arith.constant 9.99999974E-6 : f32
    %279 = vector.broadcast %cst_128 : f32 to vector<8x1xf32>
    %280 = arith.addf %276, %279 : vector<8x1xf32>
    %281 = math.rsqrt %280 : vector<8x1xf32>
    %282 = vector.broadcast %281 : vector<8x1xf32> to vector<8x32xf32>
    %283 = arith.mulf %278, %282 : vector<8x32xf32>
    %284 = vector.broadcast %263 : vector<1x32xf32> to vector<8x32xf32>
    %285 = arith.mulf %283, %284 : vector<8x32xf32>
    %286 = vector.broadcast %265 : vector<1x32xf32> to vector<8x32xf32>
    %287 = arith.addf %285, %286 : vector<8x32xf32>
    %288 = arith.truncf %287 : vector<8x32xf32> to vector<8x32xbf16>
    %c1 = arith.constant 1 : index
    %c0_129 = arith.constant 0 : index
    %c0_130 = arith.constant 0 : index
    %289 = vector.load %arg3[%c1, %c0_129, %c0_130] : memref<2x32x96xbf16, #tpu.memory_space<vmem>>, vector<1x32x96xbf16>
    %290 = vector.shape_cast %289 : vector<1x32x96xbf16> to vector<32x96xbf16>
    %cst_131 = arith.constant dense<0.000000e+00> : vector<8x96xf32>
    %291 = tpu.matmul %288, %290, %cst_131 {dimension_numbers = #tpu.dot_dimension_numbers<[1], [0], [0], [1], [0, 0, 1, 1], [], []>} : vector<8x32xbf16>, vector<32x96xbf16>, vector<8x96xf32> -> vector<8x96xf32>
    %c1_132 = arith.constant 1 : index
    %c0_133 = arith.constant 0 : index
    %c0_134 = arith.constant 0 : index
    %292 = vector.load %arg4[%c1_132, %c0_133, %c0_134] : memref<2x1x96xf32, #tpu.memory_space<vmem>>, vector<1x1x96xf32>
    %293 = vector.shape_cast %292 : vector<1x1x96xf32> to vector<1x96xf32>
    %294 = vector.broadcast %293 : vector<1x96xf32> to vector<8x96xf32>
    %295 = arith.addf %291, %294 : vector<8x96xf32>
    %296 = vector.extract_strided_slice %295 {offsets = [0, 0], sizes = [8, 32], strides = [1, 1]} : vector<8x96xf32> to vector<8x32xf32>
    %297 = vector.extract_strided_slice %295 {offsets = [0, 32], sizes = [8, 32], strides = [1, 1]} : vector<8x96xf32> to vector<8x32xf32>
    %298 = vector.extract_strided_slice %295 {offsets = [0, 64], sizes = [8, 32], strides = [1, 1]} : vector<8x96xf32> to vector<8x32xf32>
    %299 = vector.extract_strided_slice %296 {offsets = [0, 0], sizes = [8, 8], strides = [1, 1]} : vector<8x32xf32> to vector<8x8xf32>
    %300 = vector.extract_strided_slice %297 {offsets = [0, 0], sizes = [8, 8], strides = [1, 1]} : vector<8x32xf32> to vector<8x8xf32>
    %301 = vector.extract_strided_slice %298 {offsets = [0, 0], sizes = [8, 8], strides = [1, 1]} : vector<8x32xf32> to vector<8x8xf32>
    %cst_135 = arith.constant dense<0.000000e+00> : vector<8x8xf32>
    %302 = tpu.matmul %299, %300, %cst_135 {dimension_numbers = #tpu.dot_dimension_numbers<[1], [1], [0], [0], [0, 0, 1, 0], [], []>} : vector<8x8xf32>, vector<8x8xf32>, vector<8x8xf32> -> vector<8x8xf32>
    %cst_136 = arith.constant 0.353553385 : f32
    %303 = vector.broadcast %cst_136 : f32 to vector<8x8xf32>
    %304 = arith.mulf %302, %303 : vector<8x8xf32>
    %305 = arith.addf %304, %9 : vector<8x8xf32>
    %cst_137 = arith.constant dense<0xFF800000> : vector<8xf32>
    %306 = vector.multi_reduction <maximumf>, %305, %cst_137 [1] : vector<8x8xf32> to vector<8xf32>
    %307 = vector.shape_cast %306 : vector<8xf32> to vector<8x1xf32>
    %308 = vector.broadcast %307 : vector<8x1xf32> to vector<8x8xf32>
    %309 = arith.subf %305, %308 : vector<8x8xf32>
    %310 = math.exp %309 : vector<8x8xf32>
    %cst_138 = arith.constant dense<0.000000e+00> : vector<8xf32>
    %311 = vector.multi_reduction <add>, %310, %cst_138 [1] : vector<8x8xf32> to vector<8xf32>
    %312 = vector.shape_cast %311 : vector<8xf32> to vector<8x1xf32>
    %313 = vector.broadcast %312 : vector<8x1xf32> to vector<8x8xf32>
    %314 = arith.divf %310, %313 : vector<8x8xf32>
    %cst_139 = arith.constant dense<0.000000e+00> : vector<8x8xf32>
    %315 = tpu.matmul %314, %301, %cst_139 {dimension_numbers = #tpu.dot_dimension_numbers<[1], [0], [0], [1], [0, 0, 1, 1], [], []>} : vector<8x8xf32>, vector<8x8xf32>, vector<8x8xf32> -> vector<8x8xf32>
    %316 = vector.extract_strided_slice %296 {offsets = [0, 8], sizes = [8, 8], strides = [1, 1]} : vector<8x32xf32> to vector<8x8xf32>
    %317 = vector.extract_strided_slice %297 {offsets = [0, 8], sizes = [8, 8], strides = [1, 1]} : vector<8x32xf32> to vector<8x8xf32>
    %318 = vector.extract_strided_slice %298 {offsets = [0, 8], sizes = [8, 8], strides = [1, 1]} : vector<8x32xf32> to vector<8x8xf32>
    %cst_140 = arith.constant dense<0.000000e+00> : vector<8x8xf32>
    %319 = tpu.matmul %316, %317, %cst_140 {dimension_numbers = #tpu.dot_dimension_numbers<[1], [1], [0], [0], [0, 0, 1, 0], [], []>} : vector<8x8xf32>, vector<8x8xf32>, vector<8x8xf32> -> vector<8x8xf32>
    %cst_141 = arith.constant 0.353553385 : f32
    %320 = vector.broadcast %cst_141 : f32 to vector<8x8xf32>
    %321 = arith.mulf %319, %320 : vector<8x8xf32>
    %322 = arith.addf %321, %9 : vector<8x8xf32>
    %cst_142 = arith.constant dense<0xFF800000> : vector<8xf32>
    %323 = vector.multi_reduction <maximumf>, %322, %cst_142 [1] : vector<8x8xf32> to vector<8xf32>
    %324 = vector.shape_cast %323 : vector<8xf32> to vector<8x1xf32>
    %325 = vector.broadcast %324 : vector<8x1xf32> to vector<8x8xf32>
    %326 = arith.subf %322, %325 : vector<8x8xf32>
    %327 = math.exp %326 : vector<8x8xf32>
    %cst_143 = arith.constant dense<0.000000e+00> : vector<8xf32>
    %328 = vector.multi_reduction <add>, %327, %cst_143 [1] : vector<8x8xf32> to vector<8xf32>
    %329 = vector.shape_cast %328 : vector<8xf32> to vector<8x1xf32>
    %330 = vector.broadcast %329 : vector<8x1xf32> to vector<8x8xf32>
    %331 = arith.divf %327, %330 : vector<8x8xf32>
    %cst_144 = arith.constant dense<0.000000e+00> : vector<8x8xf32>
    %332 = tpu.matmul %331, %318, %cst_144 {dimension_numbers = #tpu.dot_dimension_numbers<[1], [0], [0], [1], [0, 0, 1, 1], [], []>} : vector<8x8xf32>, vector<8x8xf32>, vector<8x8xf32> -> vector<8x8xf32>
    %333 = vector.extract_strided_slice %296 {offsets = [0, 16], sizes = [8, 8], strides = [1, 1]} : vector<8x32xf32> to vector<8x8xf32>
    %334 = vector.extract_strided_slice %297 {offsets = [0, 16], sizes = [8, 8], strides = [1, 1]} : vector<8x32xf32> to vector<8x8xf32>
    %335 = vector.extract_strided_slice %298 {offsets = [0, 16], sizes = [8, 8], strides = [1, 1]} : vector<8x32xf32> to vector<8x8xf32>
    %cst_145 = arith.constant dense<0.000000e+00> : vector<8x8xf32>
    %336 = tpu.matmul %333, %334, %cst_145 {dimension_numbers = #tpu.dot_dimension_numbers<[1], [1], [0], [0], [0, 0, 1, 0], [], []>} : vector<8x8xf32>, vector<8x8xf32>, vector<8x8xf32> -> vector<8x8xf32>
    %cst_146 = arith.constant 0.353553385 : f32
    %337 = vector.broadcast %cst_146 : f32 to vector<8x8xf32>
    %338 = arith.mulf %336, %337 : vector<8x8xf32>
    %339 = arith.addf %338, %9 : vector<8x8xf32>
    %cst_147 = arith.constant dense<0xFF800000> : vector<8xf32>
    %340 = vector.multi_reduction <maximumf>, %339, %cst_147 [1] : vector<8x8xf32> to vector<8xf32>
    %341 = vector.shape_cast %340 : vector<8xf32> to vector<8x1xf32>
    %342 = vector.broadcast %341 : vector<8x1xf32> to vector<8x8xf32>
    %343 = arith.subf %339, %342 : vector<8x8xf32>
    %344 = math.exp %343 : vector<8x8xf32>
    %cst_148 = arith.constant dense<0.000000e+00> : vector<8xf32>
    %345 = vector.multi_reduction <add>, %344, %cst_148 [1] : vector<8x8xf32> to vector<8xf32>
    %346 = vector.shape_cast %345 : vector<8xf32> to vector<8x1xf32>
    %347 = vector.broadcast %346 : vector<8x1xf32> to vector<8x8xf32>
    %348 = arith.divf %344, %347 : vector<8x8xf32>
    %cst_149 = arith.constant dense<0.000000e+00> : vector<8x8xf32>
    %349 = tpu.matmul %348, %335, %cst_149 {dimension_numbers = #tpu.dot_dimension_numbers<[1], [0], [0], [1], [0, 0, 1, 1], [], []>} : vector<8x8xf32>, vector<8x8xf32>, vector<8x8xf32> -> vector<8x8xf32>
    %350 = vector.extract_strided_slice %296 {offsets = [0, 24], sizes = [8, 8], strides = [1, 1]} : vector<8x32xf32> to vector<8x8xf32>
    %351 = vector.extract_strided_slice %297 {offsets = [0, 24], sizes = [8, 8], strides = [1, 1]} : vector<8x32xf32> to vector<8x8xf32>
    %352 = vector.extract_strided_slice %298 {offsets = [0, 24], sizes = [8, 8], strides = [1, 1]} : vector<8x32xf32> to vector<8x8xf32>
    %cst_150 = arith.constant dense<0.000000e+00> : vector<8x8xf32>
    %353 = tpu.matmul %350, %351, %cst_150 {dimension_numbers = #tpu.dot_dimension_numbers<[1], [1], [0], [0], [0, 0, 1, 0], [], []>} : vector<8x8xf32>, vector<8x8xf32>, vector<8x8xf32> -> vector<8x8xf32>
    %cst_151 = arith.constant 0.353553385 : f32
    %354 = vector.broadcast %cst_151 : f32 to vector<8x8xf32>
    %355 = arith.mulf %353, %354 : vector<8x8xf32>
    %356 = arith.addf %355, %9 : vector<8x8xf32>
    %cst_152 = arith.constant dense<0xFF800000> : vector<8xf32>
    %357 = vector.multi_reduction <maximumf>, %356, %cst_152 [1] : vector<8x8xf32> to vector<8xf32>
    %358 = vector.shape_cast %357 : vector<8xf32> to vector<8x1xf32>
    %359 = vector.broadcast %358 : vector<8x1xf32> to vector<8x8xf32>
    %360 = arith.subf %356, %359 : vector<8x8xf32>
    %361 = math.exp %360 : vector<8x8xf32>
    %cst_153 = arith.constant dense<0.000000e+00> : vector<8xf32>
    %362 = vector.multi_reduction <add>, %361, %cst_153 [1] : vector<8x8xf32> to vector<8xf32>
    %363 = vector.shape_cast %362 : vector<8xf32> to vector<8x1xf32>
    %364 = vector.broadcast %363 : vector<8x1xf32> to vector<8x8xf32>
    %365 = arith.divf %361, %364 : vector<8x8xf32>
    %cst_154 = arith.constant dense<0.000000e+00> : vector<8x8xf32>
    %366 = tpu.matmul %365, %352, %cst_154 {dimension_numbers = #tpu.dot_dimension_numbers<[1], [0], [0], [1], [0, 0, 1, 1], [], []>} : vector<8x8xf32>, vector<8x8xf32>, vector<8x8xf32> -> vector<8x8xf32>
    %367 = tpu.concatenate %315, %332, %349, %366 in 1 : vector<8x8xf32>, vector<8x8xf32>, vector<8x8xf32>, vector<8x8xf32> -> vector<8x32xf32>
    %368 = arith.truncf %367 : vector<8x32xf32> to vector<8x32xbf16>
    %c1_155 = arith.constant 1 : index
    %c0_156 = arith.constant 0 : index
    %c0_157 = arith.constant 0 : index
    %369 = vector.load %arg5[%c1_155, %c0_156, %c0_157] : memref<2x32x32xbf16, #tpu.memory_space<vmem>>, vector<1x32x32xbf16>
    %370 = vector.shape_cast %369 : vector<1x32x32xbf16> to vector<32x32xbf16>
    %cst_158 = arith.constant dense<0.000000e+00> : vector<8x32xf32>
    %371 = tpu.matmul %368, %370, %cst_158 {dimension_numbers = #tpu.dot_dimension_numbers<[1], [0], [0], [1], [0, 0, 1, 1], [], []>} : vector<8x32xbf16>, vector<32x32xbf16>, vector<8x32xf32> -> vector<8x32xf32>
    %c1_159 = arith.constant 1 : index
    %c0_160 = arith.constant 0 : index
    %c0_161 = arith.constant 0 : index
    %372 = vector.load %arg6[%c1_159, %c0_160, %c0_161] : memref<2x1x32xf32, #tpu.memory_space<vmem>>, vector<1x1x32xf32>
    %373 = vector.shape_cast %372 : vector<1x1x32xf32> to vector<1x32xf32>
    %374 = vector.broadcast %373 : vector<1x32xf32> to vector<8x32xf32>
    %375 = arith.addf %371, %374 : vector<8x32xf32>
    %376 = arith.addf %287, %375 : vector<8x32xf32>
    %c1_162 = arith.constant 1 : index
    %c0_163 = arith.constant 0 : index
    %c0_164 = arith.constant 0 : index
    %377 = vector.load %arg7[%c1_162, %c0_163, %c0_164] : memref<2x1x32xf32, #tpu.memory_space<vmem>>, vector<1x1x32xf32>
    %378 = vector.shape_cast %377 : vector<1x1x32xf32> to vector<1x32xf32>
    %c1_165 = arith.constant 1 : index
    %c0_166 = arith.constant 0 : index
    %c0_167 = arith.constant 0 : index
    %379 = vector.load %arg8[%c1_165, %c0_166, %c0_167] : memref<2x1x32xf32, #tpu.memory_space<vmem>>, vector<1x1x32xf32>
    %380 = vector.shape_cast %379 : vector<1x1x32xf32> to vector<1x32xf32>
    %cst_168 = arith.constant dense<0.000000e+00> : vector<8xf32>
    %381 = vector.multi_reduction <add>, %376, %cst_168 [1] : vector<8x32xf32> to vector<8xf32>
    %382 = vector.shape_cast %381 : vector<8xf32> to vector<8x1xf32>
    %cst_169 = arith.constant 3.200000e+01 : f32
    %383 = vector.broadcast %cst_169 : f32 to vector<8x1xf32>
    %384 = arith.divf %382, %383 : vector<8x1xf32>
    %385 = vector.broadcast %384 : vector<8x1xf32> to vector<8x32xf32>
    %386 = arith.subf %376, %385 : vector<8x32xf32>
    %387 = arith.mulf %386, %386 : vector<8x32xf32>
    %cst_170 = arith.constant dense<0.000000e+00> : vector<8xf32>
    %388 = vector.multi_reduction <add>, %387, %cst_170 [1] : vector<8x32xf32> to vector<8xf32>
    %389 = vector.shape_cast %388 : vector<8xf32> to vector<8x1xf32>
    %cst_171 = arith.constant 3.200000e+01 : f32
    %390 = vector.broadcast %cst_171 : f32 to vector<8x1xf32>
    %391 = arith.divf %389, %390 : vector<8x1xf32>
    %392 = vector.broadcast %384 : vector<8x1xf32> to vector<8x32xf32>
    %393 = arith.subf %376, %392 : vector<8x32xf32>
    %cst_172 = arith.constant 9.99999974E-6 : f32
    %394 = vector.broadcast %cst_172 : f32 to vector<8x1xf32>
    %395 = arith.addf %391, %394 : vector<8x1xf32>
    %396 = math.rsqrt %395 : vector<8x1xf32>
    %397 = vector.broadcast %396 : vector<8x1xf32> to vector<8x32xf32>
    %398 = arith.mulf %393, %397 : vector<8x32xf32>
    %399 = vector.broadcast %378 : vector<1x32xf32> to vector<8x32xf32>
    %400 = arith.mulf %398, %399 : vector<8x32xf32>
    %401 = vector.broadcast %380 : vector<1x32xf32> to vector<8x32xf32>
    %402 = arith.addf %400, %401 : vector<8x32xf32>
    %403 = arith.truncf %402 : vector<8x32xf32> to vector<8x32xbf16>
    %c1_173 = arith.constant 1 : index
    %c0_174 = arith.constant 0 : index
    %c0_175 = arith.constant 0 : index
    %404 = vector.load %arg9[%c1_173, %c0_174, %c0_175] : memref<2x32x32xbf16, #tpu.memory_space<vmem>>, vector<1x32x32xbf16>
    %405 = vector.shape_cast %404 : vector<1x32x32xbf16> to vector<32x32xbf16>
    %cst_176 = arith.constant dense<0.000000e+00> : vector<8x32xf32>
    %406 = tpu.matmul %403, %405, %cst_176 {dimension_numbers = #tpu.dot_dimension_numbers<[1], [0], [0], [1], [0, 0, 1, 1], [], []>} : vector<8x32xbf16>, vector<32x32xbf16>, vector<8x32xf32> -> vector<8x32xf32>
    %c1_177 = arith.constant 1 : index
    %c0_178 = arith.constant 0 : index
    %c0_179 = arith.constant 0 : index
    %407 = vector.load %arg10[%c1_177, %c0_178, %c0_179] : memref<2x1x32xf32, #tpu.memory_space<vmem>>, vector<1x1x32xf32>
    %408 = vector.shape_cast %407 : vector<1x1x32xf32> to vector<1x32xf32>
    %409 = vector.broadcast %408 : vector<1x32xf32> to vector<8x32xf32>
    %410 = arith.addf %406, %409 : vector<8x32xf32>
    %411 = arith.truncf %3 : vector<8x32xf32> to vector<8x32xbf16>
    %c1_180 = arith.constant 1 : index
    %c0_181 = arith.constant 0 : index
    %c0_182 = arith.constant 0 : index
    %412 = vector.load %arg11[%c1_180, %c0_181, %c0_182] : memref<2x32x64xbf16, #tpu.memory_space<vmem>>, vector<1x32x64xbf16>
    %413 = vector.shape_cast %412 : vector<1x32x64xbf16> to vector<32x64xbf16>
    %cst_183 = arith.constant dense<0.000000e+00> : vector<8x64xf32>
    %414 = tpu.matmul %411, %413, %cst_183 {dimension_numbers = #tpu.dot_dimension_numbers<[1], [0], [0], [1], [0, 0, 1, 1], [], []>} : vector<8x32xbf16>, vector<32x64xbf16>, vector<8x64xf32> -> vector<8x64xf32>
    %c1_184 = arith.constant 1 : index
    %c0_185 = arith.constant 0 : index
    %c0_186 = arith.constant 0 : index
    %415 = vector.load %arg12[%c1_184, %c0_185, %c0_186] : memref<2x1x64xf32, #tpu.memory_space<vmem>>, vector<1x1x64xf32>
    %416 = vector.shape_cast %415 : vector<1x1x64xf32> to vector<1x64xf32>
    %417 = vector.broadcast %416 : vector<1x64xf32> to vector<8x64xf32>
    %418 = arith.addf %414, %417 : vector<8x64xf32>
    %419 = vector.extract_strided_slice %418 {offsets = [0, 0], sizes = [8, 32], strides = [1, 1]} : vector<8x64xf32> to vector<8x32xf32>
    %420 = vector.extract_strided_slice %418 {offsets = [0, 32], sizes = [8, 32], strides = [1, 1]} : vector<8x64xf32> to vector<8x32xf32>
    %421 = vector.extract_strided_slice %410 {offsets = [0, 0], sizes = [8, 8], strides = [1, 1]} : vector<8x32xf32> to vector<8x8xf32>
    %422 = vector.extract_strided_slice %419 {offsets = [0, 0], sizes = [8, 8], strides = [1, 1]} : vector<8x32xf32> to vector<8x8xf32>
    %423 = vector.extract_strided_slice %420 {offsets = [0, 0], sizes = [8, 8], strides = [1, 1]} : vector<8x32xf32> to vector<8x8xf32>
    %cst_187 = arith.constant dense<0.000000e+00> : vector<8x8xf32>
    %424 = tpu.matmul %421, %422, %cst_187 {dimension_numbers = #tpu.dot_dimension_numbers<[1], [1], [0], [0], [0, 0, 1, 0], [], []>} : vector<8x8xf32>, vector<8x8xf32>, vector<8x8xf32> -> vector<8x8xf32>
    %cst_188 = arith.constant 0.353553385 : f32
    %425 = vector.broadcast %cst_188 : f32 to vector<8x8xf32>
    %426 = arith.mulf %424, %425 : vector<8x8xf32>
    %cst_189 = arith.constant dense<0xFF800000> : vector<8xf32>
    %427 = vector.multi_reduction <maximumf>, %426, %cst_189 [1] : vector<8x8xf32> to vector<8xf32>
    %428 = vector.shape_cast %427 : vector<8xf32> to vector<8x1xf32>
    %429 = vector.broadcast %428 : vector<8x1xf32> to vector<8x8xf32>
    %430 = arith.subf %426, %429 : vector<8x8xf32>
    %431 = math.exp %430 : vector<8x8xf32>
    %cst_190 = arith.constant dense<0.000000e+00> : vector<8xf32>
    %432 = vector.multi_reduction <add>, %431, %cst_190 [1] : vector<8x8xf32> to vector<8xf32>
    %433 = vector.shape_cast %432 : vector<8xf32> to vector<8x1xf32>
    %434 = vector.broadcast %433 : vector<8x1xf32> to vector<8x8xf32>
    %435 = arith.divf %431, %434 : vector<8x8xf32>
    %cst_191 = arith.constant dense<0.000000e+00> : vector<8x8xf32>
    %436 = tpu.matmul %435, %423, %cst_191 {dimension_numbers = #tpu.dot_dimension_numbers<[1], [0], [0], [1], [0, 0, 1, 1], [], []>} : vector<8x8xf32>, vector<8x8xf32>, vector<8x8xf32> -> vector<8x8xf32>
    %437 = vector.extract_strided_slice %410 {offsets = [0, 8], sizes = [8, 8], strides = [1, 1]} : vector<8x32xf32> to vector<8x8xf32>
    %438 = vector.extract_strided_slice %419 {offsets = [0, 8], sizes = [8, 8], strides = [1, 1]} : vector<8x32xf32> to vector<8x8xf32>
    %439 = vector.extract_strided_slice %420 {offsets = [0, 8], sizes = [8, 8], strides = [1, 1]} : vector<8x32xf32> to vector<8x8xf32>
    %cst_192 = arith.constant dense<0.000000e+00> : vector<8x8xf32>
    %440 = tpu.matmul %437, %438, %cst_192 {dimension_numbers = #tpu.dot_dimension_numbers<[1], [1], [0], [0], [0, 0, 1, 0], [], []>} : vector<8x8xf32>, vector<8x8xf32>, vector<8x8xf32> -> vector<8x8xf32>
    %cst_193 = arith.constant 0.353553385 : f32
    %441 = vector.broadcast %cst_193 : f32 to vector<8x8xf32>
    %442 = arith.mulf %440, %441 : vector<8x8xf32>
    %cst_194 = arith.constant dense<0xFF800000> : vector<8xf32>
    %443 = vector.multi_reduction <maximumf>, %442, %cst_194 [1] : vector<8x8xf32> to vector<8xf32>
    %444 = vector.shape_cast %443 : vector<8xf32> to vector<8x1xf32>
    %445 = vector.broadcast %444 : vector<8x1xf32> to vector<8x8xf32>
    %446 = arith.subf %442, %445 : vector<8x8xf32>
    %447 = math.exp %446 : vector<8x8xf32>
    %cst_195 = arith.constant dense<0.000000e+00> : vector<8xf32>
    %448 = vector.multi_reduction <add>, %447, %cst_195 [1] : vector<8x8xf32> to vector<8xf32>
    %449 = vector.shape_cast %448 : vector<8xf32> to vector<8x1xf32>
    %450 = vector.broadcast %449 : vector<8x1xf32> to vector<8x8xf32>
    %451 = arith.divf %447, %450 : vector<8x8xf32>
    %cst_196 = arith.constant dense<0.000000e+00> : vector<8x8xf32>
    %452 = tpu.matmul %451, %439, %cst_196 {dimension_numbers = #tpu.dot_dimension_numbers<[1], [0], [0], [1], [0, 0, 1, 1], [], []>} : vector<8x8xf32>, vector<8x8xf32>, vector<8x8xf32> -> vector<8x8xf32>
    %453 = vector.extract_strided_slice %410 {offsets = [0, 16], sizes = [8, 8], strides = [1, 1]} : vector<8x32xf32> to vector<8x8xf32>
    %454 = vector.extract_strided_slice %419 {offsets = [0, 16], sizes = [8, 8], strides = [1, 1]} : vector<8x32xf32> to vector<8x8xf32>
    %455 = vector.extract_strided_slice %420 {offsets = [0, 16], sizes = [8, 8], strides = [1, 1]} : vector<8x32xf32> to vector<8x8xf32>
    %cst_197 = arith.constant dense<0.000000e+00> : vector<8x8xf32>
    %456 = tpu.matmul %453, %454, %cst_197 {dimension_numbers = #tpu.dot_dimension_numbers<[1], [1], [0], [0], [0, 0, 1, 0], [], []>} : vector<8x8xf32>, vector<8x8xf32>, vector<8x8xf32> -> vector<8x8xf32>
    %cst_198 = arith.constant 0.353553385 : f32
    %457 = vector.broadcast %cst_198 : f32 to vector<8x8xf32>
    %458 = arith.mulf %456, %457 : vector<8x8xf32>
    %cst_199 = arith.constant dense<0xFF800000> : vector<8xf32>
    %459 = vector.multi_reduction <maximumf>, %458, %cst_199 [1] : vector<8x8xf32> to vector<8xf32>
    %460 = vector.shape_cast %459 : vector<8xf32> to vector<8x1xf32>
    %461 = vector.broadcast %460 : vector<8x1xf32> to vector<8x8xf32>
    %462 = arith.subf %458, %461 : vector<8x8xf32>
    %463 = math.exp %462 : vector<8x8xf32>
    %cst_200 = arith.constant dense<0.000000e+00> : vector<8xf32>
    %464 = vector.multi_reduction <add>, %463, %cst_200 [1] : vector<8x8xf32> to vector<8xf32>
    %465 = vector.shape_cast %464 : vector<8xf32> to vector<8x1xf32>
    %466 = vector.broadcast %465 : vector<8x1xf32> to vector<8x8xf32>
    %467 = arith.divf %463, %466 : vector<8x8xf32>
    %cst_201 = arith.constant dense<0.000000e+00> : vector<8x8xf32>
    %468 = tpu.matmul %467, %455, %cst_201 {dimension_numbers = #tpu.dot_dimension_numbers<[1], [0], [0], [1], [0, 0, 1, 1], [], []>} : vector<8x8xf32>, vector<8x8xf32>, vector<8x8xf32> -> vector<8x8xf32>
    %469 = vector.extract_strided_slice %410 {offsets = [0, 24], sizes = [8, 8], strides = [1, 1]} : vector<8x32xf32> to vector<8x8xf32>
    %470 = vector.extract_strided_slice %419 {offsets = [0, 24], sizes = [8, 8], strides = [1, 1]} : vector<8x32xf32> to vector<8x8xf32>
    %471 = vector.extract_strided_slice %420 {offsets = [0, 24], sizes = [8, 8], strides = [1, 1]} : vector<8x32xf32> to vector<8x8xf32>
    %cst_202 = arith.constant dense<0.000000e+00> : vector<8x8xf32>
    %472 = tpu.matmul %469, %470, %cst_202 {dimension_numbers = #tpu.dot_dimension_numbers<[1], [1], [0], [0], [0, 0, 1, 0], [], []>} : vector<8x8xf32>, vector<8x8xf32>, vector<8x8xf32> -> vector<8x8xf32>
    %cst_203 = arith.constant 0.353553385 : f32
    %473 = vector.broadcast %cst_203 : f32 to vector<8x8xf32>
    %474 = arith.mulf %472, %473 : vector<8x8xf32>
    %cst_204 = arith.constant dense<0xFF800000> : vector<8xf32>
    %475 = vector.multi_reduction <maximumf>, %474, %cst_204 [1] : vector<8x8xf32> to vector<8xf32>
    %476 = vector.shape_cast %475 : vector<8xf32> to vector<8x1xf32>
    %477 = vector.broadcast %476 : vector<8x1xf32> to vector<8x8xf32>
    %478 = arith.subf %474, %477 : vector<8x8xf32>
    %479 = math.exp %478 : vector<8x8xf32>
    %cst_205 = arith.constant dense<0.000000e+00> : vector<8xf32>
    %480 = vector.multi_reduction <add>, %479, %cst_205 [1] : vector<8x8xf32> to vector<8xf32>
    %481 = vector.shape_cast %480 : vector<8xf32> to vector<8x1xf32>
    %482 = vector.broadcast %481 : vector<8x1xf32> to vector<8x8xf32>
    %483 = arith.divf %479, %482 : vector<8x8xf32>
    %cst_206 = arith.constant dense<0.000000e+00> : vector<8x8xf32>
    %484 = tpu.matmul %483, %471, %cst_206 {dimension_numbers = #tpu.dot_dimension_numbers<[1], [0], [0], [1], [0, 0, 1, 1], [], []>} : vector<8x8xf32>, vector<8x8xf32>, vector<8x8xf32> -> vector<8x8xf32>
    %485 = tpu.concatenate %436, %452, %468, %484 in 1 : vector<8x8xf32>, vector<8x8xf32>, vector<8x8xf32>, vector<8x8xf32> -> vector<8x32xf32>
    %486 = arith.truncf %485 : vector<8x32xf32> to vector<8x32xbf16>
    %c1_207 = arith.constant 1 : index
    %c0_208 = arith.constant 0 : index
    %c0_209 = arith.constant 0 : index
    %487 = vector.load %arg13[%c1_207, %c0_208, %c0_209] : memref<2x32x32xbf16, #tpu.memory_space<vmem>>, vector<1x32x32xbf16>
    %488 = vector.shape_cast %487 : vector<1x32x32xbf16> to vector<32x32xbf16>
    %cst_210 = arith.constant dense<0.000000e+00> : vector<8x32xf32>
    %489 = tpu.matmul %486, %488, %cst_210 {dimension_numbers = #tpu.dot_dimension_numbers<[1], [0], [0], [1], [0, 0, 1, 1], [], []>} : vector<8x32xbf16>, vector<32x32xbf16>, vector<8x32xf32> -> vector<8x32xf32>
    %c1_211 = arith.constant 1 : index
    %c0_212 = arith.constant 0 : index
    %c0_213 = arith.constant 0 : index
    %490 = vector.load %arg14[%c1_211, %c0_212, %c0_213] : memref<2x1x32xf32, #tpu.memory_space<vmem>>, vector<1x1x32xf32>
    %491 = vector.shape_cast %490 : vector<1x1x32xf32> to vector<1x32xf32>
    %492 = vector.broadcast %491 : vector<1x32xf32> to vector<8x32xf32>
    %493 = arith.addf %489, %492 : vector<8x32xf32>
    %494 = arith.addf %402, %493 : vector<8x32xf32>
    %c1_214 = arith.constant 1 : index
    %c0_215 = arith.constant 0 : index
    %c0_216 = arith.constant 0 : index
    %495 = vector.load %arg15[%c1_214, %c0_215, %c0_216] : memref<2x1x32xf32, #tpu.memory_space<vmem>>, vector<1x1x32xf32>
    %496 = vector.shape_cast %495 : vector<1x1x32xf32> to vector<1x32xf32>
    %c1_217 = arith.constant 1 : index
    %c0_218 = arith.constant 0 : index
    %c0_219 = arith.constant 0 : index
    %497 = vector.load %arg16[%c1_217, %c0_218, %c0_219] : memref<2x1x32xf32, #tpu.memory_space<vmem>>, vector<1x1x32xf32>
    %498 = vector.shape_cast %497 : vector<1x1x32xf32> to vector<1x32xf32>
    %cst_220 = arith.constant dense<0.000000e+00> : vector<8xf32>
    %499 = vector.multi_reduction <add>, %494, %cst_220 [1] : vector<8x32xf32> to vector<8xf32>
    %500 = vector.shape_cast %499 : vector<8xf32> to vector<8x1xf32>
    %cst_221 = arith.constant 3.200000e+01 : f32
    %501 = vector.broadcast %cst_221 : f32 to vector<8x1xf32>
    %502 = arith.divf %500, %501 : vector<8x1xf32>
    %503 = vector.broadcast %502 : vector<8x1xf32> to vector<8x32xf32>
    %504 = arith.subf %494, %503 : vector<8x32xf32>
    %505 = arith.mulf %504, %504 : vector<8x32xf32>
    %cst_222 = arith.constant dense<0.000000e+00> : vector<8xf32>
    %506 = vector.multi_reduction <add>, %505, %cst_222 [1] : vector<8x32xf32> to vector<8xf32>
    %507 = vector.shape_cast %506 : vector<8xf32> to vector<8x1xf32>
    %cst_223 = arith.constant 3.200000e+01 : f32
    %508 = vector.broadcast %cst_223 : f32 to vector<8x1xf32>
    %509 = arith.divf %507, %508 : vector<8x1xf32>
    %510 = vector.broadcast %502 : vector<8x1xf32> to vector<8x32xf32>
    %511 = arith.subf %494, %510 : vector<8x32xf32>
    %cst_224 = arith.constant 9.99999974E-6 : f32
    %512 = vector.broadcast %cst_224 : f32 to vector<8x1xf32>
    %513 = arith.addf %509, %512 : vector<8x1xf32>
    %514 = math.rsqrt %513 : vector<8x1xf32>
    %515 = vector.broadcast %514 : vector<8x1xf32> to vector<8x32xf32>
    %516 = arith.mulf %511, %515 : vector<8x32xf32>
    %517 = vector.broadcast %496 : vector<1x32xf32> to vector<8x32xf32>
    %518 = arith.mulf %516, %517 : vector<8x32xf32>
    %519 = vector.broadcast %498 : vector<1x32xf32> to vector<8x32xf32>
    %520 = arith.addf %518, %519 : vector<8x32xf32>
    %521 = arith.truncf %520 : vector<8x32xf32> to vector<8x32xbf16>
    %c1_225 = arith.constant 1 : index
    %c0_226 = arith.constant 0 : index
    %c0_227 = arith.constant 0 : index
    %522 = vector.load %arg17[%c1_225, %c0_226, %c0_227] : memref<2x32x64xbf16, #tpu.memory_space<vmem>>, vector<1x32x64xbf16>
    %523 = vector.shape_cast %522 : vector<1x32x64xbf16> to vector<32x64xbf16>
    %cst_228 = arith.constant dense<0.000000e+00> : vector<8x64xf32>
    %524 = tpu.matmul %521, %523, %cst_228 {dimension_numbers = #tpu.dot_dimension_numbers<[1], [0], [0], [1], [0, 0, 1, 1], [], []>} : vector<8x32xbf16>, vector<32x64xbf16>, vector<8x64xf32> -> vector<8x64xf32>
    %c1_229 = arith.constant 1 : index
    %c0_230 = arith.constant 0 : index
    %c0_231 = arith.constant 0 : index
    %525 = vector.load %arg18[%c1_229, %c0_230, %c0_231] : memref<2x1x64xf32, #tpu.memory_space<vmem>>, vector<1x1x64xf32>
    %526 = vector.shape_cast %525 : vector<1x1x64xf32> to vector<1x64xf32>
    %527 = vector.broadcast %526 : vector<1x64xf32> to vector<8x64xf32>
    %528 = arith.addf %524, %527 : vector<8x64xf32>
    %cst_232 = arith.constant 0.000000e+00 : f32
    %529 = vector.broadcast %cst_232 : f32 to vector<8x64xf32>
    %530 = arith.maximumf %528, %529 : vector<8x64xf32>
    %531 = arith.truncf %530 : vector<8x64xf32> to vector<8x64xbf16>
    %c1_233 = arith.constant 1 : index
    %c0_234 = arith.constant 0 : index
    %c0_235 = arith.constant 0 : index
    %532 = vector.load %arg19[%c1_233, %c0_234, %c0_235] : memref<2x64x32xbf16, #tpu.memory_space<vmem>>, vector<1x64x32xbf16>
    %533 = vector.shape_cast %532 : vector<1x64x32xbf16> to vector<64x32xbf16>
    %cst_236 = arith.constant dense<0.000000e+00> : vector<8x32xf32>
    %534 = tpu.matmul %531, %533, %cst_236 {dimension_numbers = #tpu.dot_dimension_numbers<[1], [0], [0], [1], [0, 0, 1, 1], [], []>} : vector<8x64xbf16>, vector<64x32xbf16>, vector<8x32xf32> -> vector<8x32xf32>
    %c1_237 = arith.constant 1 : index
    %c0_238 = arith.constant 0 : index
    %c0_239 = arith.constant 0 : index
    %535 = vector.load %arg20[%c1_237, %c0_238, %c0_239] : memref<2x1x32xf32, #tpu.memory_space<vmem>>, vector<1x1x32xf32>
    %536 = vector.shape_cast %535 : vector<1x1x32xf32> to vector<1x32xf32>
    %537 = vector.broadcast %536 : vector<1x32xf32> to vector<8x32xf32>
    %538 = arith.addf %534, %537 : vector<8x32xf32>
    %539 = arith.addf %520, %538 : vector<8x32xf32>
    %c1_240 = arith.constant 1 : index
    %c0_241 = arith.constant 0 : index
    %c0_242 = arith.constant 0 : index
    %540 = vector.load %arg21[%c1_240, %c0_241, %c0_242] : memref<2x1x32xf32, #tpu.memory_space<vmem>>, vector<1x1x32xf32>
    %541 = vector.shape_cast %540 : vector<1x1x32xf32> to vector<1x32xf32>
    %c1_243 = arith.constant 1 : index
    %c0_244 = arith.constant 0 : index
    %c0_245 = arith.constant 0 : index
    %542 = vector.load %arg22[%c1_243, %c0_244, %c0_245] : memref<2x1x32xf32, #tpu.memory_space<vmem>>, vector<1x1x32xf32>
    %543 = vector.shape_cast %542 : vector<1x1x32xf32> to vector<1x32xf32>
    %cst_246 = arith.constant dense<0.000000e+00> : vector<8xf32>
    %544 = vector.multi_reduction <add>, %539, %cst_246 [1] : vector<8x32xf32> to vector<8xf32>
    %545 = vector.shape_cast %544 : vector<8xf32> to vector<8x1xf32>
    %cst_247 = arith.constant 3.200000e+01 : f32
    %546 = vector.broadcast %cst_247 : f32 to vector<8x1xf32>
    %547 = arith.divf %545, %546 : vector<8x1xf32>
    %548 = vector.broadcast %547 : vector<8x1xf32> to vector<8x32xf32>
    %549 = arith.subf %539, %548 : vector<8x32xf32>
    %550 = arith.mulf %549, %549 : vector<8x32xf32>
    %cst_248 = arith.constant dense<0.000000e+00> : vector<8xf32>
    %551 = vector.multi_reduction <add>, %550, %cst_248 [1] : vector<8x32xf32> to vector<8xf32>
    %552 = vector.shape_cast %551 : vector<8xf32> to vector<8x1xf32>
    %cst_249 = arith.constant 3.200000e+01 : f32
    %553 = vector.broadcast %cst_249 : f32 to vector<8x1xf32>
    %554 = arith.divf %552, %553 : vector<8x1xf32>
    %555 = vector.broadcast %547 : vector<8x1xf32> to vector<8x32xf32>
    %556 = arith.subf %539, %555 : vector<8x32xf32>
    %cst_250 = arith.constant 9.99999974E-6 : f32
    %557 = vector.broadcast %cst_250 : f32 to vector<8x1xf32>
    %558 = arith.addf %554, %557 : vector<8x1xf32>
    %559 = math.rsqrt %558 : vector<8x1xf32>
    %560 = vector.broadcast %559 : vector<8x1xf32> to vector<8x32xf32>
    %561 = arith.mulf %556, %560 : vector<8x32xf32>
    %562 = vector.broadcast %541 : vector<1x32xf32> to vector<8x32xf32>
    %563 = arith.mulf %561, %562 : vector<8x32xf32>
    %564 = vector.broadcast %543 : vector<1x32xf32> to vector<8x32xf32>
    %565 = arith.addf %563, %564 : vector<8x32xf32>
    %c0_251 = arith.constant 0 : index
    %c0_252 = arith.constant 0 : index
    %566 = vector.load %arg23[%c0_251, %c0_252] : memref<1x32xf32, #tpu.memory_space<vmem>>, vector<1x32xf32>
    %c0_253 = arith.constant 0 : index
    %c0_254 = arith.constant 0 : index
    %567 = vector.load %arg24[%c0_253, %c0_254] : memref<1x32xf32, #tpu.memory_space<vmem>>, vector<1x32xf32>
    %cst_255 = arith.constant dense<0.000000e+00> : vector<8xf32>
    %568 = vector.multi_reduction <add>, %565, %cst_255 [1] : vector<8x32xf32> to vector<8xf32>
    %569 = vector.shape_cast %568 : vector<8xf32> to vector<8x1xf32>
    %cst_256 = arith.constant 3.200000e+01 : f32
    %570 = vector.broadcast %cst_256 : f32 to vector<8x1xf32>
    %571 = arith.divf %569, %570 : vector<8x1xf32>
    %572 = vector.broadcast %571 : vector<8x1xf32> to vector<8x32xf32>
    %573 = arith.subf %565, %572 : vector<8x32xf32>
    %574 = arith.mulf %573, %573 : vector<8x32xf32>
    %cst_257 = arith.constant dense<0.000000e+00> : vector<8xf32>
    %575 = vector.multi_reduction <add>, %574, %cst_257 [1] : vector<8x32xf32> to vector<8xf32>
    %576 = vector.shape_cast %575 : vector<8xf32> to vector<8x1xf32>
    %cst_258 = arith.constant 3.200000e+01 : f32
    %577 = vector.broadcast %cst_258 : f32 to vector<8x1xf32>
    %578 = arith.divf %576, %577 : vector<8x1xf32>
    %579 = vector.broadcast %571 : vector<8x1xf32> to vector<8x32xf32>
    %580 = arith.subf %565, %579 : vector<8x32xf32>
    %cst_259 = arith.constant 9.99999974E-6 : f32
    %581 = vector.broadcast %cst_259 : f32 to vector<8x1xf32>
    %582 = arith.addf %578, %581 : vector<8x1xf32>
    %583 = math.rsqrt %582 : vector<8x1xf32>
    %584 = vector.broadcast %583 : vector<8x1xf32> to vector<8x32xf32>
    %585 = arith.mulf %580, %584 : vector<8x32xf32>
    %586 = vector.broadcast %566 : vector<1x32xf32> to vector<8x32xf32>
    %587 = arith.mulf %585, %586 : vector<8x32xf32>
    %588 = vector.broadcast %567 : vector<1x32xf32> to vector<8x32xf32>
    %589 = arith.addf %587, %588 : vector<8x32xf32>
    %590 = arith.truncf %589 : vector<8x32xf32> to vector<8x32xbf16>
    %c0_260 = arith.constant 0 : index
    %c0_261 = arith.constant 0 : index
    %591 = vector.load %arg25[%c0_260, %c0_261] : memref<32x128xbf16, #tpu.memory_space<vmem>>, vector<32x128xbf16>
    %cst_262 = arith.constant dense<0.000000e+00> : vector<8x128xf32>
    %592 = tpu.matmul %590, %591, %cst_262 {dimension_numbers = #tpu.dot_dimension_numbers<[1], [0], [0], [1], [0, 0, 1, 1], [], []>} : vector<8x32xbf16>, vector<32x128xbf16>, vector<8x128xf32> -> vector<8x128xf32>
    %c0_263 = arith.constant 0 : index
    %c0_264 = arith.constant 0 : index
    %593 = vector.load %arg26[%c0_263, %c0_264] : memref<1x128xf32, #tpu.memory_space<vmem>>, vector<1x128xf32>
    %594 = vector.broadcast %593 : vector<1x128xf32> to vector<8x128xf32>
    %595 = arith.addf %592, %594 : vector<8x128xf32>
    %c0_265 = arith.constant 0 : index
    %c0_266 = arith.constant 0 : index
    %c0_267 = arith.constant 0 : index
    %596 = vector.load %arg27[%c0_265, %c0_266, %c0_267] : memref<1x8x128xf32, #tpu.memory_space<vmem>>, vector<1x8x128xf32>
    %597 = vector.shape_cast %596 : vector<1x8x128xf32> to vector<8x128xf32>
    %598 = vector.shape_cast %595 : vector<8x128xf32> to vector<1x8x128xf32>
    tpu.vector_store %arg27[%c0_265, %c0_266, %c0_267], %598 {strides = array<i32>} : memref<1x8x128xf32, #tpu.memory_space<vmem>>, vector<1x8x128xf32>,
    return
  }
  func.func @transform_0(%arg0: i32) -> (i32, i32, i32) {
    %c0_i32 = arith.constant 0 : i32
    %c0_i32_0 = arith.constant 0 : i32
    %c0_i32_1 = arith.constant 0 : i32
    return %arg0, %c0_i32, %c0_i32_0 : i32, i32, i32
  }
  func.func @transform_1(%arg0: i32) -> (i32, i32, i32) {
    %c0_i32 = arith.constant 0 : i32
    %c0_i32_0 = arith.constant 0 : i32
    %c0_i32_1 = arith.constant 0 : i32
    return %arg0, %c0_i32, %c0_i32_0 : i32, i32, i32
  }
  func.func @transform_2(%arg0: i32) -> (i32, i32, i32) {
    %c0_i32 = arith.constant 0 : i32
    %c0_i32_0 = arith.constant 0 : i32
    %c0_i32_1 = arith.constant 0 : i32
    %c0_i32_2 = arith.constant 0 : i32
    return %c0_i32, %c0_i32_0, %c0_i32_1 : i32, i32, i32
  }
  func.func @transform_3(%arg0: i32) -> (i32, i32, i32) {
    %c0_i32 = arith.constant 0 : i32
    %c0_i32_0 = arith.constant 0 : i32
    %c0_i32_1 = arith.constant 0 : i32
    %c0_i32_2 = arith.constant 0 : i32
    return %c0_i32, %c0_i32_0, %c0_i32_1 : i32, i32, i32
  }
  func.func @transform_4(%arg0: i32) -> (i32, i32, i32) {
    %c0_i32 = arith.constant 0 : i32
    %c0_i32_0 = arith.constant 0 : i32
    %c0_i32_1 = arith.constant 0 : i32
    %c0_i32_2 = arith.constant 0 : i32
    return %c0_i32, %c0_i32_0, %c0_i32_1 : i32, i32, i32
  }
  func.func @transform_5(%arg0: i32) -> (i32, i32, i32) {
    %c0_i32 = arith.constant 0 : i32
    %c0_i32_0 = arith.constant 0 : i32
    %c0_i32_1 = arith.constant 0 : i32
    %c0_i32_2 = arith.constant 0 : i32
    return %c0_i32, %c0_i32_0, %c0_i32_1 : i32, i32, i32
  }
  func.func @transform_6(%arg0: i32) -> (i32, i32, i32) {
    %c0_i32 = arith.constant 0 : i32
    %c0_i32_0 = arith.constant 0 : i32
    %c0_i32_1 = arith.constant 0 : i32
    %c0_i32_2 = arith.constant 0 : i32
    return %c0_i32, %c0_i32_0, %c0_i32_1 : i32, i32, i32
  }
  func.func @transform_7(%arg0: i32) -> (i32, i32, i32) {
    %c0_i32 = arith.constant 0 : i32
    %c0_i32_0 = arith.constant 0 : i32
    %c0_i32_1 = arith.constant 0 : i32
    %c0_i32_2 = arith.constant 0 : i32
    return %c0_i32, %c0_i32_0, %c0_i32_1 : i32, i32, i32
  }
  func.func @transform_8(%arg0: i32) -> (i32, i32, i32) {
    %c0_i32 = arith.constant 0 : i32
    %c0_i32_0 = arith.constant 0 : i32
    %c0_i32_1 = arith.constant 0 : i32
    %c0_i32_2 = arith.constant 0 : i32
    return %c0_i32, %c0_i32_0, %c0_i32_1 : i32, i32, i32
  }
  func.func @transform_9(%arg0: i32) -> (i32, i32, i32) {
    %c0_i32 = arith.constant 0 : i32
    %c0_i32_0 = arith.constant 0 : i32
    %c0_i32_1 = arith.constant 0 : i32
    %c0_i32_2 = arith.constant 0 : i32
    return %c0_i32, %c0_i32_0, %c0_i32_1 : i32, i32, i32
  }
  func.func @transform_10(%arg0: i32) -> (i32, i32, i32) {
    %c0_i32 = arith.constant 0 : i32
    %c0_i32_0 = arith.constant 0 : i32
    %c0_i32_1 = arith.constant 0 : i32
    %c0_i32_2 = arith.constant 0 : i32
    return %c0_i32, %c0_i32_0, %c0_i32_1 : i32, i32, i32
  }
  func.func @transform_11(%arg0: i32) -> (i32, i32, i32) {
    %c0_i32 = arith.constant 0 : i32
    %c0_i32_0 = arith.constant 0 : i32
    %c0_i32_1 = arith.constant 0 : i32
    %c0_i32_2 = arith.constant 0 : i32
    return %c0_i32, %c0_i32_0, %c0_i32_1 : i32, i32, i32
  }
  func.func @transform_12(%arg0: i32) -> (i32, i32, i32) {
    %c0_i32 = arith.constant 0 : i32
    %c0_i32_0 = arith.constant 0 : i32
    %c0_i32_1 = arith.constant 0 : i32
    %c0_i32_2 = arith.constant 0 : i32
    return %c0_i32, %c0_i32_0, %c0_i32_1 : i32, i32, i32
  }
  func.func @transform_13(%arg0: i32) -> (i32, i32, i32) {
    %c0_i32 = arith.constant 0 : i32
    %c0_i32_0 = arith.constant 0 : i32
    %c0_i32_1 = arith.constant 0 : i32
    %c0_i32_2 = arith.constant 0 : i32
    return %c0_i32, %c0_i32_0, %c0_i32_1 : i32, i32, i32
  }
  func.func @transform_14(%arg0: i32) -> (i32, i32, i32) {
    %c0_i32 = arith.constant 0 : i32
    %c0_i32_0 = arith.constant 0 : i32
    %c0_i32_1 = arith.constant 0 : i32
    %c0_i32_2 = arith.constant 0 : i32
    return %c0_i32, %c0_i32_0, %c0_i32_1 : i32, i32, i32
  }
  func.func @transform_15(%arg0: i32) -> (i32, i32, i32) {
    %c0_i32 = arith.constant 0 : i32
    %c0_i32_0 = arith.constant 0 : i32
    %c0_i32_1 = arith.constant 0 : i32
    %c0_i32_2 = arith.constant 0 : i32
    return %c0_i32, %c0_i32_0, %c0_i32_1 : i32, i32, i32
  }
  func.func @transform_16(%arg0: i32) -> (i32, i32, i32) {
    %c0_i32 = arith.constant 0 : i32
    %c0_i32_0 = arith.constant 0 : i32
    %c0_i32_1 = arith.constant 0 : i32
    %c0_i32_2 = arith.constant 0 : i32
    return %c0_i32, %c0_i32_0, %c0_i32_1 : i32, i32, i32
  }
  func.func @transform_17(%arg0: i32) -> (i32, i32, i32) {
    %c0_i32 = arith.constant 0 : i32
    %c0_i32_0 = arith.constant 0 : i32
    %c0_i32_1 = arith.constant 0 : i32
    %c0_i32_2 = arith.constant 0 : i32
    return %c0_i32, %c0_i32_0, %c0_i32_1 : i32, i32, i32
  }
  func.func @transform_18(%arg0: i32) -> (i32, i32, i32) {
    %c0_i32 = arith.constant 0 : i32
    %c0_i32_0 = arith.constant 0 : i32
    %c0_i32_1 = arith.constant 0 : i32
    %c0_i32_2 = arith.constant 0 : i32
    return %c0_i32, %c0_i32_0, %c0_i32_1 : i32, i32, i32
  }
  func.func @transform_19(%arg0: i32) -> (i32, i32, i32) {
    %c0_i32 = arith.constant 0 : i32
    %c0_i32_0 = arith.constant 0 : i32
    %c0_i32_1 = arith.constant 0 : i32
    %c0_i32_2 = arith.constant 0 : i32
    return %c0_i32, %c0_i32_0, %c0_i32_1 : i32, i32, i32
  }
  func.func @transform_20(%arg0: i32) -> (i32, i32, i32) {
    %c0_i32 = arith.constant 0 : i32
    %c0_i32_0 = arith.constant 0 : i32
    %c0_i32_1 = arith.constant 0 : i32
    %c0_i32_2 = arith.constant 0 : i32
    return %c0_i32, %c0_i32_0, %c0_i32_1 : i32, i32, i32
  }
  func.func @transform_21(%arg0: i32) -> (i32, i32, i32) {
    %c0_i32 = arith.constant 0 : i32
    %c0_i32_0 = arith.constant 0 : i32
    %c0_i32_1 = arith.constant 0 : i32
    %c0_i32_2 = arith.constant 0 : i32
    return %c0_i32, %c0_i32_0, %c0_i32_1 : i32, i32, i32
  }
  func.func @transform_22(%arg0: i32) -> (i32, i32) {
    %c0_i32 = arith.constant 0 : i32
    %c0_i32_0 = arith.constant 0 : i32
    %c0_i32_1 = arith.constant 0 : i32
    return %c0_i32, %c0_i32_0 : i32, i32
  }
  func.func @transform_23(%arg0: i32) -> (i32, i32) {
    %c0_i32 = arith.constant 0 : i32
    %c0_i32_0 = arith.constant 0 : i32
    %c0_i32_1 = arith.constant 0 : i32
    return %c0_i32, %c0_i32_0 : i32, i32
  }
  func.func @transform_24(%arg0: i32) -> (i32, i32) {
    %c0_i32 = arith.constant 0 : i32
    %c0_i32_0 = arith.constant 0 : i32
    %c0_i32_1 = arith.constant 0 : i32
    return %c0_i32, %c0_i32_0 : i32, i32
  }
  func.func @transform_25(%arg0: i32) -> (i32, i32) {
    %c0_i32 = arith.constant 0 : i32
    %c0_i32_0 = arith.constant 0 : i32
    %c0_i32_1 = arith.constant 0 : i32
    return %c0_i32, %c0_i32_0 : i32, i32
  }
  func.func @transform_26(%arg0: i32) -> (i32, i32, i32) {
    %c0_i32 = arith.constant 0 : i32
    %c0_i32_0 = arith.constant 0 : i32
    %c0_i32_1 = arith.constant 0 : i32
    return %arg0, %c0_i32, %c0_i32_0 : i32, i32, i32
  }
}

</mosaic_0001>

<bundles_post_ra>
// kernel: fwd.2
= control target key start
LH: loop header
LB: loop body
LE: loop exit
PB: predicated region body
PF: predicated region fallthrough
CT: control target
= control target key end

     0   :  { %s3219_s21 = smov 0   ;;  %s3589_s0 = inlined_call_operand.vmem [shape: f32[2,1,8], index: 0, kind: input, shape index: {}]   ;;  %s3590_s1 = inlined_call_operand.vmem [shape: f32[2,8,32], index: 1, kind: input, shape index: {}]   ;;  %s3591_s2 = inlined_call_operand.vmem [shape: bf16[2,32,96], index: 2, kind: input, shape index: {}]   ;;  %s3592_s3 = inlined_call_operand.vmem [shape: f32[2,1,96], index: 3, kind: input, shape index: {}]   ;;  %s3593_s4 = inlined_call_operand.vmem [shape: bf16[2,32,32], index: 4, kind: input, shape index: {}]   ;;  %s3594_s5 = inlined_call_operand.vmem [shape: f32[2,1,32], index: 5, kind: input, shape index: {}]   ;;  %s3595_s6 = inlined_call_operand.vmem [shape: f32[2,1,32], index: 6, kind: input, shape index: {}]   ;;  %s3596_s7 = inlined_call_operand.vmem [shape: f32[2,1,32], index: 7, kind: input, shape index: {}]   ;;  %s3597_s8 = inlined_call_operand.vmem [shape: bf16[2,32,64], index: 8, kind: input, shape index: {}]   ;;  %s3598_s9 = inlined_call_operand.vmem [shape: f32[2,1,64], index: 9, kind: input, shape index: {}]   ;;  %s3599_s10 = inlined_call_operand.vmem [shape: bf16[2,64,32], index: 10, kind: input, shape index: {}]   ;;  %s3600_s11 = inlined_call_operand.vmem [shape: f32[2,1,32], index: 11, kind: input, shape index: {}]   ;;  %s3601_s12 = inlined_call_operand.vmem [shape: f32[2,1,32], index: 12, kind: input, shape index: {}]   ;;  %s3602_s13 = inlined_call_operand.vmem [shape: f32[2,1,32], index: 13, kind: input, shape index: {}]   ;;  %s3603_s14 = inlined_call_operand.vmem [shape: f32[1,32], index: 14, kind: input, shape index: {}]   ;;  %s3604_s15 = inlined_call_operand.vmem [shape: f32[1,32], index: 15, kind: input, shape index: {}]   ;;  %s3605_s16 = inlined_call_operand.vmem [shape: f32[2,8,32], index: 16, kind: output, shape index: {}]  }
   0x1   :  { %3616 = sst [smem:[#allocation2_spill]] %s3589_s0 }
   0x2 LB: > { %s2704_s22 = sadd.s32 4294967295, %s3116_s21   ;;  %p2708_p0 = scmp.ge.s32.totalorder %s3116_s21, 1  ;;  %s3116_s21 = sphi %s3219_s21, %s26_s21  }
   0x3   : > { %p469_p1 = scmp.lt.s32.totalorder %s3116_s21, 3 }
   0x5   : > { %p470_p2 = pnand %p2708_p0, %p469_p1 }
   0x6   : > { %p520_p3 = scmp.lt.s32.totalorder (!%p470_p2), %s2704_s22, 1  ;;  %s3609_s18 = smov (!%p470_p2), 64  }
   0x7   : > { %473 = sbr.rel (%p470_p2) target bundleno = 5598 (0x15de), region = 84  ;;  %s3121_s19 = smov (!%p470_p2), 96  }
   0x8   : > { %s3122_s20 = smov (!%p470_p2), 88   ;;  %s3123_s23 = smov (!%p470_p2), 120  }
   0x9   : > { %s3615_s24 = smov (!%p470_p2), 80   ;;  %s3617_s28 = sld [smem:[#allocation2_spill]] (!%p470_p2) }
   0xa   : > { %s3126_s0 = smov (!%p470_p2), 112   ;;  %s3127_s17 = smov (!%p470_p2), 104  }
   0xb   : > { %s3610_s25 = smov (!%p470_p2), 56   ;;  %s3607_s26 = smov (!%p470_p2), 40  }
   0xc   : > { %v3048_v0 = vld [vmem:[%s3591_s2 + $0x8] sm:$0xff]   ;;  %v3118_v1 = vmov 0.0   ;;  %v3049_v2 = vld [vmem:[%s3591_s2] sm:$0xff]   ;;  %vm3119_vm0 = vmmov 0   ;;  %s3629_s22 = smov (!%p520_p3, %s2704_s22), 1  ;;  %vm558_vm1 = vcmask 261120  }
   0xd   : > { %2872 = vmatprep.subr.bf16.mxu0 %v3118_v1  ;;  %2885 = vmatprep.subr.mxu1 %v3118_v1  ;;  %s3606_s27 = sshll.u32 %s3629_s22, 3  ;;  %v2711_v5 = vld [vmem:[%s3592_s3] ss:$0 sm:$0xff]  ;;  %vm605_vm2 = vcmask 64512   ;;  %vm1289_vm3 = vcmask 130048   ;;  %vm1291_vm4 = vcmask 195584  }
   0xe   : > { %2873 = vmatpush3.bf16.msra.mxu0 %v3048_v0  ;;  %2876 = vmatprep.mubr.msk.bf16.mxu0 %vm3119_vm0, %v3118_v1  ;;  %s526_s30 = scalar_lea.vmem %s3590_s1, %s3606_s27  ;;  %s3611_s27 = smov 24   ;;  %vm1499_vm5 = vcmask 523264  }
   0xf   : > { %2874 = vmatprep.subr.bf16.mxu0 %v3118_v1  ;;  %2887 = vmatprep.mubr.msk.f32.mxu1 %vm3119_vm0, %v3118_v1  ;;  %v3249_v3 = vld [vmem:[%s526_s30] sm:$0xff]  ;;  %s522_s29 = scalar_lea.vmem %s3617_s28, %s3629_s22  ;;  %s3614_s30 = smov 72  }
  0x10   : > { %v534_v4 = vpack.c.bf16 %v3249_v3, %v3249_v3  ;;  %v3282_v13 = vld [vmem:[%s522_s29] ss:$0 sm:$0xff]  ;;  %s3608_s28 = smov 48  }
  0x12   : > { %2875 = vmatpush3.bf16.msra.mxu0 %v3049_v2 }
  0x13   : > { %2880 = vmatprep.subr.mxu0 %v3118_v1 }
  0x15   : > { %2877 = vmatmul.mubr.msk.bf16.vlgmr.msra.gmra.mxu0 %vm558_vm1, %v534_v4 }
  0x16   : > { %2882 = vmatprep.mubr.msk.f32.mxu0 %vm3119_vm0, %v3118_v1 }
  0xd5   : > { %v596_v6 = vpop.f32.mrf.mxu0 }
  0xd6   : > { %v3259_v7 = vadd.f32 %v2711_v5, %v596_v6 }
  0xd7   : > { %v2878_v8 = vpop.f32.mrf.mxu0 }
  0xd8   : > { %699 = vrot.lane.b32.xlu1 %v3259_v7, %s3609_s18  ;;  %603 = vrot.lane.b32.xlu0 %v3259_v7, %s3121_s19  ;;  %s3613_s18 = smov 8  }
  0xd9   : > { %v599_v9 = vpop.f32.mrf.mxu0 }
  0xdb   : > { %v2879_v10 = vpop.f32.mrf.mxu0 }
  0xdc   : > { %777 = vrot.lane.b32.xlu1 %v3259_v7, %s3122_s20 }
  0xe0   : > { %775 = vrot.lane.b32.xlu1 %v3259_v7, %s3123_s23 }
  0xe4   : > { %944 = vrot.lane.b32.xlu1 %v3259_v7, %s3615_s24  ;;  %s3625_s24 = smov 16  }
 0x14a   : > { %v700_v11 = vpop.permute.xlu1 %699  ;;  %v604_v12 = vpop.permute.xlu0 %603 }
 0x14b   : > { %2881 = vmatpush3.xpose.msk.msra.mxu0 %vm605_vm2, %v604_v12  ;;  %2886 = vmatpush3.msra.mxu1 %v700_v11 }
 0x14c   : > { %2890 = vmatprep.subr.mxu1 %v3118_v1  ;;  %2895 = vmatprep.subr.mxu0 %v3118_v1 }
 0x14e   : > { %2883 = vmatmul.mubr.msk.f32.vlgmr.msra.gmra.mxu0 %vm605_vm2, %v3259_v7  ;;  %v778_v24 = vpop.permute.xlu1 %777 }
 0x14f   : > { %2897 = vmatprep.mubr.msk.f32.mxu0 %vm3119_vm0, %v3118_v1 }
 0x152   : > { %v776_v25 = vpop.permute.xlu1 %775 }
 0x156   : > { %v945_v26 = vpop.permute.xlu1 %944 }
 0x20e   : > { %v676_v14 = vpop.f32.mrf.mxu0 }
 0x20f   : > { %v680_v15 = vmul.f32 0.35355338, %v676_v14 }
 0x210   : > { %v2884_v16 = vpop.f32.mrf.mxu0 }
 0x211   : > { %v687_v17 = vadd.f32 %v3282_v13, %v680_v15  ;;  %v3050_v16 = vld [vmem:[%s3593_s4 + $0x8] sm:$0xff]  }
 0x213   : > { %v688_v18 = vsel %vm605_vm2, %v687_v17, -inf }
 0x214   : > { %689 = vmax.xlane.f32.xlu0 %v688_v18 }
 0x22a   : > { %1111 = vrot.lane.b32.xlu0 %v3259_v7, %s3614_s30  ;;  %s3626_s30 = smov 24  }
 0x29d   : > { %v690_v19 = vpop.xlane.xlu0 %689 }
 0x29e   : > { %v691_v20 = vsub.f32 %v687_v17, %v690_v19  ;;  %v3051_v17 = vld [vmem:[%s3593_s4] sm:$0xff]  }
 0x2a0   : > { %v692_v21 = vmul.f32 1.442695, %v691_v20 }
 0x2a1   : > { %v1112_v31 = vpop.permute.xlu0 %1111 }
 0x2a2   : > { %3068 = vpow2.f32 %v692_v21 }
 0x2af   : > { %v3069_v22 = vpop.eup %3068 }
 0x2b0   : > { %v694_v23 = vsel %vm605_vm2, %v3069_v22, 0.0 }
 0x2b1   : > { %695 = vadd.xlane.f32.xlu1 %v694_v23 }
 0x2c2   : > { %942 = vrot.lane.b32.xlu1 %v3259_v7, %s3126_s0 }
 0x2c6   : > { %1109 = vrot.lane.b32.xlu1 %v3259_v7, %s3127_s17 }
 0x33a   : > { %v696_v27 = vpop.xlane.xlu1 %695 }
 0x33b   : > { %3070 = vrcp.f32 %v696_v27 }
 0x33e   : > { %v943_v30 = vpop.permute.xlu1 %942 }
 0x342   : > { %v1110_v32 = vpop.permute.xlu1 %1109 }
 0x348   : > { %v3071_v28 = vpop.eup %3070 }
 0x349   : > { %v698_v29 = vmul.f32 %v3071_v28, %v3069_v22 }
 0x34b   : > { %2888 = vmatmul.mubr.msk.f32.vlgmr.msra.gmra.mxu1 %vm605_vm2, %v698_v29 }
 0x34c   : > { %2891 = vmatpush3.xpose.msk.msra.mxu1 %vm605_vm2, %v778_v24  ;;  %2892 = vmatprep.mubr.msk.f32.mxu1 %vm3119_vm0, %v3118_v1 }
 0x34d   : > { %2900 = vmatprep.subr.mxu1 %v3118_v1 }
 0x34f   : > { %2893 = vmatmul.mubr.msk.f32.vlgmr.msra.gmra.mxu1 %vm605_vm2, %v776_v25 }
 0x350   : > { %2901 = vmatpush3.xpose.msk.msra.mxu1 %vm605_vm2, %v945_v26  ;;  %2902 = vmatprep.mubr.msk.f32.mxu1 %vm3119_vm0, %v3118_v1 }
 0x351   : > { %2910 = vmatprep.subr.mxu1 %v3118_v1 }
 0x353   : > { %2903 = vmatmul.mubr.msk.f32.vlgmr.msra.gmra.mxu1 %vm605_vm2, %v943_v30 }
 0x354   : > { %2911 = vmatpush3.xpose.msk.msra.mxu1 %vm605_vm2, %v1112_v31  ;;  %2912 = vmatprep.mubr.msk.f32.mxu1 %vm3119_vm0, %v3118_v1  ;;  %v2728_v31 = vld [vmem:[%s3594_s5] ss:$0 sm:$0xff] }
 0x355   : > { %2920 = vmatprep.subr.bf16.mxu1 %v3118_v1 }
 0x357   : > { %2913 = vmatmul.mubr.msk.f32.vlgmr.msra.gmra.mxu1 %vm605_vm2, %v1110_v32 }
 0x358   : > { %2924 = vmatprep.mubr.msk.bf16.mxu1 %vm3119_vm0, %v3118_v1  ;;  %2921 = vmatpush3.bf16.msra.mxu1 %v3050_v16 }
 0x359   : > { %2922 = vmatprep.subr.bf16.mxu1 %v3118_v1 }
 0x35c   : > { %2923 = vmatpush3.bf16.msra.mxu1 %v3051_v17 }
 0x35d   : > { %2936 = vmatprep.subr.bf16.mxu1 %v3118_v1 }
 0x40b   : > { %v3311_v33 = vpop.f32.mrf.mxu1 }
 0x40d   : > { %v2889_v34 = vpop.f32.mrf.mxu1 }
 0x40f   : > { %v849_v35 = vpop.f32.mrf.mxu1 }
 0x410   : > { %v853_v36 = vmul.f32 0.35355338, %v849_v35 }
 0x411   : > { %v2894_v37 = vpop.f32.mrf.mxu1 }
 0x412   : > { %v854_v38 = vadd.f32 %v3282_v13, %v853_v36 }
 0x413   : > { %v1016_v39 = vpop.f32.mrf.mxu1 }
 0x414   : > { %v1020_v40 = vmul.f32 0.35355338, %v1016_v39  ;;  %v855_v41 = vsel %vm605_vm2, %v854_v38, -inf }
 0x415   : > { %856 = vmax.xlane.f32.xlu1 %v855_v41  ;;  %v2904_v42 = vpop.f32.mrf.mxu1 }
 0x416   : > { %v1021_v43 = vadd.f32 %v3282_v13, %v1020_v40 }
 0x417   : > { %v1183_v44 = vpop.f32.mrf.mxu1 }
 0x418   : > { %v1187_v45 = vmul.f32 0.35355338, %v1183_v44  ;;  %v1022_v46 = vsel %vm605_vm2, %v1021_v43, -inf  ;;  %v3052_v44 = vld [vmem:[%s3597_s8 + $0x8] sm:$0xff]  }
 0x419   : > { %1023 = vmax.xlane.f32.xlu0 %v1022_v46  ;;  %v2914_v47 = vpop.f32.mrf.mxu1  ;;  %v3055_v46 = vld [vmem:[%s3599_s10 + $0x10] sm:$0xff]  }
 0x41a   : > { %v1188_v48 = vadd.f32 %v3282_v13, %v1187_v45  ;;  %v3054_v45 = vld [vmem:[%s3599_s10 + $0x18] sm:$0xff]  }
 0x41c   : > { %v1189_v49 = vsel %vm605_vm2, %v1188_v48, -inf }
 0x41d   : > { %1190 = vmax.xlane.f32.xlu1 %v1189_v49 }
 0x42e   : > { %866 = vrot.lane.b32.xlu1 %v3259_v7, %s3610_s25  ;;  %s3612_s25 = smov 16  }
 0x49e   : > { %v857_v50 = vpop.xlane.xlu1 %856 }
 0x49f   : > { %v858_v51 = vsub.f32 %v854_v38, %v857_v50 }
 0x4a1   : > { %v859_v52 = vmul.f32 1.442695, %v858_v51  ;;  %v2732_v51 = vld [vmem:[%s3595_s6] ss:$0 sm:$0xff] }
 0x4a2   : > { %v1024_v53 = vpop.xlane.xlu0 %1023 }
 0x4a3   : > { %3072 = vpow2.f32 %v859_v52  ;;  %v1025_v54 = vsub.f32 %v1021_v43, %v1024_v53  ;;  %v2733_v53 = vld [vmem:[%s3596_s7] ss:$0 sm:$0xff] }
 0x4a5   : > { %v1026_v55 = vmul.f32 1.442695, %v1025_v54 }
 0x4a6   : > { %v1191_v56 = vpop.xlane.xlu1 %1190 }
 0x4a7   : > { %3074 = vpow2.f32 %v1026_v55  ;;  %v1192_v57 = vsub.f32 %v1188_v48, %v1191_v56 }
 0x4a9   : > { %v1193_v58 = vmul.f32 1.442695, %v1192_v57  ;;  %v3056_v57 = vld [vmem:[%s3599_s10 + $0x8] sm:$0xff]  }
 0x4aa   : > { %v867_v59 = vpop.permute.xlu1 %866 }
 0x4ab   : > { %3076 = vpow2.f32 %v1193_v58  ;;  %2896 = vmatpush3.msra.mxu0 %v867_v59  ;;  %v3057_v58 = vld [vmem:[%s3599_s10] sm:$0xff]  }
 0x4ac   : > { %2905 = vmatprep.subr.mxu0 %v3118_v1  ;;  %v2734_v59 = vld [vmem:[%s3598_s9] ss:$0 sm:$0xff] }
 0x4b0   : > { %v3073_v60 = vpop.eup %3072 }
 0x4b1   : > { %v861_v61 = vsel %vm605_vm2, %v3073_v60, 0.0 }
 0x4b2   : > { %862 = vadd.xlane.f32.xlu1 %v861_v61 }
 0x4b4   : > { %v3075_v62 = vpop.eup %3074 }
 0x4b5   : > { %v1028_v63 = vsel %vm605_vm2, %v3075_v62, 0.0 }
 0x4b6   : > { %1029 = vadd.xlane.f32.xlu1 %v1028_v63 }
 0x4b8   : > { %v3077_v0 = vpop.eup %3076 }
 0x4b9   : > { %v1195_v2 = vsel %vm605_vm2, %v3077_v0, 0.0 }
 0x4ba   : > { %1196 = vadd.xlane.f32.xlu0 %v1195_v2 }
 0x4c7   : > { %1200 = vrot.lane.b32.xlu1 %v3259_v7, %s3607_s26  ;;  %s3618_s26 = smov 80  }
 0x4d0   : > { %1033 = vrot.lane.b32.xlu0 %v3259_v7, %s3608_s28  ;;  %s3619_s28 = smov 72  }
 0x53b   : > { %v863_v4 = vpop.xlane.xlu1 %862 }
 0x53c   : > { %3078 = vrcp.f32 %v863_v4 }
 0x53f   : > { %v1030_v5 = vpop.xlane.xlu1 %1029 }
 0x540   : > { %3080 = vrcp.f32 %v1030_v5  ;;  %v2738_v5 = vld [vmem:[%s3600_s11] ss:$0 sm:$0xff] }
 0x543   : > { %v1197_v6 = vpop.xlane.xlu0 %1196  ;;  %v1201_v7 = vpop.permute.xlu1 %1200 }
 0x544   : > { %3082 = vrcp.f32 %v1197_v6 }
 0x547   : > { %v1034_v10 = vpop.permute.xlu0 %1033 }
 0x549   : > { %v3079_v8 = vpop.eup %3078 }
 0x54a   : > { %v865_v9 = vmul.f32 %v3079_v8, %v3073_v60 }
 0x54c   : > { %2898 = vmatmul.mubr.msk.f32.vlgmr.msra.gmra.mxu0 %vm605_vm2, %v865_v9 }
 0x54d   : > { %v3081_v11 = vpop.eup %3080  ;;  %2906 = vmatpush3.msra.mxu0 %v1034_v10  ;;  %2907 = vmatprep.mubr.msk.f32.mxu0 %vm3119_vm0, %v3118_v1 }
 0x54e   : > { %2915 = vmatprep.subr.mxu0 %v3118_v1  ;;  %v1032_v12 = vmul.f32 %v3081_v11, %v3075_v62 }
 0x550   : > { %2908 = vmatmul.mubr.msk.f32.vlgmr.msra.gmra.mxu0 %vm605_vm2, %v1032_v12 }
 0x551   : > { %v3083_v14 = vpop.eup %3082  ;;  %2916 = vmatpush3.msra.mxu0 %v1201_v7  ;;  %2917 = vmatprep.mubr.msk.f32.mxu0 %vm3119_vm0, %v3118_v1 }
 0x552   : > { %v1199_v15 = vmul.f32 %v3083_v14, %v3077_v0  ;;  %2928 = vmatprep.subr.bf16.mxu0 %v3118_v1 }
 0x554   : > { %2918 = vmatmul.mubr.msk.f32.vlgmr.msra.gmra.mxu0 %vm605_vm2, %v1199_v15 }
 0x555   : > { %2932 = vmatprep.mubr.msk.bf16.mxu0 %vm3119_vm0, %v3118_v1  ;;  %2929 = vmatpush3.bf16.msra.mxu0 %v3052_v44 }
 0x556   : > { %2930 = vmatprep.subr.bf16.mxu0 %v3118_v1 }
 0x60c   : > { %v938_v18 = vpop.f32.mrf.mxu0 }
 0x60d   : > { %1277 = vrot.lane.b32.xlu1 %v938_v18, %s3613_s18 }
 0x60e   : > { %v2899_v19 = vpop.f32.mrf.mxu0 }
 0x60f   : > { %v3058_v19 = vld [vmem:[%s3591_s2 + $0x18] sm:$0xff]  }
 0x610   : > { %v1105_v20 = vpop.f32.mrf.mxu0 }
 0x611   : > { %1281 = vrot.lane.b32.xlu0 %v1105_v20, %s3612_s25  ;;  %v3059_v20 = vld [vmem:[%s3591_s2 + $0x10] sm:$0xff]  }
 0x612   : > { %v2909_v21 = vpop.f32.mrf.mxu0 }
 0x614   : > { %v1272_v22 = vpop.f32.mrf.mxu0 }
 0x615   : > { %1285 = vrot.lane.b32.xlu1 %v1272_v22, %s3611_s27 }
 0x616   : > { %v2919_v23 = vpop.f32.mrf.mxu0 }
 0x67f   : > { %v1278_v24 = vpop.permute.xlu1 %1277 }
 0x680   : > { %v1288_v26 = vsel %vm605_vm2, %v3311_v33, %v1278_v24 }
 0x683   : > { %v1282_v25 = vpop.permute.xlu0 %1281 }
 0x684   : > { %v1290_v27 = vsel %vm1289_vm3, %v1288_v26, %v1282_v25  ;;  %v2744_v25 = vld [vmem:[%s3601_s12] ss:$0 sm:$0xff] }
 0x687   : > { %v1286_v28 = vpop.permute.xlu1 %1285 }
 0x688   : > { %v1292_v29 = vsel %vm1291_vm4, %v1290_v27, %v1286_v28  ;;  %v2745_v27 = vld [vmem:[%s3602_s13] ss:$0 sm:$0xff] }
 0x689   : > { %v1293_v30 = vpack.c.bf16 %v1292_v29, %v1292_v29 }
 0x68b   : > { %2925 = vmatmul.mubr.msk.bf16.vlgmr.msra.gmra.mxu1 %vm558_vm1, %v1293_v30 }
 0x68c   : > { %2944 = vmatprep.mubr.msk.bf16.mxu1 %vm3119_vm0, %v3118_v1  ;;  %2937 = vmatpush3.bf16.msra.mxu1 %v3054_v45 }
 0x68d   : > { %2938 = vmatprep.subr.bf16.mxu1 %v3118_v1 }
 0x690   : > { %2939 = vmatpush3.bf16.msra.mxu1 %v3055_v46 }
 0x691   : > { %2940 = vmatprep.subr.bf16.mxu1 %v3118_v1 }
 0x694   : > { %2941 = vmatpush3.bf16.msra.mxu1 %v3056_v57 }
 0x695   : > { %2942 = vmatprep.subr.bf16.mxu1 %v3118_v1 }
 0x698   : > { %2943 = vmatpush3.bf16.msra.mxu1 %v3057_v58 }
 0x699   : > { %2966 = vmatprep.subr.mxu1 %v3118_v1 }
 0x74b   : > { %v1354_v32 = vpop.f32.mrf.mxu1 }
 0x74c   : > { %v1355_v34 = vadd.f32 %v2728_v31, %v1354_v32  ;;  %v2751_v31 = vld [vmem:[%s3592_s3 + $0x1] ss:$0 sm:$0xff] }
 0x74d   : > { %v2926_v35 = vpop.f32.mrf.mxu1 }
 0x74e   : > { %v1360_v33 = vadd.f32 %v1355_v34, %v3249_v3  ;;  %v3053_v3 = vld [vmem:[%s3597_s8] sm:$0xff]  }
 0x74f   : > { %v1357_v36 = vpop.f32.mrf.mxu1  ;;  %2931 = vmatpush3.bf16.msra.mxu0 %v3053_v3 }
 0x750   : > { %v1363_v37 = vsel %vm558_vm1, %v1360_v33, 0.0  ;;  %2948 = vmatprep.subr.bf16.mxu0 %v3118_v1 }
 0x751   : > { %1364 = vadd.xlane.f32.xlu0 %v1363_v37  ;;  %v2927_v38 = vpop.f32.mrf.mxu1 }
 0x7da   : > { %v1365_v39 = vpop.xlane.xlu0 %1364 }
 0x7db   : > { %v1367_v40 = vmul.f32 0.03125, %v1365_v39 }
 0x7dd   : > { %v1368_v41 = vsub.f32 %v1360_v33, %v1367_v40 }
 0x7df   : > { %v1369_v42 = vmul.f32 %v1368_v41, %v1368_v41 }
 0x7e1   : > { %v1370_v43 = vsel %vm558_vm1, %v1369_v42, 0.0 }
 0x7e2   : > { %1371 = vadd.xlane.f32.xlu1 %v1370_v43 }
 0x86b   : > { %v1372_v47 = vpop.xlane.xlu1 %1371 }
 0x86c   : > { %v1373_v48 = vmul.f32 0.03125, %v1372_v47 }
 0x86e   : > { %v1374_v49 = vadd.f32 1e-05, %v1373_v48 }
 0x870   : > { %3084 = vrsqrt.f32 %v1374_v49 }
 0x87d   : > { %v3085_v50 = vpop.eup %3084 }
 0x87e   : > { %v1376_v52 = vmul.f32 %v3085_v50, %v1368_v41 }
 0x880   : > { %v1383_v54 = vmul.f32 %v2732_v51, %v1376_v52 }
 0x882   : > { %v1390_v55 = vadd.f32 %v2733_v53, %v1383_v54 }
 0x884   : > { %v1391_v56 = vpack.c.bf16 %v1390_v55, %v1390_v55 }
 0x886   : > { %2933 = vmatmul.mubr.msk.bf16.vlgmr.msra.gmra.mxu0 %vm558_vm1, %v1391_v56 }
 0x887   : > { %2952 = vmatprep.mubr.msk.bf16.mxu0 %vm3119_vm0, %v3118_v1  ;;  %2949 = vmatpush3.bf16.msra.mxu0 %v3058_v19 }
 0x888   : > { %2950 = vmatprep.subr.bf16.mxu0 %v3118_v1 }
 0x88b   : > { %2951 = vmatpush3.bf16.msra.mxu0 %v3059_v20 }
 0x88c   : > { %2956 = vmatprep.subr.mxu0 %v3118_v1 }
 0x946   : > { %v1452_v60 = vpop.f32.mrf.mxu0 }
 0x947   : > { %v1453_v61 = vadd.f32 %v2734_v59, %v1452_v60 }
 0x948   : > { %v2934_v62 = vpop.f32.mrf.mxu0 }
 0x949   : > { %v1458_v63 = vmax.f32 %v1453_v61, 0.0 }
 0x94a   : > { %v1455_v0 = vpop.f32.mrf.mxu0 }
 0x94b   : > { %v1459_v2 = vpack.c.bf16 %v1458_v63, %v1458_v63 }
 0x94c   : > { %v2935_v4 = vpop.f32.mrf.mxu0 }
 0x94d   : > { %2945 = vmatmul.mubr.msk.bf16.vlgmr.msra.gmra.mxu1 %vm1499_vm5, %v1459_v2 }
 0x94e   : > { %2968 = vmatprep.mubr.msk.f32.mxu1 %vm3119_vm0, %v3118_v1 }
 0xa0d   : > { %v1537_v6 = vpop.f32.mrf.mxu1 }
 0xa0e   : > { %v1538_v8 = vadd.f32 %v2738_v5, %v1537_v6 }
 0xa0f   : > { %v2946_v9 = vpop.f32.mrf.mxu1 }
 0xa10   : > { %v1543_v10 = vadd.f32 %v1538_v8, %v1390_v55 }
 0xa11   : > { %v1540_v11 = vpop.f32.mrf.mxu1 }
 0xa12   : > { %v1546_v12 = vsel %vm558_vm1, %v1543_v10, 0.0 }
 0xa13   : > { %1547 = vadd.xlane.f32.xlu0 %v1546_v12  ;;  %v2947_v7 = vpop.f32.mrf.mxu1 }
 0xa9c   : > { %v1548_v14 = vpop.xlane.xlu0 %1547 }
 0xa9d   : > { %v1549_v15 = vmul.f32 0.03125, %v1548_v14 }
 0xa9f   : > { %v1550_v16 = vsub.f32 %v1543_v10, %v1549_v15 }
 0xaa1   : > { %v1551_v17 = vmul.f32 %v1550_v16, %v1550_v16 }
 0xaa3   : > { %v1552_v18 = vsel %vm558_vm1, %v1551_v17, 0.0 }
 0xaa4   : > { %1553 = vadd.xlane.f32.xlu0 %v1552_v18 }
 0xb2d   : > { %v1554_v21 = vpop.xlane.xlu0 %1553 }
 0xb2e   : > { %v1555_v22 = vmul.f32 0.03125, %v1554_v21 }
 0xb30   : > { %v1556_v23 = vadd.f32 1e-05, %v1555_v22 }
 0xb32   : > { %3086 = vrsqrt.f32 %v1556_v23 }
 0xb3f   : > { %v3087_v24 = vpop.eup %3086 }
 0xb40   : > { %v1558_v26 = vmul.f32 %v3087_v24, %v1550_v16 }
 0xb42   : > { %v1565_v28 = vmul.f32 %v2744_v25, %v1558_v26 }
 0xb44   : > { %v3422_v29 = vadd.f32 %v2745_v27, %v1565_v28 }
 0xb46   : > { %v1573_v30 = vpack.c.bf16 %v3422_v29, %v3422_v29 }
 0xb48   : > { %2953 = vmatmul.mubr.msk.bf16.vlgmr.msra.gmra.mxu0 %vm558_vm1, %v1573_v30 }
 0xb49   : > { %2958 = vmatprep.mubr.msk.f32.mxu0 %vm3119_vm0, %v3118_v1 }
 0xc08   : > { %v1636_v32 = vpop.f32.mrf.mxu0 }
 0xc09   : > { %v3432_v34 = vadd.f32 %v2751_v31, %v1636_v32 }
 0xc0a   : > { %v2954_v35 = vpop.f32.mrf.mxu0 }
 0xc0b   : > { %1810 = vrot.lane.b32.xlu0 %v3432_v34, %s3122_s20  ;;  %1643 = vrot.lane.b32.xlu1 %v3432_v34, %s3121_s19  ;;  %s3620_s19 = smov 56   ;;  %s3621_s20 = smov 64  }
 0xc0c   : > { %v1639_v33 = vpop.f32.mrf.mxu0 }
 0xc0e   : > { %v2955_v36 = vpop.f32.mrf.mxu0 }
 0xc0f   : > { %1975 = vrot.lane.b32.xlu0 %v3432_v34, %s3126_s0  ;;  %1808 = vrot.lane.b32.xlu1 %v3432_v34, %s3123_s23  ;;  %s3622_s23 = smov 48   ;;  %s3623_s0 = smov 40  }
 0xc13   : > { %2142 = vrot.lane.b32.xlu0 %v3432_v34, %s3127_s17  ;;  %1977 = vrot.lane.b32.xlu1 %v3432_v34, %s3618_s26  ;;  %s3624_s17 = smov 8  }
 0xc17   : > { %2144 = vrot.lane.b32.xlu1 %v3432_v34, %s3619_s28 }
 0xc7d   : > { %v1811_v37 = vpop.permute.xlu0 %1810  ;;  %v1644_v38 = vpop.permute.xlu1 %1643 }
 0xc7e   : > { %2957 = vmatpush3.xpose.msk.msra.mxu0 %vm605_vm2, %v1644_v38  ;;  %2967 = vmatpush3.xpose.msk.msra.mxu1 %vm605_vm2, %v1811_v37 }
 0xc7f   : > { %2976 = vmatprep.subr.mxu1 %v3118_v1  ;;  %2961 = vmatprep.subr.mxu0 %v3118_v1 }
 0xc81   : > { %2959 = vmatmul.mubr.msk.f32.vlgmr.msra.gmra.mxu0 %vm605_vm2, %v3432_v34  ;;  %v1809_v39 = vpop.permute.xlu1 %1808  ;;  %v1976_v41 = vpop.permute.xlu0 %1975 }
 0xc82   : > { %2969 = vmatmul.mubr.msk.f32.vlgmr.msra.gmra.mxu1 %vm605_vm2, %v1809_v39  ;;  %2963 = vmatprep.mubr.msk.f32.mxu0 %vm3119_vm0, %v3118_v1 }
 0xc83   : > { %2978 = vmatprep.mubr.msk.f32.mxu1 %vm3119_vm0, %v3118_v1 }
 0xc85   : > { %v1978_v40 = vpop.permute.xlu1 %1977  ;;  %v2143_v43 = vpop.permute.xlu0 %2142 }
 0xc86   : > { %2977 = vmatpush3.xpose.msk.msra.mxu1 %vm605_vm2, %v1978_v40 }
 0xc87   : > { %2986 = vmatprep.subr.mxu1 %v3118_v1 }
 0xc89   : > { %2979 = vmatmul.mubr.msk.f32.vlgmr.msra.gmra.mxu1 %vm605_vm2, %v1976_v41  ;;  %v2145_v42 = vpop.permute.xlu1 %2144 }
 0xc8a   : > { %2987 = vmatpush3.xpose.msk.msra.mxu1 %vm605_vm2, %v2145_v42  ;;  %2988 = vmatprep.mubr.msk.f32.mxu1 %vm3119_vm0, %v3118_v1  ;;  %v3060_v42 = vld [vmem:[%s3593_s4 + $0x18] sm:$0xff]  }
 0xc8b   : > { %2996 = vmatprep.subr.bf16.mxu1 %v3118_v1 }
 0xc8d   : > { %2989 = vmatmul.mubr.msk.f32.vlgmr.msra.gmra.mxu1 %vm605_vm2, %v2143_v43  ;;  %v3061_v43 = vld [vmem:[%s3593_s4 + $0x10] sm:$0xff]  }
 0xc8e   : > { %3000 = vmatprep.mubr.msk.bf16.mxu1 %vm3119_vm0, %v3118_v1  ;;  %2997 = vmatpush3.bf16.msra.mxu1 %v3060_v42 }
 0xc8f   : > { %2998 = vmatprep.subr.bf16.mxu1 %v3118_v1 }
 0xc92   : > { %2999 = vmatpush3.bf16.msra.mxu1 %v3061_v43 }
 0xc93   : > { %3012 = vmatprep.subr.bf16.mxu1 %v3118_v1 }
 0xd41   : > { %v1715_v44 = vpop.f32.mrf.mxu0 }
 0xd42   : > { %v1719_v3 = vmul.f32 0.35355338, %v1715_v44  ;;  %v1882_v45 = vpop.f32.mrf.mxu1 }
 0xd43   : > { %v1886_v46 = vmul.f32 0.35355338, %v1882_v45  ;;  %v2960_v47 = vpop.f32.mrf.mxu0 }
 0xd44   : > { %v2970_v48 = vpop.f32.mrf.mxu1  ;;  %v1720_v49 = vadd.f32 %v3282_v13, %v1719_v3 }
 0xd45   : > { %v1887_v50 = vadd.f32 %v3282_v13, %v1886_v46 }
 0xd46   : > { %v1721_v51 = vsel %vm605_vm2, %v1720_v49, -inf }
 0xd47   : > { %1722 = vmax.xlane.f32.xlu1 %v1721_v51  ;;  %v1888_v52 = vsel %vm605_vm2, %v1887_v50, -inf }
 0xd48   : > { %1889 = vmax.xlane.f32.xlu0 %v1888_v52 }
 0xd49   : > { %v2049_v53 = vpop.f32.mrf.mxu1 }
 0xd4a   : > { %v2053_v54 = vmul.f32 0.35355338, %v2049_v53 }
 0xd4b   : > { %v2980_v55 = vpop.f32.mrf.mxu1 }
 0xd4c   : > { %v2054_v56 = vadd.f32 %v3282_v13, %v2053_v54  ;;  %v2772_v54 = vld [vmem:[%s3594_s5 + $0x1] ss:$0 sm:$0xff] }
 0xd4d   : > { %v2216_v57 = vpop.f32.mrf.mxu1 }
 0xd4e   : > { %v2220_v58 = vmul.f32 0.35355338, %v2216_v57  ;;  %v2055_v59 = vsel %vm605_vm2, %v2054_v56, -inf }
 0xd4f   : > { %2056 = vmax.xlane.f32.xlu0 %v2055_v59  ;;  %v2990_v60 = vpop.f32.mrf.mxu1 }
 0xd50   : > { %v2221_v61 = vadd.f32 %v3282_v13, %v2220_v58 }
 0xd52   : > { %v2222_v62 = vsel %vm605_vm2, %v2221_v61, -inf }
 0xd53   : > { %2223 = vmax.xlane.f32.xlu1 %v2222_v62 }
 0xd64   : > { %1899 = vrot.lane.b32.xlu1 %v3432_v34, %s3620_s19 }
 0xdd0   : > { %v1723_v63 = vpop.xlane.xlu1 %1722 }
 0xdd1   : > { %v1724_v0 = vsub.f32 %v1720_v49, %v1723_v63  ;;  %v1890_v2 = vpop.xlane.xlu0 %1889 }
 0xdd2   : > { %v1891_v4 = vsub.f32 %v1887_v50, %v1890_v2 }
 0xdd3   : > { %v1725_v5 = vmul.f32 1.442695, %v1724_v0 }
 0xdd4   : > { %v1892_v6 = vmul.f32 1.442695, %v1891_v4 }
 0xdd5   : > { %3088 = vpow2.f32 %v1725_v5  ;;  %v3062_v5 = vld [vmem:[%s3597_s8 + $0x18] sm:$0xff]  }
 0xdd6   : > { %3090 = vpow2.f32 %v1892_v6  ;;  %v3064_v6 = vld [vmem:[%s3599_s10 + $0x38] sm:$0xff]  }
 0xdd8   : > { %v2057_v16 = vpop.xlane.xlu0 %2056 }
 0xdd9   : > { %v2058_v17 = vsub.f32 %v2054_v56, %v2057_v16 }
 0xddb   : > { %v2059_v18 = vmul.f32 1.442695, %v2058_v17 }
 0xddc   : > { %v2224_v8 = vpop.xlane.xlu1 %2223 }
 0xddd   : > { %v2225_v9 = vsub.f32 %v2221_v61, %v2224_v8  ;;  %v3065_v8 = vld [vmem:[%s3599_s10 + $0x30] sm:$0xff]  }
 0xddf   : > { %v2226_v10 = vmul.f32 1.442695, %v2225_v9 }
 0xde0   : > { %v1900_v21 = vpop.permute.xlu1 %1899 }
 0xde1   : > { %3092 = vpow2.f32 %v2226_v10 }
 0xde2   : > { %v3089_v11 = vpop.eup %3088  ;;  %3094 = vpow2.f32 %v2059_v18  ;;  %v3066_v18 = vld [vmem:[%s3599_s10 + $0x28] sm:$0xff]  }
 0xde3   : > { %v3091_v13 = vpop.eup %3090  ;;  %v1727_v12 = vsel %vm605_vm2, %v3089_v11, 0.0 }
 0xde4   : > { %1728 = vadd.xlane.f32.xlu0 %v1727_v12  ;;  %v1894_v7 = vsel %vm605_vm2, %v3091_v13, 0.0  ;;  %v2778_v12 = vld [vmem:[%s3595_s6 + $0x1] ss:$0 sm:$0xff] }
 0xde5   : > { %1895 = vadd.xlane.f32.xlu1 %v1894_v7 }
 0xdee   : > { %v3093_v14 = vpop.eup %3092 }
 0xdef   : > { %v2228_v15 = vsel %vm605_vm2, %v3093_v14, 0.0  ;;  %v3095_v19 = vpop.eup %3094 }
 0xdf0   : > { %2229 = vadd.xlane.f32.xlu1 %v2228_v15  ;;  %v2061_v20 = vsel %vm605_vm2, %v3095_v19, 0.0 }
 0xdfa   : > { %1732 = vrot.lane.b32.xlu0 %v3432_v34, %s3621_s20 }
 0xe01   : > { %2066 = vrot.lane.b32.xlu1 %v3432_v34, %s3622_s23  ;;  %s3627_s23 = sshll.u32 %s3629_s22, 3 }
 0xe02   : > { %s530_s27 = scalar_lea.vmem %s3605_s16, %s3627_s23 }
 0xe19   : > { %2062 = vadd.xlane.f32.xlu0 %v2061_v20  ;;  %v2785_v20 = vld [vmem:[%s3598_s9 + $0x1] ss:$0 sm:$0xff] }
 0xe2f   : > { %2233 = vrot.lane.b32.xlu0 %v3432_v34, %s3623_s0 }
 0xe6d   : > { %v1729_v22 = vpop.xlane.xlu0 %1728 }
 0xe6e   : > { %3096 = vrcp.f32 %v1729_v22  ;;  %v1896_v23 = vpop.xlane.xlu1 %1895 }
 0xe6f   : > { %3098 = vrcp.f32 %v1896_v23 }
 0xe71   : > { %v1733_v24 = vpop.permute.xlu0 %1732 }
 0xe72   : > { %2962 = vmatpush3.msra.mxu0 %v1733_v24 }
 0xe73   : > { %2971 = vmatprep.subr.mxu0 %v3118_v1 }
 0xe79   : > { %v2230_v26 = vpop.xlane.xlu1 %2229 }
 0xe7b   : > { %v3097_v25 = vpop.eup %3096 }
 0xe7c   : > { %v1731_v27 = vmul.f32 %v3097_v25, %v3089_v11  ;;  %v3099_v28 = vpop.eup %3098 }
 0xe7d   : > { %v1898_v30 = vmul.f32 %v3099_v28, %v3091_v13  ;;  %v2067_v31 = vpop.permute.xlu1 %2066 }
 0xe7e   : > { %2964 = vmatmul.mubr.msk.f32.vlgmr.msra.gmra.mxu0 %vm605_vm2, %v1731_v27 }
 0xe7f   : > { %2972 = vmatpush3.msra.mxu0 %v1900_v21  ;;  %2973 = vmatprep.mubr.msk.f32.mxu0 %vm3119_vm0, %v3118_v1 }
 0xe80   : > { %2981 = vmatprep.subr.mxu0 %v3118_v1 }
 0xe82   : > { %2974 = vmatmul.mubr.msk.f32.vlgmr.msra.gmra.mxu0 %vm605_vm2, %v1898_v30 }
 0xe83   : > { %2982 = vmatpush3.msra.mxu0 %v2067_v31  ;;  %2983 = vmatprep.mubr.msk.f32.mxu0 %vm3119_vm0, %v3118_v1 }
 0xe84   : > { %2991 = vmatprep.subr.mxu0 %v3118_v1 }
 0xea2   : > { %v2063_v32 = vpop.xlane.xlu0 %2062 }
 0xea3   : > { %3100 = vrcp.f32 %v2063_v32 }
 0xea4   : > { %3102 = vrcp.f32 %v2230_v26 }
 0xea6   : > { %v2234_v36 = vpop.permute.xlu0 %2233 }
 0xeb0   : > { %v3101_v34 = vpop.eup %3100 }
 0xeb1   : > { %v2065_v35 = vmul.f32 %v3101_v34, %v3095_v19  ;;  %v3103_v33 = vpop.eup %3102  ;;  %v3067_v19 = vld [vmem:[%s3599_s10 + $0x20] sm:$0xff]  }
 0xeb2   : > { %v2232_v37 = vmul.f32 %v3103_v33, %v3093_v14  ;;  %v2779_v14 = vld [vmem:[%s3596_s7 + $0x1] ss:$0 sm:$0xff] }
 0xeb3   : > { %2984 = vmatmul.mubr.msk.f32.vlgmr.msra.gmra.mxu0 %vm605_vm2, %v2065_v35 }
 0xeb4   : > { %2992 = vmatpush3.msra.mxu0 %v2234_v36  ;;  %2993 = vmatprep.mubr.msk.f32.mxu0 %vm3119_vm0, %v3118_v1 }
 0xeb5   : > { %3004 = vmatprep.subr.bf16.mxu0 %v3118_v1 }
 0xeb7   : > { %2994 = vmatmul.mubr.msk.f32.vlgmr.msra.gmra.mxu0 %vm605_vm2, %v2232_v37 }
 0xeb8   : > { %3008 = vmatprep.mubr.msk.bf16.mxu0 %vm3119_vm0, %v3118_v1  ;;  %3005 = vmatpush3.bf16.msra.mxu0 %v3062_v5 }
 0xeb9   : > { %3006 = vmatprep.subr.bf16.mxu0 %v3118_v1 }
 0xf3e   : > { %v1804_v38 = vpop.f32.mrf.mxu0 }
 0xf40   : > { %v2965_v39 = vpop.f32.mrf.mxu0 }
 0xf42   : > { %v1971_v40 = vpop.f32.mrf.mxu0 }
 0xf43   : > { %2310 = vrot.lane.b32.xlu1 %v1971_v40, %s3624_s17 }
 0xf44   : > { %v2975_v41 = vpop.f32.mrf.mxu0 }
 0xf73   : > { %v2138_v44 = vpop.f32.mrf.mxu0 }
 0xf74   : > { %2314 = vrot.lane.b32.xlu0 %v2138_v44, %s3625_s24 }
 0xf75   : > { %v2985_v3 = vpop.f32.mrf.mxu0 }
 0xf76   : > { %v2806_v3 = vld [vmem:[%s3601_s12 + $0x1] ss:$0 sm:$0xff] }
 0xf77   : > { %v2305_v45 = vpop.f32.mrf.mxu0 }
 0xf78   : > { %2318 = vrot.lane.b32.xlu1 %v2305_v45, %s3626_s30 }
 0xf79   : > { %v2995_v46 = vpop.f32.mrf.mxu0 }
 0xf7a   : > { %v2807_v46 = vld [vmem:[%s3602_s13 + $0x1] ss:$0 sm:$0xff] }
 0xfb5   : > { %v2311_v47 = vpop.permute.xlu1 %2310 }
 0xfb6   : > { %v2321_v49 = vsel %vm605_vm2, %v1804_v38, %v2311_v47 }
 0xfe6   : > { %v2315_v48 = vpop.permute.xlu0 %2314 }
 0xfe7   : > { %v2322_v50 = vsel %vm1289_vm3, %v2321_v49, %v2315_v48 }
 0xfea   : > { %v2319_v51 = vpop.permute.xlu1 %2318 }
 0xfeb   : > { %v2323_v52 = vsel %vm1291_vm4, %v2322_v50, %v2319_v51 }
 0xfec   : > { %v2324_v53 = vpack.c.bf16 %v2323_v52, %v2323_v52 }
 0xfee   : > { %3001 = vmatmul.mubr.msk.bf16.vlgmr.msra.gmra.mxu1 %vm558_vm1, %v2324_v53 }
 0xfef   : > { %3020 = vmatprep.mubr.msk.bf16.mxu1 %vm3119_vm0, %v3118_v1  ;;  %3013 = vmatpush3.bf16.msra.mxu1 %v3064_v6 }
 0xff0   : > { %3014 = vmatprep.subr.bf16.mxu1 %v3118_v1 }
 0xff3   : > { %3015 = vmatpush3.bf16.msra.mxu1 %v3065_v8 }
 0xff4   : > { %3016 = vmatprep.subr.bf16.mxu1 %v3118_v1 }
 0xff7   : > { %3017 = vmatpush3.bf16.msra.mxu1 %v3066_v18 }
 0xff8   : > { %3018 = vmatprep.subr.bf16.mxu1 %v3118_v1  ;;  %v2798_v1 = vld [vmem:[%s3600_s11 + $0x1] ss:$0 sm:$0xff] }
 0xffb   : > { %3019 = vmatpush3.bf16.msra.mxu1 %v3067_v19 }
0x10ae   : > { %v2387_v55 = vpop.f32.mrf.mxu1 }
0x10af   : > { %v2388_v56 = vadd.f32 %v2772_v54, %v2387_v55 }
0x10b0   : > { %v3002_v57 = vpop.f32.mrf.mxu1 }
0x10b1   : > { %v2393_v58 = vadd.f32 %v2388_v56, %v3422_v29  ;;  %v3063_v29 = vld [vmem:[%s3597_s8 + $0x10] sm:$0xff]  }
0x10b2   : > { %v2390_v59 = vpop.f32.mrf.mxu1  ;;  %3007 = vmatpush3.bf16.msra.mxu0 %v3063_v29 }
0x10b3   : > { %v2398_v60 = vsel %vm558_vm1, %v2393_v58, 0.0  ;;  %v2808_v59 = vld [vmem:[%s3603_s14] ss:$0 sm:$0xff] }
0x10b4   : > { %2399 = vadd.xlane.f32.xlu0 %v2398_v60  ;;  %v3003_v61 = vpop.f32.mrf.mxu1 }
0x10b5   : > { %v2809_v61 = vld [vmem:[%s3604_s15] ss:$0 sm:$0xff] }
0x113d   : > { %v2400_v62 = vpop.xlane.xlu0 %2399 }
0x113e   : > { %v2401_v63 = vmul.f32 0.03125, %v2400_v62 }
0x1140   : > { %v2402_v0 = vsub.f32 %v2393_v58, %v2401_v63 }
0x1142   : > { %v2403_v2 = vmul.f32 %v2402_v0, %v2402_v0 }
0x1144   : > { %v2404_v4 = vsel %vm558_vm1, %v2403_v2, 0.0 }
0x1145   : > { %2405 = vadd.xlane.f32.xlu1 %v2404_v4 }
0x11ce   : > { %v2406_v9 = vpop.xlane.xlu1 %2405 }
0x11cf   : > { %v2407_v10 = vmul.f32 0.03125, %v2406_v9 }
0x11d1   : > { %v2408_v11 = vadd.f32 1e-05, %v2407_v10 }
0x11d3   : > { %3104 = vrsqrt.f32 %v2408_v11 }
0x11e0   : > { %v3105_v13 = vpop.eup %3104 }
0x11e1   : > { %v2410_v7 = vmul.f32 %v3105_v13, %v2402_v0 }
0x11e3   : > { %v2417_v15 = vmul.f32 %v2778_v12, %v2410_v7 }
0x11e5   : > { %v2424_v16 = vadd.f32 %v2779_v14, %v2417_v15 }
0x11e7   : > { %v2425_v17 = vpack.c.bf16 %v2424_v16, %v2424_v16 }
0x11e9   : > { %3009 = vmatmul.mubr.msk.bf16.vlgmr.msra.gmra.mxu0 %vm558_vm1, %v2425_v17 }
0x12a9   : > { %v2488_v21 = vpop.f32.mrf.mxu0 }
0x12aa   : > { %v2489_v22 = vadd.f32 %v2785_v20, %v2488_v21 }
0x12ab   : > { %v3010_v23 = vpop.f32.mrf.mxu0 }
0x12ac   : > { %v2494_v24 = vmax.f32 %v2489_v22, 0.0 }
0x12ad   : > { %v2491_v25 = vpop.f32.mrf.mxu0 }
0x12ae   : > { %v2495_v26 = vpack.c.bf16 %v2494_v24, %v2494_v24 }
0x12af   : > { %v3011_v27 = vpop.f32.mrf.mxu0 }
0x12b0   : > { %3021 = vmatmul.mubr.msk.bf16.vlgmr.msra.gmra.mxu1 %vm1499_vm5, %v2495_v26 }
0x1370   : > { %v2574_v28 = vpop.f32.mrf.mxu1 }
0x1371   : > { %v2575_v30 = vadd.f32 %v2798_v1, %v2574_v28 }
0x1372   : > { %v3022_v31 = vpop.f32.mrf.mxu1 }
0x1373   : > { %v2580_v32 = vadd.f32 %v2575_v30, %v2424_v16 }
0x1374   : > { %v2577_v34 = vpop.f32.mrf.mxu1 }
0x1375   : > { %v2585_v35 = vsel %vm558_vm1, %v2580_v32, 0.0 }
0x1376   : > { %2586 = vadd.xlane.f32.xlu0 %v2585_v35  ;;  %v3023_v33 = vpop.f32.mrf.mxu1 }
0x13ff   : > { %v2587_v36 = vpop.xlane.xlu0 %2586 }
0x1400   : > { %v2588_v37 = vmul.f32 0.03125, %v2587_v36 }
0x1402   : > { %v2589_v38 = vsub.f32 %v2580_v32, %v2588_v37 }
0x1404   : > { %v2590_v39 = vmul.f32 %v2589_v38, %v2589_v38 }
0x1406   : > { %v2591_v40 = vsel %vm558_vm1, %v2590_v39, 0.0 }
0x1407   : > { %2592 = vadd.xlane.f32.xlu0 %v2591_v40 }
0x1490   : > { %v2593_v41 = vpop.xlane.xlu0 %2592 }
0x1491   : > { %v2594_v42 = vmul.f32 0.03125, %v2593_v41 }
0x1493   : > { %v2595_v43 = vadd.f32 1e-05, %v2594_v42 }
0x1495   : > { %3106 = vrsqrt.f32 %v2595_v43 }
0x14a2   : > { %v3107_v44 = vpop.eup %3106 }
0x14a3   : > { %v2597_v45 = vmul.f32 %v3107_v44, %v2589_v38 }
0x14a5   : > { %v2604_v47 = vmul.f32 %v2806_v3, %v2597_v45 }
0x14a7   : > { %v2611_v48 = vadd.f32 %v2807_v46, %v2604_v47 }
0x14a9   : > { %v2614_v49 = vsel %vm558_vm1, %v2611_v48, 0.0 }
0x14aa   : > { %2615 = vadd.xlane.f32.xlu1 %v2614_v49 }
0x1533   : > { %v2616_v50 = vpop.xlane.xlu1 %2615 }
0x1534   : > { %v2617_v51 = vmul.f32 0.03125, %v2616_v50 }
0x1536   : > { %v2618_v52 = vsub.f32 %v2611_v48, %v2617_v51 }
0x1538   : > { %v2619_v53 = vmul.f32 %v2618_v52, %v2618_v52 }
0x153a   : > { %v2620_v54 = vsel %vm558_vm1, %v2619_v53, 0.0 }
0x153b   : > { %2621 = vadd.xlane.f32.xlu0 %v2620_v54 }
0x15c4   : > { %v2622_v55 = vpop.xlane.xlu0 %2621 }
0x15c5   : > { %v2623_v56 = vmul.f32 0.03125, %v2622_v55 }
0x15c7   : > { %v2624_v57 = vadd.f32 1e-05, %v2623_v56 }
0x15c9   : > { %3108 = vrsqrt.f32 %v2624_v57 }
0x15d6   : > { %v3109_v58 = vpop.eup %3108 }
0x15d7   : > { %v2626_v60 = vmul.f32 %v3109_v58, %v2618_v52 }
0x15d9   : > { %v2633_v62 = vmul.f32 %v2808_v59, %v2626_v60 }
0x15db   : > { %v2640_v63 = vadd.f32 %v2809_v61, %v2633_v62 }
0x15dd   : > { %2641 = vst.msk [vmem:[%s530_s27] sm:$0xff] %vm558_vm1, %v2640_v63 }
0x15de PF: > { %s26_s21 = sadd.s32 1, %s3116_s21  }
0x15df   : > { %p23_p4 = scmp.ge.s32.totalorder %s26_s21, 4  }
0x15e1   :  { %25 = sbr.rel (!%p23_p4) target bundleno = 2 (0x2), region = 129 }

// kernel: fwd.3
= control target key start
LH: loop header
LB: loop body
LE: loop exit
PB: predicated region body
PF: predicated region fallthrough
CT: control target
= control target key end

     0   :  { %s6570_s0 = inlined_call_operand.vmem [shape: f32[2,8,32], index: 0, kind: input, shape index: {}]   ;;  %s6571_s1 = inlined_call_operand.vmem [shape: f32[2,8,32], index: 1, kind: input, shape index: {}]   ;;  %s6572_s2 = inlined_call_operand.vmem [shape: bf16[2,32,96], index: 2, kind: input, shape index: {}]   ;;  %s6573_s3 = inlined_call_operand.vmem [shape: f32[2,1,96], index: 3, kind: input, shape index: {}]   ;;  %s6574_s4 = inlined_call_operand.vmem [shape: bf16[2,32,32], index: 4, kind: input, shape index: {}]   ;;  %s6575_s5 = inlined_call_operand.vmem [shape: f32[2,1,32], index: 5, kind: input, shape index: {}]   ;;  %s6576_s6 = inlined_call_operand.vmem [shape: f32[2,1,32], index: 6, kind: input, shape index: {}]   ;;  %s6577_s7 = inlined_call_operand.vmem [shape: f32[2,1,32], index: 7, kind: input, shape index: {}]   ;;  %s6578_s8 = inlined_call_operand.vmem [shape: bf16[2,32,32], index: 8, kind: input, shape index: {}]   ;;  %s6579_s9 = inlined_call_operand.vmem [shape: f32[2,1,32], index: 9, kind: input, shape index: {}]   ;;  %s6580_s10 = inlined_call_operand.vmem [shape: bf16[2,32,64], index: 10, kind: input, shape index: {}]   ;;  %s6581_s11 = inlined_call_operand.vmem [shape: f32[2,1,64], index: 11, kind: input, shape index: {}]   ;;  %s6582_s12 = inlined_call_operand.vmem [shape: bf16[2,32,32], index: 12, kind: input, shape index: {}]   ;;  %s6583_s13 = inlined_call_operand.vmem [shape: f32[2,1,32], index: 13, kind: input, shape index: {}]   ;;  %s6584_s14 = inlined_call_operand.vmem [shape: f32[2,1,32], index: 14, kind: input, shape index: {}]   ;;  %s6585_s15 = inlined_call_operand.vmem [shape: f32[2,1,32], index: 15, kind: input, shape index: {}]   ;;  %s6586_s16 = inlined_call_operand.vmem [shape: bf16[2,32,64], index: 16, kind: input, shape index: {}]   ;;  %s6587_s17 = inlined_call_operand.vmem [shape: f32[2,1,64], index: 17, kind: input, shape index: {}]   ;;  %s6588_s18 = inlined_call_operand.vmem [shape: bf16[2,64,32], index: 18, kind: input, shape index: {}]   ;;  %s6589_s19 = inlined_call_operand.vmem [shape: f32[2,1,32], index: 19, kind: input, shape index: {}]   ;;  %s6590_s20 = inlined_call_operand.vmem [shape: f32[2,1,32], index: 20, kind: input, shape index: {}]   ;;  %s6591_s21 = inlined_call_operand.vmem [shape: f32[2,1,32], index: 21, kind: input, shape index: {}]   ;;  %s6592_s22 = inlined_call_operand.vmem [shape: f32[1,32], index: 22, kind: input, shape index: {}]   ;;  %s6593_s23 = inlined_call_operand.vmem [shape: f32[1,32], index: 23, kind: input, shape index: {}]   ;;  %s6594_s24 = inlined_call_operand.vmem [shape: bf16[32,128], index: 24, kind: input, shape index: {}]   ;;  %s6595_s25 = inlined_call_operand.vmem [shape: f32[1,128], index: 25, kind: input, shape index: {}]   ;;  %s6596_s26 = inlined_call_operand.hbm [shape: f32[2,8,128], index: 26, kind: output, shape index: {}]  }
   0x1   :  { %6646 = sst [smem:[#allocation14_spill]] %s6570_s0 }
   0x2   :  { %6647 = sst [smem:[#allocation15_spill]] %s6571_s1 }
   0x3   :  { %6648 = sst [smem:[#allocation16_spill]] %s6572_s2 }
   0x4   :  { %6649 = sst [smem:[#allocation17_spill]] %s6573_s3 }
   0x5   :  { %6650 = sst [smem:[#allocation18_spill]] %s6574_s4 }
   0x6   :  { %6651 = sst [smem:[#allocation19_spill]] %s6575_s5 }
   0x7   :  { %6652 = sst [smem:[#allocation20_spill]] %s6576_s6 }
   0x8   :  { %6653 = sst [smem:[#allocation21_spill]] %s6577_s7 }
   0x9   :  { %6654 = sst [smem:[#allocation22_spill]] %s6578_s8 }
   0xa   :  { %6655 = sst [smem:[#allocation23_spill]] %s6579_s9 }
   0xb   :  { %6656 = sst [smem:[#allocation24_spill]] %s6580_s10 }
   0xc   :  { %6657 = sst [smem:[#allocation25_spill]] %s6581_s11 }
   0xd   :  { %6658 = sst [smem:[#allocation26_spill]] %s6582_s12 }
   0xe   :  { %6659 = sst [smem:[#allocation27_spill]] %s6583_s13 }
   0xf   :  { %6660 = sst [smem:[#allocation28_spill]] %s6592_s22 }
  0x10   :  { %6661 = sst [smem:[#allocation29_spill]] %s6593_s23 }
  0x11   :  { %6662 = sst [smem:[#allocation30_spill]] %s6594_s24 }
  0x12   :  { %6663 = sst [smem:[#allocation31_spill]] %s6595_s25 }
  0x13   :  { %6664 = sst [smem:[#allocation32_spill]] %s6596_s26 }
  0x14   :  { %31 = vsyncpa [#allocation3], 0 }
  0x15   :  { %33 = vsyncpa [#allocation3 + $0x1], 0  ;;  %s5851_s27 = smov 0   ;;  %s5853_s3 = smov 0  }
  0x16   :  { %s5855_s7 = smov 0   ;;  %s5857_s28 = smov 0  }
  0x17 LB: > { %6665 = sst [smem:[#allocation5_spill]] %s5685_s27  ;;  %s5872_s8 = sadd.s32 4294967295, %s5697_s28   ;;  %s5697_s28 = sphi %s5857_s28, %s6723_s28   ;;  %s5693_s7 = sphi %s5855_s7, %s6726_s7   ;;  %s5689_s3 = sphi %s5853_s3, %s6725_s3   ;;  %s5685_s27 = sphi %s5851_s27, %s6724_s27  }
  0x18   : > { %6666 = sst [smem:[#allocation6_spill]] %s5689_s3  ;;  %s4887_s4 = sadd.s32 4294967294, %s5697_s28  }
  0x19   : > { %6667 = sst [smem:[#allocation7_spill]] %s5693_s7  ;;  %s5876_s29 = sadd.s32 1, %s5697_s28  }
  0x1a   : > { %6668 = sst [smem:[#allocation8_spill]] %s5697_s28  ;;  %s602_s0 = sadd.s32 1, %s5693_s7 }
  0x1b   : > { %6669 = sst [smem:[#allocation9_spill]] %s5872_s8  ;;  %s599_s9 = ssub.s32 %s5697_s28, %s5876_s29 }
  0x1c   : > { %6670 = sst [smem:[#allocation10_spill]] %s5876_s29  ;;  %p612_p0 = scmp.ne.s32.totalorder %s5693_s7, %s5689_s3 }
  0x1d   : > { %p600_p1 = scmp.eq.s32.totalorder %s599_s9, 0  ;;  %p613_p2 = scmp.eq.s32.totalorder %s5872_s8, 1 }
  0x1e   : > { %p618_p3 = scmp.ne.s32.totalorder %s5689_s3, %s5685_s27  ;;  %p619_p4 = scmp.eq.s32.totalorder %s4887_s4, 1 }
  0x1f   : > { %s5887_s30 = scalar_select %p600_p1, %s5693_s7, %s602_s0  }
  0x20   : > { %p5889_p5 = por %p613_p2, %p612_p0  ;;  %p5893_p6 = por %p619_p4, %p618_p3 }
  0x21   : > { %6671 = sst [smem:[#allocation11_spill]] %s5887_s30  ;;  %p4890_p7 = scmp.ge.s32.totalorder %s5697_s28, 1 }
  0x22   : > { %s6672_s2 = scalar_select %p5889_p5, 1, 0 }
  0x23   : > { %s6674_s5 = scalar_select %p5893_p6, 1, 0 }
  0x24   : > { %6673 = sst [smem:[#allocation12_spill]] %s6672_s2  ;;  %p723_p8 = scmp.lt.s32.totalorder %s5697_s28, 3 }
  0x25   : > { %6675 = sst [smem:[#allocation13_spill]] %s6674_s5 }
  0x26   : > { %p724_p9 = pnand %p4890_p7, %p723_p8 }
  0x27   : > { %s6676_s1 = sld [smem:[#allocation16_spill]] (!%p724_p9)  ;;  %p796_p10 = scmp.lt.s32.totalorder (!%p724_p9), %s5872_s8, 1 }
  0x28   : > { %727 = sbr.rel (%p724_p9) target bundleno = 9085 (0x237d), region = 124  ;;  %s6677_s0 = sld [smem:[#allocation14_spill]] (!%p724_p9) }
  0x29   : > { %s6678_s5 = sld [smem:[#allocation17_spill]] (!%p724_p9)  ;;  %s6610_s6 = smov (!%p724_p9), 64  }
  0x2a   : > { %s6611_s4 = smov (!%p724_p9), 88   ;;  %s6626_s7 = smov (!%p724_p9), 120  }
  0x2b   : > { %s6616_s29 = smov (!%p724_p9), 80   ;;  %s6683_s26 = sld [smem:[#allocation24_spill]] (!%p724_p9) }
  0x2c   : > { %s6686_s27 = sld [smem:[#allocation21_spill]] (!%p724_p9)  ;;  %s6689_s25 = smov (!%p724_p9), 112  }
  0x2d   : > { %v5525_v0 = vld [vmem:[%s6676_s1 + $0x8] sm:$0xff]   ;;  %v5699_v1 = vmov 0.0   ;;  %v5526_v2 = vld [vmem:[%s6676_s1] sm:$0xff]   ;;  %vm5700_vm0 = vmmov 0   ;;  %s5914_s9 = scalar_select %p796_p10, %s5872_s8, 1  ;;  %vm837_vm1 = vcmask 261120   ;;  %v807_v13 = vlaneseq }
  0x2e   : > { %5182 = vmatprep.subr.bf16.mxu0 %v5699_v1  ;;  %5190 = vmatprep.subr.mxu1 %v5699_v1  ;;  %vm884_vm2 = vcmask 64512   ;;  %vm1562_vm4 = vcmask 130048   ;;  %vm1564_vm5 = vcmask 195584   ;;  %s6687_s11 = sld [smem:[#allocation25_spill]]  ;;  %s6690_s2 = smov 104   ;;  %vm2680_vm6 = vcmask 523264  }
  0x2f   : > { %5183 = vmatpush3.bf16.msra.mxu0 %v5525_v0  ;;  %5186 = vmatprep.mubr.msk.bf16.mxu0 %vm5700_vm0, %v5699_v1  ;;  %s6628_s10 = sshll.u32 %s5914_s9, 3  ;;  %v4894_v5 = vld [vmem:[%s6678_s5] ss:$0 sm:$0xff]  ;;  %v808_v14 = vshrl.u32 %v807_v13, 7  ;;  %v810_v15 = vand.u32 127, %v807_v13  ;;  %s6692_s28 = smov 96  }
  0x30   : > { %5184 = vmatprep.subr.bf16.mxu0 %v5699_v1  ;;  %5192 = vmatprep.mubr.msk.f32.mxu1 %vm5700_vm0, %v5699_v1  ;;  %s799_s30 = scalar_lea.vmem %s6677_s0, %s6628_s10  ;;  %s6613_s0 = smov 72  }
  0x31   : > { %v5923_v3 = vld [vmem:[%s799_s30] sm:$0xff]  ;;  %s6620_s30 = smov 96   ;;  %vm811_vm3 = vcmp.gt.s32.totalorder %v810_v15, %v808_v14  ;;  %s6631_s10 = smov 16  }
  0x32   : > { %v813_v4 = vpack.c.bf16 %v5923_v3, %v5923_v3  ;;  %v5953_v17 = vsel %vm811_vm3, -1e+30, %v5699_v1  ;;  %s6696_s12 = sld [smem:[#allocation26_spill]]  ;;  %s6699_s22 = smov 24  }
  0x33   : > { %5185 = vmatpush3.bf16.msra.mxu0 %v5526_v2  ;;  %s6700_s13 = sld [smem:[#allocation27_spill]]  ;;  %s6701_s24 = smov 64  }
  0x34   : > { %5205 = vmatprep.subr.mxu0 %v5699_v1  ;;  %s6702_s3 = smov 48   ;;  %s6704_s8 = smov 56  }
  0x36   : > { %5187 = vmatmul.mubr.msk.bf16.vlgmr.msra.gmra.mxu0 %vm837_vm1, %v813_v4 }
  0x37   : > { %5207 = vmatprep.mubr.msk.f32.mxu0 %vm5700_vm0, %v5699_v1 }
  0xf6   : > { %v875_v6 = vpop.f32.mrf.mxu0 }
  0xf7   : > { %v5933_v7 = vadd.f32 %v4894_v5, %v875_v6 }
  0xf8   : > { %v5188_v8 = vpop.f32.mrf.mxu0 }
  0xf9   : > { %972 = vrot.lane.b32.xlu1 %v5933_v7, %s6610_s6  ;;  %882 = vrot.lane.b32.xlu0 %v5933_v7, %s6620_s30  ;;  %s6624_s6 = smov 112   ;;  %s6679_s30 = sld [smem:[#allocation18_spill]] }
  0xfa   : > { %v878_v9 = vpop.f32.mrf.mxu0 }
  0xfc   : > { %v5189_v10 = vpop.f32.mrf.mxu0 }
  0xfd   : > { %1050 = vrot.lane.b32.xlu1 %v5933_v7, %s6611_s4  ;;  %s6622_s4 = smov 104  }
 0x101   : > { %1048 = vrot.lane.b32.xlu1 %v5933_v7, %s6626_s7  ;;  %s6633_s7 = smov 8  }
 0x105   : > { %1217 = vrot.lane.b32.xlu1 %v5933_v7, %s6616_s29  ;;  %s6619_s29 = smov 48  }
 0x16b   : > { %v883_v11 = vpop.permute.xlu0 %882  ;;  %v973_v12 = vpop.permute.xlu1 %972 }
 0x16c   : > { %5191 = vmatpush3.xpose.msk.msra.mxu1 %vm884_vm2, %v883_v11 }
 0x16d   : > { %5195 = vmatprep.subr.mxu1 %v5699_v1 }
 0x16f   : > { %5193 = vmatmul.mubr.msk.f32.vlgmr.msra.gmra.mxu1 %vm884_vm2, %v5933_v7  ;;  %v1051_v27 = vpop.permute.xlu1 %1050 }
 0x170   : > { %5196 = vmatpush3.msra.mxu1 %v973_v12  ;;  %5197 = vmatprep.mubr.msk.f32.mxu1 %vm5700_vm0, %v5699_v1 }
 0x171   : > { %5200 = vmatprep.subr.mxu1 %v5699_v1 }
 0x173   : > { %v1049_v28 = vpop.permute.xlu1 %1048 }
 0x177   : > { %v1218_v29 = vpop.permute.xlu1 %1217 }
 0x22f   : > { %v955_v16 = vpop.f32.mrf.mxu1 }
 0x230   : > { %v959_v18 = vmul.f32 0.35355338, %v955_v16 }
 0x231   : > { %v5194_v19 = vpop.f32.mrf.mxu1 }
 0x232   : > { %v960_v20 = vadd.f32 %v959_v18, %v5953_v17  ;;  %v5527_v19 = vld [vmem:[%s6679_s30 + $0x8] sm:$0xff]  }
 0x234   : > { %v961_v21 = vsel %vm884_vm2, %v960_v20, -inf }
 0x235   : > { %962 = vmax.xlane.f32.xlu0 %v961_v21 }
 0x24b   : > { %1384 = vrot.lane.b32.xlu0 %v5933_v7, %s6613_s0  ;;  %s6615_s0 = smov 56  }
 0x2be   : > { %v963_v22 = vpop.xlane.xlu0 %962 }
 0x2bf   : > { %v964_v23 = vsub.f32 %v960_v20, %v963_v22  ;;  %v5528_v20 = vld [vmem:[%s6679_s30] sm:$0xff]  }
 0x2c1   : > { %v965_v24 = vmul.f32 1.442695, %v964_v23 }
 0x2c2   : > { %v1385_v34 = vpop.permute.xlu0 %1384 }
 0x2c3   : > { %5559 = vpow2.f32 %v965_v24 }
 0x2d0   : > { %v5560_v25 = vpop.eup %5559 }
 0x2d1   : > { %v967_v26 = vsel %vm884_vm2, %v5560_v25, 0.0 }
 0x2d2   : > { %968 = vadd.xlane.f32.xlu1 %v967_v26 }
 0x2e3   : > { %1215 = vrot.lane.b32.xlu1 %v5933_v7, %s6624_s6  ;;  %s6681_s6 = sshll.u32 %s5914_s9, 3  ;;  %s6684_s9 = sld [smem:[#allocation22_spill]] }
 0x2e7   : > { %1382 = vrot.lane.b32.xlu1 %v5933_v7, %s6622_s4  ;;  %s6694_s4 = smov 72  }
 0x35b   : > { %v969_v30 = vpop.xlane.xlu1 %968 }
 0x35c   : > { %5561 = vrcp.f32 %v969_v30 }
 0x35f   : > { %v1216_v33 = vpop.permute.xlu1 %1215 }
 0x363   : > { %v1383_v35 = vpop.permute.xlu1 %1382 }
 0x369   : > { %v5562_v31 = vpop.eup %5561 }
 0x36a   : > { %v971_v32 = vmul.f32 %v5562_v31, %v5560_v25 }
 0x36c   : > { %5198 = vmatmul.mubr.msk.f32.vlgmr.msra.gmra.mxu1 %vm884_vm2, %v971_v32 }
 0x36d   : > { %5201 = vmatpush3.xpose.msk.msra.mxu1 %vm884_vm2, %v1051_v27  ;;  %5202 = vmatprep.mubr.msk.f32.mxu1 %vm5700_vm0, %v5699_v1 }
 0x36e   : > { %5210 = vmatprep.subr.mxu1 %v5699_v1 }
 0x370   : > { %5203 = vmatmul.mubr.msk.f32.vlgmr.msra.gmra.mxu1 %vm884_vm2, %v1049_v28 }
 0x371   : > { %5211 = vmatpush3.xpose.msk.msra.mxu1 %vm884_vm2, %v1218_v29  ;;  %5212 = vmatprep.mubr.msk.f32.mxu1 %vm5700_vm0, %v5699_v1 }
 0x372   : > { %5220 = vmatprep.subr.mxu1 %v5699_v1 }
 0x374   : > { %5213 = vmatmul.mubr.msk.f32.vlgmr.msra.gmra.mxu1 %vm884_vm2, %v1216_v33 }
 0x375   : > { %5221 = vmatpush3.xpose.msk.msra.mxu1 %vm884_vm2, %v1385_v34  ;;  %5222 = vmatprep.mubr.msk.f32.mxu1 %vm5700_vm0, %v5699_v1 }
 0x376   : > { %5230 = vmatprep.subr.bf16.mxu1 %v5699_v1 }
 0x378   : > { %5223 = vmatmul.mubr.msk.f32.vlgmr.msra.gmra.mxu1 %vm884_vm2, %v1383_v35 }
 0x379   : > { %5234 = vmatprep.mubr.msk.bf16.mxu1 %vm5700_vm0, %v5699_v1  ;;  %5231 = vmatpush3.bf16.msra.mxu1 %v5527_v19 }
 0x37a   : > { %5232 = vmatprep.subr.bf16.mxu1 %v5699_v1 }
 0x37d   : > { %5233 = vmatpush3.bf16.msra.mxu1 %v5528_v20 }
 0x37e   : > { %5246 = vmatprep.subr.bf16.mxu1 %v5699_v1 }
 0x42c   : > { %v5982_v36 = vpop.f32.mrf.mxu1 }
 0x42e   : > { %v5199_v37 = vpop.f32.mrf.mxu1 }
 0x430   : > { %v1122_v38 = vpop.f32.mrf.mxu1 }
 0x431   : > { %v1126_v39 = vmul.f32 0.35355338, %v1122_v38 }
 0x432   : > { %v5204_v40 = vpop.f32.mrf.mxu1 }
 0x433   : > { %v1127_v41 = vadd.f32 %v1126_v39, %v5953_v17 }
 0x434   : > { %v1289_v42 = vpop.f32.mrf.mxu1 }
 0x435   : > { %v1293_v43 = vmul.f32 0.35355338, %v1289_v42  ;;  %v1128_v44 = vsel %vm884_vm2, %v1127_v41, -inf }
 0x436   : > { %1129 = vmax.xlane.f32.xlu1 %v1128_v44  ;;  %v5214_v45 = vpop.f32.mrf.mxu1 }
 0x437   : > { %v1294_v46 = vadd.f32 %v1293_v43, %v5953_v17 }
 0x438   : > { %v1456_v47 = vpop.f32.mrf.mxu1 }
 0x439   : > { %v1460_v48 = vmul.f32 0.35355338, %v1456_v47  ;;  %v1295_v49 = vsel %vm884_vm2, %v1294_v46, -inf }
 0x43a   : > { %1296 = vmax.xlane.f32.xlu0 %v1295_v49  ;;  %v5224_v50 = vpop.f32.mrf.mxu1 }
 0x43b   : > { %v1461_v51 = vadd.f32 %v1460_v48, %v5953_v17  ;;  %v5530_v48 = vld [vmem:[%s6683_s26] sm:$0xff]   ;;  %v5531_v50 = vld [vmem:[%s6684_s9 + $0x8] sm:$0xff]  }
 0x43d   : > { %v1462_v52 = vsel %vm884_vm2, %v1461_v51, -inf }
 0x43e   : > { %1463 = vmax.xlane.f32.xlu1 %v1462_v52 }
 0x44f   : > { %1139 = vrot.lane.b32.xlu1 %v5933_v7, %s6615_s0  ;;  %s6618_s0 = smov 40  }
 0x4bf   : > { %v1130_v53 = vpop.xlane.xlu1 %1129 }
 0x4c0   : > { %v1131_v54 = vsub.f32 %v1127_v41, %v1130_v53 }
 0x4c2   : > { %v1132_v55 = vmul.f32 1.442695, %v1131_v54 }
 0x4c3   : > { %v1297_v56 = vpop.xlane.xlu0 %1296 }
 0x4c4   : > { %5563 = vpow2.f32 %v1132_v55  ;;  %v1298_v57 = vsub.f32 %v1294_v46, %v1297_v56 }
 0x4c6   : > { %v1299_v58 = vmul.f32 1.442695, %v1298_v57 }
 0x4c7   : > { %v1464_v59 = vpop.xlane.xlu1 %1463 }
 0x4c8   : > { %5565 = vpow2.f32 %v1299_v58  ;;  %v1465_v60 = vsub.f32 %v1461_v51, %v1464_v59  ;;  %v5532_v51 = vld [vmem:[%s6684_s9] sm:$0xff]   ;;  %s6707_s9 = sld [smem:[#allocation21_spill]] }
 0x4c9   : > { %v4915_v58 = vld [vmem:[%s6686_s27] ss:$0 sm:$0xff]  ;;  %s6691_s27 = sld [smem:[#allocation23_spill]] }
 0x4ca   : > { %v1466_v61 = vmul.f32 1.442695, %v1465_v60 }
 0x4cb   : > { %v1140_v62 = vpop.permute.xlu1 %1139 }
 0x4cc   : > { %5567 = vpow2.f32 %v1466_v61  ;;  %5206 = vmatpush3.msra.mxu0 %v1140_v62  ;;  %v4920_v62 = vld [vmem:[%s6687_s11] ss:$0 sm:$0xff]  ;;  %s6698_s11 = smov 16  }
 0x4cd   : > { %5215 = vmatprep.subr.mxu0 %v5699_v1 }
 0x4d1   : > { %v5564_v63 = vpop.eup %5563 }
 0x4d2   : > { %v1134_v0 = vsel %vm884_vm2, %v5564_v63, 0.0 }
 0x4d3   : > { %1135 = vadd.xlane.f32.xlu1 %v1134_v0 }
 0x4d5   : > { %v5566_v2 = vpop.eup %5565 }
 0x4d6   : > { %v1301_v4 = vsel %vm884_vm2, %v5566_v2, 0.0 }
 0x4d7   : > { %1302 = vadd.xlane.f32.xlu1 %v1301_v4 }
 0x4d9   : > { %v5568_v5 = vpop.eup %5567 }
 0x4da   : > { %v1468_v6 = vsel %vm884_vm2, %v5568_v5, 0.0 }
 0x4db   : > { %1469 = vadd.xlane.f32.xlu0 %v1468_v6 }
 0x4e8   : > { %1473 = vrot.lane.b32.xlu1 %v5933_v7, %s6618_s0  ;;  %s6680_s0 = sld [smem:[#allocation19_spill]] }
 0x4ee   : > { %v4910_v34 = vld [vmem:[%s6680_s0] ss:$0 sm:$0xff] }
 0x4f1   : > { %1306 = vrot.lane.b32.xlu0 %v5933_v7, %s6619_s29  ;;  %s6629_s29 = smov 24  }
 0x55c   : > { %v1136_v8 = vpop.xlane.xlu1 %1135 }
 0x55d   : > { %5569 = vrcp.f32 %v1136_v8  ;;  %v4916_v8 = vld [vmem:[%s6691_s27] ss:$0 sm:$0xff]  ;;  %s6695_s27 = smov 88  }
 0x560   : > { %v1303_v9 = vpop.xlane.xlu1 %1302 }
 0x561   : > { %5571 = vrcp.f32 %v1303_v9 }
 0x564   : > { %v1470_v10 = vpop.xlane.xlu0 %1469  ;;  %v1474_v7 = vpop.permute.xlu1 %1473 }
 0x565   : > { %5573 = vrcp.f32 %v1470_v10 }
 0x568   : > { %v1307_v13 = vpop.permute.xlu0 %1306 }
 0x56a   : > { %v5570_v11 = vpop.eup %5569 }
 0x56b   : > { %v1138_v12 = vmul.f32 %v5570_v11, %v5564_v63 }
 0x56d   : > { %5208 = vmatmul.mubr.msk.f32.vlgmr.msra.gmra.mxu0 %vm884_vm2, %v1138_v12 }
 0x56e   : > { %v5572_v14 = vpop.eup %5571  ;;  %5216 = vmatpush3.msra.mxu0 %v1307_v13  ;;  %5217 = vmatprep.mubr.msk.f32.mxu0 %vm5700_vm0, %v5699_v1 }
 0x56f   : > { %5225 = vmatprep.subr.mxu0 %v5699_v1  ;;  %v1305_v15 = vmul.f32 %v5572_v14, %v5566_v2 }
 0x571   : > { %5218 = vmatmul.mubr.msk.f32.vlgmr.msra.gmra.mxu0 %vm884_vm2, %v1305_v15 }
 0x572   : > { %v5574_v16 = vpop.eup %5573  ;;  %5226 = vmatpush3.msra.mxu0 %v1474_v7  ;;  %5227 = vmatprep.mubr.msk.f32.mxu0 %vm5700_vm0, %v5699_v1 }
 0x573   : > { %v1472_v18 = vmul.f32 %v5574_v16, %v5568_v5  ;;  %5238 = vmatprep.subr.bf16.mxu0 %v5699_v1 }
 0x575   : > { %5228 = vmatmul.mubr.msk.f32.vlgmr.msra.gmra.mxu0 %vm884_vm2, %v1472_v18 }
 0x576   : > { %5242 = vmatprep.mubr.msk.bf16.mxu0 %vm5700_vm0, %v5699_v1  ;;  %5239 = vmatpush3.bf16.msra.mxu0 %v5531_v50 }
 0x577   : > { %5240 = vmatprep.subr.bf16.mxu0 %v5699_v1 }
 0x57a   : > { %5241 = vmatpush3.bf16.msra.mxu0 %v5532_v51 }
 0x57b   : > { %5254 = vmatprep.subr.mxu0 %v5699_v1 }
 0x62d   : > { %v1211_v21 = vpop.f32.mrf.mxu0 }
 0x62e   : > { %1550 = vrot.lane.b32.xlu1 %v1211_v21, %s6633_s7 }
 0x62f   : > { %v5209_v22 = vpop.f32.mrf.mxu0 }
 0x631   : > { %v1378_v23 = vpop.f32.mrf.mxu0 }
 0x632   : > { %1554 = vrot.lane.b32.xlu0 %v1378_v23, %s6631_s10  ;;  %s6682_s10 = sld [smem:[#allocation15_spill]] }
 0x633   : > { %v5219_v24 = vpop.f32.mrf.mxu0 }
 0x635   : > { %v1545_v25 = vpop.f32.mrf.mxu0 }
 0x636   : > { %1558 = vrot.lane.b32.xlu1 %v1545_v25, %s6629_s29  ;;  %s6685_s29 = sld [smem:[#allocation20_spill]] }
 0x637   : > { %v5229_v26 = vpop.f32.mrf.mxu0 }
 0x638   : > { %s803_s7 = scalar_lea.vmem %s6682_s10, %s6681_s6  ;;  %s6693_s6 = smov 80  }
 0x639   : > { %v806_v47 = vld [vmem:[%s803_s7] sm:$0xff]  ;;  %s6688_s7 = smov 120   ;;  %s6697_s10 = smov 8  }
 0x63a   : > { %v6047_v49 = vpack.c.bf16 %v806_v47, %v806_v47 }
 0x63c   : > { %v4914_v56 = vld [vmem:[%s6685_s29] ss:$0 sm:$0xff] }
 0x6a0   : > { %v1551_v27 = vpop.permute.xlu1 %1550 }
 0x6a1   : > { %v1561_v29 = vsel %vm884_vm2, %v5982_v36, %v1551_v27 }
 0x6a4   : > { %v1555_v28 = vpop.permute.xlu0 %1554 }
 0x6a5   : > { %v1563_v30 = vsel %vm1562_vm4, %v1561_v29, %v1555_v28 }
 0x6a8   : > { %v1559_v31 = vpop.permute.xlu1 %1558 }
 0x6a9   : > { %v1565_v32 = vsel %vm1564_vm5, %v1563_v30, %v1559_v31 }
 0x6aa   : > { %v1566_v33 = vpack.c.bf16 %v1565_v32, %v1565_v32 }
 0x6ac   : > { %5235 = vmatmul.mubr.msk.bf16.vlgmr.msra.gmra.mxu1 %vm837_vm1, %v1566_v33 }
 0x6ad   : > { %5250 = vmatprep.mubr.msk.bf16.mxu1 %vm5700_vm0, %v5699_v1 }
 0x76c   : > { %v1627_v35 = vpop.f32.mrf.mxu1 }
 0x76d   : > { %v1628_v37 = vadd.f32 %v4910_v34, %v1627_v35 }
 0x76e   : > { %v5236_v38 = vpop.f32.mrf.mxu1 }
 0x76f   : > { %v1633_v36 = vadd.f32 %v1628_v37, %v5923_v3  ;;  %v5529_v3 = vld [vmem:[%s6683_s26 + $0x8] sm:$0xff]  }
 0x770   : > { %v1630_v39 = vpop.f32.mrf.mxu1  ;;  %5247 = vmatpush3.bf16.msra.mxu1 %v5529_v3 }
 0x771   : > { %v1636_v40 = vsel %vm837_vm1, %v1633_v36, 0.0  ;;  %5248 = vmatprep.subr.bf16.mxu1 %v5699_v1 }
 0x772   : > { %1637 = vadd.xlane.f32.xlu0 %v1636_v40  ;;  %v5237_v41 = vpop.f32.mrf.mxu1 }
 0x774   : > { %5249 = vmatpush3.bf16.msra.mxu1 %v5530_v48 }
 0x775   : > { %5264 = vmatprep.subr.mxu1 %v5699_v1 }
 0x777   : > { %5251 = vmatmul.mubr.msk.bf16.vlgmr.msra.gmra.mxu1 %vm837_vm1, %v6047_v49 }
 0x778   : > { %5266 = vmatprep.mubr.msk.f32.mxu1 %vm5700_vm0, %v5699_v1 }
 0x7fb   : > { %v1638_v42 = vpop.xlane.xlu0 %1637 }
 0x7fc   : > { %v1640_v43 = vmul.f32 0.03125, %v1638_v42 }
 0x7fe   : > { %v1641_v44 = vsub.f32 %v1633_v36, %v1640_v43 }
 0x800   : > { %v1642_v45 = vmul.f32 %v1641_v44, %v1641_v44 }
 0x802   : > { %v1643_v46 = vsel %vm837_vm1, %v1642_v45, 0.0 }
 0x803   : > { %1644 = vadd.xlane.f32.xlu1 %v1643_v46 }
 0x837   : > { %v1792_v63 = vpop.f32.mrf.mxu1 }
 0x838   : > { %v6078_v0 = vadd.f32 %v4920_v62, %v1792_v63 }
 0x839   : > { %v5252_v2 = vpop.f32.mrf.mxu1 }
 0x83a   : > { %1964 = vrot.lane.b32.xlu0 %v6078_v0, %s6688_s7 }
 0x83b   : > { %v1795_v4 = vpop.f32.mrf.mxu1 }
 0x83d   : > { %v5253_v5 = vpop.f32.mrf.mxu1 }
 0x83e   : > { %2130 = vrot.lane.b32.xlu0 %v6078_v0, %s6689_s25 }
 0x842   : > { %2296 = vrot.lane.b32.xlu0 %v6078_v0, %s6690_s2 }
 0x88c   : > { %v1645_v52 = vpop.xlane.xlu1 %1644 }
 0x88d   : > { %v1646_v53 = vmul.f32 0.03125, %v1645_v52 }
 0x88f   : > { %v1647_v54 = vadd.f32 1e-05, %v1646_v53 }
 0x891   : > { %5575 = vrsqrt.f32 %v1647_v54 }
 0x89e   : > { %v5576_v55 = vpop.eup %5575 }
 0x89f   : > { %v1649_v57 = vmul.f32 %v5576_v55, %v1641_v44 }
 0x8a1   : > { %v1656_v59 = vmul.f32 %v4914_v56, %v1649_v57 }
 0x8a3   : > { %v6068_v60 = vadd.f32 %v4915_v58, %v1656_v59 }
 0x8a5   : > { %v1664_v61 = vpack.c.bf16 %v6068_v60, %v6068_v60 }
 0x8a7   : > { %5243 = vmatmul.mubr.msk.bf16.vlgmr.msra.gmra.mxu0 %vm837_vm1, %v1664_v61 }
 0x8a8   : > { %5256 = vmatprep.mubr.msk.f32.mxu0 %vm5700_vm0, %v5699_v1  ;;  %5255 = vmatpush3.xpose.msk.msra.mxu0 %vm884_vm2, %v6078_v0 }
 0x8a9   : > { %5259 = vmatprep.subr.mxu0 %v5699_v1 }
 0x8ac   : > { %v1965_v6 = vpop.permute.xlu0 %1964 }
 0x8ad   : > { %5265 = vmatpush3.xpose.msk.msra.mxu1 %vm884_vm2, %v1965_v6 }
 0x8ae   : > { %5274 = vmatprep.subr.mxu1 %v5699_v1 }
 0x8b0   : > { %v2131_v14 = vpop.permute.xlu0 %2130 }
 0x8b4   : > { %v2297_v16 = vpop.permute.xlu0 %2296 }
 0x967   : > { %v1725_v9 = vpop.f32.mrf.mxu0 }
 0x968   : > { %v1726_v10 = vadd.f32 %v4916_v8, %v1725_v9 }
 0x969   : > { %v5244_v11 = vpop.f32.mrf.mxu0 }
 0x96a   : > { %1962 = vrot.lane.b32.xlu1 %v1726_v10, %s6688_s7  ;;  %5257 = vmatmul.mubr.msk.f32.vlgmr.msra.gmra.mxu0 %vm884_vm2, %v1726_v10 }
 0x96b   : > { %v1728_v12 = vpop.f32.mrf.mxu0  ;;  %5261 = vmatprep.mubr.msk.f32.mxu0 %vm5700_vm0, %v5699_v1 }
 0x96d   : > { %v5245_v13 = vpop.f32.mrf.mxu0 }
 0x96e   : > { %2128 = vrot.lane.b32.xlu1 %v1726_v10, %s6689_s25  ;;  %v5533_v13 = vld [vmem:[%s6696_s12 + $0x8] sm:$0xff]  }
 0x972   : > { %2294 = vrot.lane.b32.xlu1 %v1726_v10, %s6690_s2 }
 0x9dc   : > { %v1963_v15 = vpop.permute.xlu1 %1962 }
 0x9dd   : > { %5267 = vmatmul.mubr.msk.f32.vlgmr.msra.gmra.mxu1 %vm884_vm2, %v1963_v15 }
 0x9de   : > { %5275 = vmatpush3.xpose.msk.msra.mxu1 %vm884_vm2, %v2131_v14  ;;  %5276 = vmatprep.mubr.msk.f32.mxu1 %vm5700_vm0, %v5699_v1  ;;  %v5534_v14 = vld [vmem:[%s6696_s12] sm:$0xff]   ;;  %s6709_s12 = sld [smem:[#allocation23_spill]] }
 0x9df   : > { %5284 = vmatprep.subr.mxu1 %v5699_v1 }
 0x9e0   : > { %v2129_v7 = vpop.permute.xlu1 %2128 }
 0x9e1   : > { %5277 = vmatmul.mubr.msk.f32.vlgmr.msra.gmra.mxu1 %vm884_vm2, %v2129_v7 }
 0x9e2   : > { %5285 = vmatpush3.xpose.msk.msra.mxu1 %vm884_vm2, %v2297_v16  ;;  %5286 = vmatprep.mubr.msk.f32.mxu1 %vm5700_vm0, %v5699_v1 }
 0x9e3   : > { %5294 = vmatprep.subr.bf16.mxu1 %v5699_v1 }
 0x9e4   : > { %v2295_v18 = vpop.permute.xlu1 %2294 }
 0x9e5   : > { %5287 = vmatmul.mubr.msk.f32.vlgmr.msra.gmra.mxu1 %vm884_vm2, %v2295_v18 }
 0x9e6   : > { %5298 = vmatprep.mubr.msk.bf16.mxu1 %vm5700_vm0, %v5699_v1  ;;  %5295 = vmatpush3.bf16.msra.mxu1 %v5533_v13 }
 0x9e7   : > { %5296 = vmatprep.subr.bf16.mxu1 %v5699_v1 }
 0x9ea   : > { %5297 = vmatpush3.bf16.msra.mxu1 %v5534_v14 }
 0x9eb   : > { %5310 = vmatprep.subr.bf16.mxu1 %v5699_v1 }
 0xa2a   : > { %v1870_v19 = vpop.f32.mrf.mxu0 }
 0xa2b   : > { %v1874_v20 = vmul.f32 0.35355338, %v1870_v19 }
 0xa2c   : > { %v5258_v21 = vpop.f32.mrf.mxu0 }
 0xa2d   : > { %v1875_v22 = vsel %vm884_vm2, %v1874_v20, -inf }
 0xa2e   : > { %1876 = vmax.xlane.f32.xlu0 %v1875_v22 }
 0xa9d   : > { %v2036_v23 = vpop.f32.mrf.mxu1 }
 0xa9e   : > { %v2040_v24 = vmul.f32 0.35355338, %v2036_v23 }
 0xa9f   : > { %v5268_v25 = vpop.f32.mrf.mxu1 }
 0xaa0   : > { %v2041_v26 = vsel %vm884_vm2, %v2040_v24, -inf }
 0xaa1   : > { %2042 = vmax.xlane.f32.xlu1 %v2041_v26  ;;  %v2202_v27 = vpop.f32.mrf.mxu1 }
 0xaa2   : > { %v2206_v28 = vmul.f32 0.35355338, %v2202_v27 }
 0xaa3   : > { %v5278_v29 = vpop.f32.mrf.mxu1 }
 0xaa4   : > { %v2207_v30 = vsel %vm884_vm2, %v2206_v28, -inf }
 0xaa5   : > { %v2368_v31 = vpop.f32.mrf.mxu1  ;;  %2208 = vmax.xlane.f32.xlu0 %v2207_v30 }
 0xaa6   : > { %v2372_v32 = vmul.f32 0.35355338, %v2368_v31 }
 0xaa7   : > { %v5288_v33 = vpop.f32.mrf.mxu1 }
 0xaa8   : > { %v2373_v34 = vsel %vm884_vm2, %v2372_v32, -inf }
 0xaa9   : > { %2374 = vmax.xlane.f32.xlu0 %v2373_v34 }
 0xab2   : > { %1886 = vrot.lane.b32.xlu1 %v6078_v0, %s6692_s28 }
 0xab7   : > { %v1877_v35 = vpop.xlane.xlu0 %1876 }
 0xab8   : > { %v1878_v37 = vsub.f32 %v1874_v20, %v1877_v35 }
 0xaba   : > { %v1879_v38 = vmul.f32 1.442695, %v1878_v37 }
 0xabc   : > { %5577 = vpow2.f32 %v1879_v38 }
 0xac9   : > { %v5578_v36 = vpop.eup %5577 }
 0xaca   : > { %v1881_v39 = vsel %vm884_vm2, %v5578_v36, 0.0 }
 0xad6   : > { %1882 = vadd.xlane.f32.xlu1 %v1881_v39 }
 0xb2a   : > { %v2043_v40 = vpop.xlane.xlu1 %2042 }
 0xb2b   : > { %v2044_v41 = vsub.f32 %v2040_v24, %v2043_v40 }
 0xb2d   : > { %v2045_v42 = vmul.f32 1.442695, %v2044_v41  ;;  %v5535_v41 = vld [vmem:[%s6586_s16 + $0x8] sm:$0xff]  }
 0xb2e   : > { %v1887_v43 = vpop.permute.xlu1 %1886  ;;  %v2209_v44 = vpop.xlane.xlu0 %2208 }
 0xb2f   : > { %5579 = vpow2.f32 %v2045_v42  ;;  %v2210_v45 = vsub.f32 %v2206_v28, %v2209_v44  ;;  %5260 = vmatpush3.msra.mxu0 %v1887_v43  ;;  %v4936_v28 = vld [vmem:[%s6700_s13] ss:$0 sm:$0xff]  ;;  %v5537_v42 = vld [vmem:[%s6588_s18 + $0x18] sm:$0xff]   ;;  %v5538_v43 = vld [vmem:[%s6588_s18 + $0x10] sm:$0xff]   ;;  %s6703_s13 = smov 40  }
 0xb30   : > { %5269 = vmatprep.subr.mxu0 %v5699_v1 }
 0xb31   : > { %v2211_v46 = vmul.f32 1.442695, %v2210_v45 }
 0xb32   : > { %v2375_v3 = vpop.xlane.xlu0 %2374 }
 0xb33   : > { %5581 = vpow2.f32 %v2211_v46  ;;  %v2376_v47 = vsub.f32 %v2372_v32, %v2375_v3 }
 0xb35   : > { %v2377_v48 = vmul.f32 1.442695, %v2376_v47  ;;  %v4940_v47 = vld [vmem:[%s6584_s14] ss:$0 sm:$0xff] }
 0xb37   : > { %5583 = vpow2.f32 %v2377_v48 }
 0xb3c   : > { %v5580_v50 = vpop.eup %5579 }
 0xb3d   : > { %v2047_v51 = vsel %vm884_vm2, %v5580_v50, 0.0 }
 0xb3e   : > { %2048 = vadd.xlane.f32.xlu0 %v2047_v51 }
 0xb40   : > { %v5582_v52 = vpop.eup %5581 }
 0xb41   : > { %v2213_v53 = vsel %vm884_vm2, %v5582_v52, 0.0 }
 0xb42   : > { %2214 = vadd.xlane.f32.xlu1 %v2213_v53 }
 0xb44   : > { %v5584_v54 = vpop.eup %5583 }
 0xb45   : > { %v2379_v55 = vsel %vm884_vm2, %v5584_v54, 0.0 }
 0xb46   : > { %2380 = vadd.xlane.f32.xlu0 %v2379_v55  ;;  %v5540_v55 = vld [vmem:[%s6588_s18] sm:$0xff]  }
 0xb53   : > { %2218 = vrot.lane.b32.xlu1 %v6078_v0, %s6693_s6 }
 0xb57   : > { %2384 = vrot.lane.b32.xlu1 %v6078_v0, %s6694_s4 }
 0xb5c   : > { %2052 = vrot.lane.b32.xlu0 %v6078_v0, %s6695_s27 }
 0xb5f   : > { %v1883_v56 = vpop.xlane.xlu1 %1882 }
 0xb60   : > { %5585 = vrcp.f32 %v1883_v56  ;;  %v4942_v56 = vld [vmem:[%s6587_s17] ss:$0 sm:$0xff] }
 0xb6d   : > { %v5586_v57 = vpop.eup %5585 }
 0xb6e   : > { %v1885_v58 = vmul.f32 %v5586_v57, %v5578_v36 }
 0xb70   : > { %5262 = vmatmul.mubr.msk.f32.vlgmr.msra.gmra.mxu0 %vm884_vm2, %v1885_v58 }
 0xb71   : > { %5271 = vmatprep.mubr.msk.f32.mxu0 %vm5700_vm0, %v5699_v1 }
 0xbc7   : > { %v2049_v59 = vpop.xlane.xlu0 %2048 }
 0xbc8   : > { %5587 = vrcp.f32 %v2049_v59 }
 0xbcb   : > { %v2215_v61 = vpop.xlane.xlu1 %2214 }
 0xbcc   : > { %5589 = vrcp.f32 %v2215_v61 }
 0xbcf   : > { %v2381_v62 = vpop.xlane.xlu0 %2380  ;;  %v2219_v0 = vpop.permute.xlu1 %2218 }
 0xbd0   : > { %5591 = vrcp.f32 %v2381_v62 }
 0xbd3   : > { %v2053_v63 = vpop.permute.xlu0 %2052  ;;  %v2385_v8 = vpop.permute.xlu1 %2384 }
 0xbd4   : > { %5270 = vmatpush3.msra.mxu0 %v2053_v63 }
 0xbd5   : > { %v5588_v2 = vpop.eup %5587  ;;  %5279 = vmatprep.subr.mxu0 %v5699_v1 }
 0xbd6   : > { %v2051_v4 = vmul.f32 %v5588_v2, %v5580_v50  ;;  %v4941_v50 = vld [vmem:[%s6585_s15] ss:$0 sm:$0xff] }
 0xbd8   : > { %5272 = vmatmul.mubr.msk.f32.vlgmr.msra.gmra.mxu0 %vm884_vm2, %v2051_v4 }
 0xbd9   : > { %v5590_v5 = vpop.eup %5589  ;;  %5280 = vmatpush3.msra.mxu0 %v2219_v0  ;;  %5281 = vmatprep.mubr.msk.f32.mxu0 %vm5700_vm0, %v5699_v1  ;;  %v4946_v0 = vld [vmem:[%s6589_s19] ss:$0 sm:$0xff] }
 0xbda   : > { %5289 = vmatprep.subr.mxu0 %v5699_v1  ;;  %v2217_v6 = vmul.f32 %v5590_v5, %v5582_v52 }
 0xbdc   : > { %5282 = vmatmul.mubr.msk.f32.vlgmr.msra.gmra.mxu0 %vm884_vm2, %v2217_v6 }
 0xbdd   : > { %v5592_v9 = vpop.eup %5591  ;;  %5290 = vmatpush3.msra.mxu0 %v2385_v8  ;;  %5291 = vmatprep.mubr.msk.f32.mxu0 %vm5700_vm0, %v5699_v1 }
 0xbde   : > { %v2383_v10 = vmul.f32 %v5592_v9, %v5584_v54  ;;  %5302 = vmatprep.subr.bf16.mxu0 %v5699_v1  ;;  %v5539_v54 = vld [vmem:[%s6588_s18 + $0x8] sm:$0xff]  }
 0xbe0   : > { %5292 = vmatmul.mubr.msk.f32.vlgmr.msra.gmra.mxu0 %vm884_vm2, %v2383_v10 }
 0xbe1   : > { %5306 = vmatprep.mubr.msk.bf16.mxu0 %vm5700_vm0, %v5699_v1  ;;  %5303 = vmatpush3.bf16.msra.mxu0 %v5535_v41 }
 0xbe2   : > { %5304 = vmatprep.subr.bf16.mxu0 %v5699_v1 }
 0xc30   : > { %v1958_v11 = vpop.f32.mrf.mxu0 }
 0xc32   : > { %v5263_v12 = vpop.f32.mrf.mxu0 }
 0xc98   : > { %v2124_v15 = vpop.f32.mrf.mxu0 }
 0xc99   : > { %2461 = vrot.lane.b32.xlu0 %v2124_v15, %s6697_s10 }
 0xc9a   : > { %v5273_v7 = vpop.f32.mrf.mxu0 }
 0xc9c   : > { %v2290_v16 = vpop.f32.mrf.mxu0 }
 0xc9d   : > { %2465 = vrot.lane.b32.xlu1 %v2290_v16, %s6698_s11  ;;  %v5541_v16 = vld [vmem:[%s6676_s1 + $0x18] sm:$0xff]  }
 0xc9e   : > { %v5283_v18 = vpop.f32.mrf.mxu0 }
 0xc9f   : > { %v5542_v18 = vld [vmem:[%s6676_s1 + $0x10] sm:$0xff]  }
 0xca0   : > { %v2456_v19 = vpop.f32.mrf.mxu0 }
 0xca1   : > { %2469 = vrot.lane.b32.xlu0 %v2456_v19, %s6699_s22 }
 0xca2   : > { %v5293_v20 = vpop.f32.mrf.mxu0 }
 0xd0b   : > { %v2462_v21 = vpop.permute.xlu0 %2461 }
 0xd0c   : > { %v2472_v23 = vsel %vm884_vm2, %v1958_v11, %v2462_v21 }
 0xd0f   : > { %v2466_v22 = vpop.permute.xlu1 %2465 }
 0xd10   : > { %v2473_v24 = vsel %vm1562_vm4, %v2472_v23, %v2466_v22  ;;  %v4952_v23 = vld [vmem:[%s6590_s20] ss:$0 sm:$0xff] }
 0xd13   : > { %v2470_v25 = vpop.permute.xlu0 %2469 }
 0xd14   : > { %v2474_v26 = vsel %vm1564_vm5, %v2473_v24, %v2470_v25  ;;  %v4953_v25 = vld [vmem:[%s6591_s21] ss:$0 sm:$0xff] }
 0xd15   : > { %v2475_v27 = vpack.c.bf16 %v2474_v26, %v2474_v26 }
 0xd17   : > { %5299 = vmatmul.mubr.msk.bf16.vlgmr.msra.gmra.mxu1 %vm837_vm1, %v2475_v27 }
 0xd18   : > { %5318 = vmatprep.mubr.msk.bf16.mxu1 %vm5700_vm0, %v5699_v1  ;;  %5311 = vmatpush3.bf16.msra.mxu1 %v5537_v42 }
 0xd19   : > { %5312 = vmatprep.subr.bf16.mxu1 %v5699_v1 }
 0xd1c   : > { %5313 = vmatpush3.bf16.msra.mxu1 %v5538_v43 }
 0xd1d   : > { %5314 = vmatprep.subr.bf16.mxu1 %v5699_v1 }
 0xd20   : > { %5315 = vmatpush3.bf16.msra.mxu1 %v5539_v54 }
 0xd21   : > { %5316 = vmatprep.subr.bf16.mxu1 %v5699_v1 }
 0xd24   : > { %5317 = vmatpush3.bf16.msra.mxu1 %v5540_v55 }
 0xd25   : > { %5340 = vmatprep.subr.mxu1 %v5699_v1 }
 0xdd7   : > { %v2536_v29 = vpop.f32.mrf.mxu1 }
 0xdd8   : > { %v2537_v30 = vadd.f32 %v4936_v28, %v2536_v29  ;;  %v4959_v29 = vld [vmem:[%s6678_s5 + $0x1] ss:$0 sm:$0xff] }
 0xdd9   : > { %v5300_v31 = vpop.f32.mrf.mxu1 }
 0xdda   : > { %v2542_v32 = vadd.f32 %v2537_v30, %v6068_v60  ;;  %v5536_v60 = vld [vmem:[%s6586_s16] sm:$0xff]  }
 0xddb   : > { %v2539_v33 = vpop.f32.mrf.mxu1  ;;  %5305 = vmatpush3.bf16.msra.mxu0 %v5536_v60 }
 0xddc   : > { %v2545_v34 = vsel %vm837_vm1, %v2542_v32, 0.0  ;;  %5322 = vmatprep.subr.bf16.mxu0 %v5699_v1 }
 0xddd   : > { %2546 = vadd.xlane.f32.xlu1 %v2545_v34  ;;  %v5301_v35 = vpop.f32.mrf.mxu1 }
 0xe66   : > { %v2547_v37 = vpop.xlane.xlu1 %2546 }
 0xe67   : > { %v2548_v38 = vmul.f32 0.03125, %v2547_v37 }
 0xe69   : > { %v2549_v36 = vsub.f32 %v2542_v32, %v2548_v38 }
 0xe6b   : > { %v2550_v39 = vmul.f32 %v2549_v36, %v2549_v36 }
 0xe6d   : > { %v2551_v40 = vsel %vm837_vm1, %v2550_v39, 0.0 }
 0xe6e   : > { %2552 = vadd.xlane.f32.xlu0 %v2551_v40 }
 0xef7   : > { %v2553_v44 = vpop.xlane.xlu0 %2552 }
 0xef8   : > { %v2554_v45 = vmul.f32 0.03125, %v2553_v44 }
 0xefa   : > { %v2555_v46 = vadd.f32 1e-05, %v2554_v45 }
 0xefc   : > { %5593 = vrsqrt.f32 %v2555_v46 }
 0xf09   : > { %v5594_v3 = vpop.eup %5593 }
 0xf0a   : > { %v2557_v48 = vmul.f32 %v5594_v3, %v2549_v36 }
 0xf0c   : > { %v2564_v51 = vmul.f32 %v4940_v47, %v2557_v48 }
 0xf0e   : > { %v2571_v52 = vadd.f32 %v4941_v50, %v2564_v51 }
 0xf10   : > { %v2572_v53 = vpack.c.bf16 %v2571_v52, %v2571_v52 }
 0xf12   : > { %5307 = vmatmul.mubr.msk.bf16.vlgmr.msra.gmra.mxu0 %vm837_vm1, %v2572_v53 }
 0xf13   : > { %5326 = vmatprep.mubr.msk.bf16.mxu0 %vm5700_vm0, %v5699_v1  ;;  %5323 = vmatpush3.bf16.msra.mxu0 %v5541_v16 }
 0xf14   : > { %5324 = vmatprep.subr.bf16.mxu0 %v5699_v1 }
 0xf17   : > { %5325 = vmatpush3.bf16.msra.mxu0 %v5542_v18 }
 0xf18   : > { %5330 = vmatprep.subr.mxu0 %v5699_v1 }
 0xfd2   : > { %v2633_v57 = vpop.f32.mrf.mxu0 }
 0xfd3   : > { %v2634_v58 = vadd.f32 %v4942_v56, %v2633_v57 }
 0xfd4   : > { %v5308_v59 = vpop.f32.mrf.mxu0 }
 0xfd5   : > { %v2639_v61 = vmax.f32 %v2634_v58, 0.0 }
 0xfd6   : > { %v2636_v62 = vpop.f32.mrf.mxu0 }
 0xfd7   : > { %v2640_v63 = vpack.c.bf16 %v2639_v61, %v2639_v61 }
 0xfd8   : > { %v5309_v2 = vpop.f32.mrf.mxu0 }
 0xfd9   : > { %5319 = vmatmul.mubr.msk.bf16.vlgmr.msra.gmra.mxu1 %vm2680_vm6, %v2640_v63 }
 0xfda   : > { %5342 = vmatprep.mubr.msk.f32.mxu1 %vm5700_vm0, %v5699_v1 }
0x1099   : > { %v2718_v4 = vpop.f32.mrf.mxu1 }
0x109a   : > { %v2719_v5 = vadd.f32 %v4946_v0, %v2718_v4 }
0x109b   : > { %v5320_v6 = vpop.f32.mrf.mxu1 }
0x109c   : > { %v2724_v8 = vadd.f32 %v2719_v5, %v2571_v52 }
0x109d   : > { %v2721_v9 = vpop.f32.mrf.mxu1 }
0x109e   : > { %v2727_v10 = vsel %vm837_vm1, %v2724_v8, 0.0 }
0x109f   : > { %2728 = vadd.xlane.f32.xlu0 %v2727_v10  ;;  %v5321_v11 = vpop.f32.mrf.mxu1 }
0x1128   : > { %v2729_v12 = vpop.xlane.xlu0 %2728 }
0x1129   : > { %v2730_v13 = vmul.f32 0.03125, %v2729_v12 }
0x112b   : > { %v2731_v14 = vsub.f32 %v2724_v8, %v2730_v13 }
0x112d   : > { %v2732_v15 = vmul.f32 %v2731_v14, %v2731_v14 }
0x112f   : > { %v2733_v7 = vsel %vm837_vm1, %v2732_v15, 0.0 }
0x1130   : > { %2734 = vadd.xlane.f32.xlu1 %v2733_v7 }
0x11b9   : > { %v2735_v19 = vpop.xlane.xlu1 %2734 }
0x11ba   : > { %v2736_v20 = vmul.f32 0.03125, %v2735_v19 }
0x11bc   : > { %v2737_v21 = vadd.f32 1e-05, %v2736_v20 }
0x11be   : > { %5595 = vrsqrt.f32 %v2737_v21 }
0x11cb   : > { %v5596_v22 = vpop.eup %5595 }
0x11cc   : > { %v2739_v24 = vmul.f32 %v5596_v22, %v2731_v14 }
0x11ce   : > { %v2746_v26 = vmul.f32 %v4952_v23, %v2739_v24 }
0x11d0   : > { %v6226_v27 = vadd.f32 %v4953_v25, %v2746_v26 }
0x11d2   : > { %v2754_v28 = vpack.c.bf16 %v6226_v27, %v6226_v27 }
0x11d4   : > { %5327 = vmatmul.mubr.msk.bf16.vlgmr.msra.gmra.mxu0 %vm837_vm1, %v2754_v28 }
0x11d5   : > { %5332 = vmatprep.mubr.msk.f32.mxu0 %vm5700_vm0, %v5699_v1 }
0x1294   : > { %v2817_v30 = vpop.f32.mrf.mxu0 }
0x1295   : > { %v6236_v31 = vadd.f32 %v4959_v29, %v2817_v30 }
0x1296   : > { %v5328_v32 = vpop.f32.mrf.mxu0 }
0x1297   : > { %2991 = vrot.lane.b32.xlu1 %v6236_v31, %s6695_s27  ;;  %2824 = vrot.lane.b32.xlu0 %v6236_v31, %s6692_s28 }
0x1298   : > { %v2820_v33 = vpop.f32.mrf.mxu0 }
0x129a   : > { %v5329_v34 = vpop.f32.mrf.mxu0 }
0x129b   : > { %2989 = vrot.lane.b32.xlu1 %v6236_v31, %s6688_s7  ;;  %3158 = vrot.lane.b32.xlu0 %v6236_v31, %s6693_s6 }
0x129f   : > { %3156 = vrot.lane.b32.xlu1 %v6236_v31, %s6689_s25  ;;  %3325 = vrot.lane.b32.xlu0 %v6236_v31, %s6694_s4 }
0x12a3   : > { %3323 = vrot.lane.b32.xlu1 %v6236_v31, %s6690_s2 }
0x1309   : > { %v2992_v35 = vpop.permute.xlu1 %2991  ;;  %v2825_v37 = vpop.permute.xlu0 %2824 }
0x130a   : > { %5331 = vmatpush3.xpose.msk.msra.mxu0 %vm884_vm2, %v2825_v37  ;;  %5341 = vmatpush3.xpose.msk.msra.mxu1 %vm884_vm2, %v2992_v35 }
0x130b   : > { %5350 = vmatprep.subr.mxu1 %v5699_v1  ;;  %5335 = vmatprep.subr.mxu0 %v5699_v1 }
0x130d   : > { %v2990_v38 = vpop.permute.xlu1 %2989  ;;  %5333 = vmatmul.mubr.msk.f32.vlgmr.msra.gmra.mxu0 %vm884_vm2, %v6236_v31  ;;  %v3159_v36 = vpop.permute.xlu0 %3158 }
0x130e   : > { %5343 = vmatmul.mubr.msk.f32.vlgmr.msra.gmra.mxu1 %vm884_vm2, %v2990_v38  ;;  %5337 = vmatprep.mubr.msk.f32.mxu0 %vm5700_vm0, %v5699_v1  ;;  %v5543_v38 = vld [vmem:[%s6679_s30 + $0x18] sm:$0xff]  }
0x130f   : > { %5351 = vmatpush3.xpose.msk.msra.mxu1 %vm884_vm2, %v3159_v36  ;;  %5352 = vmatprep.mubr.msk.f32.mxu1 %vm5700_vm0, %v5699_v1  ;;  %v5544_v36 = vld [vmem:[%s6679_s30 + $0x10] sm:$0xff]  }
0x1310   : > { %5360 = vmatprep.subr.mxu1 %v5699_v1 }
0x1311   : > { %v3157_v39 = vpop.permute.xlu1 %3156  ;;  %v3326_v40 = vpop.permute.xlu0 %3325 }
0x1312   : > { %5353 = vmatmul.mubr.msk.f32.vlgmr.msra.gmra.mxu1 %vm884_vm2, %v3157_v39 }
0x1313   : > { %5361 = vmatpush3.xpose.msk.msra.mxu1 %vm884_vm2, %v3326_v40  ;;  %5362 = vmatprep.mubr.msk.f32.mxu1 %vm5700_vm0, %v5699_v1 }
0x1314   : > { %5370 = vmatprep.subr.bf16.mxu1 %v5699_v1 }
0x1315   : > { %v3324_v41 = vpop.permute.xlu1 %3323 }
0x1316   : > { %5363 = vmatmul.mubr.msk.f32.vlgmr.msra.gmra.mxu1 %vm884_vm2, %v3324_v41 }
0x1317   : > { %5374 = vmatprep.mubr.msk.bf16.mxu1 %vm5700_vm0, %v5699_v1  ;;  %5371 = vmatpush3.bf16.msra.mxu1 %v5543_v38 }
0x1318   : > { %5372 = vmatprep.subr.bf16.mxu1 %v5699_v1 }
0x131b   : > { %5373 = vmatpush3.bf16.msra.mxu1 %v5544_v36 }
0x131c   : > { %5386 = vmatprep.subr.bf16.mxu1 %v5699_v1 }
0x13cd   : > { %v2896_v60 = vpop.f32.mrf.mxu0 }
0x13ce   : > { %v2900_v42 = vmul.f32 0.35355338, %v2896_v60  ;;  %v3063_v43 = vpop.f32.mrf.mxu1 }
0x13cf   : > { %v3067_v44 = vmul.f32 0.35355338, %v3063_v43  ;;  %v5334_v45 = vpop.f32.mrf.mxu0 }
0x13d0   : > { %v5344_v46 = vpop.f32.mrf.mxu1  ;;  %v2901_v3 = vadd.f32 %v2900_v42, %v5953_v17 }
0x13d1   : > { %v3068_v47 = vadd.f32 %v3067_v44, %v5953_v17 }
0x13d2   : > { %v3230_v48 = vpop.f32.mrf.mxu1  ;;  %v2902_v50 = vsel %vm884_vm2, %v2901_v3, -inf }
0x13d3   : > { %v3234_v51 = vmul.f32 0.35355338, %v3230_v48  ;;  %2903 = vmax.xlane.f32.xlu0 %v2902_v50  ;;  %v3069_v52 = vsel %vm884_vm2, %v3068_v47, -inf }
0x13d4   : > { %3070 = vmax.xlane.f32.xlu1 %v3069_v52  ;;  %v5354_v53 = vpop.f32.mrf.mxu1 }
0x13d5   : > { %v3235_v54 = vadd.f32 %v3234_v51, %v5953_v17  ;;  %v4980_v53 = vld [vmem:[%s6680_s0 + $0x1] ss:$0 sm:$0xff]  ;;  %s6706_s0 = sld [smem:[#allocation20_spill]] }
0x13d6   : > { %v3397_v55 = vpop.f32.mrf.mxu1 }
0x13d7   : > { %v3401_v56 = vmul.f32 0.35355338, %v3397_v55  ;;  %v3236_v57 = vsel %vm884_vm2, %v3235_v54, -inf }
0x13d8   : > { %v5364_v58 = vpop.f32.mrf.mxu1  ;;  %3237 = vmax.xlane.f32.xlu0 %v3236_v57 }
0x13d9   : > { %v3402_v59 = vadd.f32 %v3401_v56, %v5953_v17 }
0x13db   : > { %v3403_v61 = vsel %vm884_vm2, %v3402_v59, -inf }
0x13dc   : > { %3404 = vmax.xlane.f32.xlu0 %v3403_v61 }
0x13e5   : > { %2913 = vrot.lane.b32.xlu1 %v6236_v31, %s6701_s24  ;;  %s6705_s24 = sld [smem:[#allocation22_spill]] }
0x145c   : > { %v2904_v62 = vpop.xlane.xlu0 %2903 }
0x145d   : > { %v2905_v63 = vsub.f32 %v2901_v3, %v2904_v62  ;;  %v3071_v2 = vpop.xlane.xlu1 %3070 }
0x145e   : > { %v3072_v0 = vsub.f32 %v3068_v47, %v3071_v2 }
0x145f   : > { %v2906_v4 = vmul.f32 1.442695, %v2905_v63 }
0x1460   : > { %v3073_v5 = vmul.f32 1.442695, %v3072_v0 }
0x1461   : > { %5597 = vpow2.f32 %v2906_v4  ;;  %v2914_v6 = vpop.permute.xlu1 %2913  ;;  %v3238_v8 = vpop.xlane.xlu0 %3237 }
0x1462   : > { %5599 = vpow2.f32 %v3073_v5  ;;  %v3239_v9 = vsub.f32 %v3235_v54, %v3238_v8  ;;  %5336 = vmatpush3.msra.mxu0 %v2914_v6  ;;  %v5545_v5 = vld [vmem:[%s6683_s26 + $0x18] sm:$0xff]   ;;  %v5548_v8 = vld [vmem:[%s6705_s24 + $0x10] sm:$0xff]  }
0x1463   : > { %5345 = vmatprep.subr.mxu0 %v5699_v1  ;;  %v5547_v6 = vld [vmem:[%s6705_s24 + $0x18] sm:$0xff]  }
0x1464   : > { %v3240_v17 = vmul.f32 1.442695, %v3239_v9 }
0x1465   : > { %v3405_v10 = vpop.xlane.xlu0 %3404 }
0x1466   : > { %5601 = vpow2.f32 %v3240_v17  ;;  %v3406_v11 = vsub.f32 %v3402_v59, %v3405_v10 }
0x1468   : > { %v3407_v12 = vmul.f32 1.442695, %v3406_v11 }
0x146a   : > { %5603 = vpow2.f32 %v3407_v12  ;;  %v4986_v12 = vld [vmem:[%s6706_s0 + $0x1] ss:$0 sm:$0xff]  ;;  %s6712_s0 = sld [smem:[#allocation30_spill]] }
0x146e   : > { %v5598_v13 = vpop.eup %5597 }
0x146f   : > { %v5600_v14 = vpop.eup %5599  ;;  %v2908_v15 = vsel %vm884_vm2, %v5598_v13, 0.0 }
0x1470   : > { %2909 = vadd.xlane.f32.xlu1 %v2908_v15  ;;  %v3075_v7 = vsel %vm884_vm2, %v5600_v14, 0.0 }
0x1471   : > { %3076 = vadd.xlane.f32.xlu0 %v3075_v7 }
0x1473   : > { %v5602_v16 = vpop.eup %5601 }
0x1474   : > { %v3242_v18 = vsel %vm884_vm2, %v5602_v16, 0.0 }
0x1475   : > { %3243 = vadd.xlane.f32.xlu1 %v3242_v18 }
0x1477   : > { %v5604_v19 = vpop.eup %5603 }
0x1478   : > { %v3409_v20 = vsel %vm884_vm2, %v5604_v19, 0.0 }
0x1479   : > { %3410 = vadd.xlane.f32.xlu0 %v3409_v20 }
0x1486   : > { %3247 = vrot.lane.b32.xlu1 %v6236_v31, %s6702_s3 }
0x148a   : > { %3414 = vrot.lane.b32.xlu1 %v6236_v31, %s6703_s13  ;;  %s6708_s13 = sld [smem:[#allocation25_spill]] }
0x148f   : > { %3080 = vrot.lane.b32.xlu0 %v6236_v31, %s6704_s8 }
0x14f9   : > { %v2910_v21 = vpop.xlane.xlu1 %2909 }
0x14fa   : > { %5605 = vrcp.f32 %v2910_v21  ;;  %v3077_v22 = vpop.xlane.xlu0 %3076 }
0x14fb   : > { %5607 = vrcp.f32 %v3077_v22 }
0x14fe   : > { %v3244_v23 = vpop.xlane.xlu1 %3243 }
0x14ff   : > { %5609 = vrcp.f32 %v3244_v23 }
0x1502   : > { %v3411_v24 = vpop.xlane.xlu0 %3410  ;;  %v3248_v30 = vpop.permute.xlu1 %3247 }
0x1503   : > { %5611 = vrcp.f32 %v3411_v24  ;;  %v4993_v24 = vld [vmem:[%s6709_s12 + $0x1] ss:$0 sm:$0xff] }
0x1506   : > { %v3081_v29 = vpop.permute.xlu0 %3080  ;;  %v3415_v35 = vpop.permute.xlu1 %3414 }
0x1507   : > { %v5606_v25 = vpop.eup %5605 }
0x1508   : > { %v2912_v26 = vmul.f32 %v5606_v25, %v5598_v13  ;;  %v5608_v28 = vpop.eup %5607 }
0x1509   : > { %v3079_v31 = vmul.f32 %v5608_v28, %v5600_v14 }
0x150a   : > { %5338 = vmatmul.mubr.msk.f32.vlgmr.msra.gmra.mxu0 %vm884_vm2, %v2912_v26 }
0x150b   : > { %5346 = vmatpush3.msra.mxu0 %v3081_v29  ;;  %5347 = vmatprep.mubr.msk.f32.mxu0 %vm5700_vm0, %v5699_v1 }
0x150c   : > { %5355 = vmatprep.subr.mxu0 %v5699_v1  ;;  %v5610_v32 = vpop.eup %5609 }
0x150d   : > { %v3246_v33 = vmul.f32 %v5610_v32, %v5602_v16  ;;  %v5002_v16 = vld [vmem:[%s6708_s13 + $0x1] ss:$0 sm:$0xff]  ;;  %s6718_s13 = sld [smem:[#allocation31_spill]] }
0x150e   : > { %5348 = vmatmul.mubr.msk.f32.vlgmr.msra.gmra.mxu0 %vm884_vm2, %v3079_v31 }
0x150f   : > { %5356 = vmatpush3.msra.mxu0 %v3248_v30  ;;  %5357 = vmatprep.mubr.msk.f32.mxu0 %vm5700_vm0, %v5699_v1 }
0x1510   : > { %5365 = vmatprep.subr.mxu0 %v5699_v1  ;;  %v5612_v34 = vpop.eup %5611 }
0x1511   : > { %v3413_v37 = vmul.f32 %v5612_v34, %v5604_v19 }
0x1512   : > { %5358 = vmatmul.mubr.msk.f32.vlgmr.msra.gmra.mxu0 %vm884_vm2, %v3246_v33 }
0x1513   : > { %5366 = vmatpush3.msra.mxu0 %v3415_v35  ;;  %5367 = vmatprep.mubr.msk.f32.mxu0 %vm5700_vm0, %v5699_v1 }
0x1514   : > { %5378 = vmatprep.subr.bf16.mxu0 %v5699_v1 }
0x1516   : > { %5368 = vmatmul.mubr.msk.f32.vlgmr.msra.gmra.mxu0 %vm884_vm2, %v3413_v37 }
0x1517   : > { %5382 = vmatprep.mubr.msk.bf16.mxu0 %vm5700_vm0, %v5699_v1  ;;  %5379 = vmatpush3.bf16.msra.mxu0 %v5547_v6 }
0x1518   : > { %5380 = vmatprep.subr.bf16.mxu0 %v5699_v1 }
0x151b   : > { %5381 = vmatpush3.bf16.msra.mxu0 %v5548_v8 }
0x151c   : > { %5394 = vmatprep.subr.mxu0 %v5699_v1 }
0x15ca   : > { %v2985_v39 = vpop.f32.mrf.mxu0 }
0x15cc   : > { %v5339_v40 = vpop.f32.mrf.mxu0 }
0x15ce   : > { %v3152_v41 = vpop.f32.mrf.mxu0 }
0x15cf   : > { %3491 = vrot.lane.b32.xlu0 %v3152_v41, %s6697_s10 }
0x15d0   : > { %v5349_v60 = vpop.f32.mrf.mxu0 }
0x15d2   : > { %v3319_v42 = vpop.f32.mrf.mxu0 }
0x15d3   : > { %3495 = vrot.lane.b32.xlu1 %v3319_v42, %s6698_s11 }
0x15d4   : > { %v5359_v43 = vpop.f32.mrf.mxu0 }
0x15d6   : > { %v3486_v44 = vpop.f32.mrf.mxu0 }
0x15d7   : > { %3499 = vrot.lane.b32.xlu0 %v3486_v44, %s6699_s22 }
0x15d8   : > { %v5369_v45 = vpop.f32.mrf.mxu0 }
0x1641   : > { %v3492_v46 = vpop.permute.xlu0 %3491 }
0x1642   : > { %v3502_v47 = vsel %vm884_vm2, %v2985_v39, %v3492_v46 }
0x1645   : > { %v3496_v3 = vpop.permute.xlu1 %3495 }
0x1646   : > { %v3503_v48 = vsel %vm1562_vm4, %v3502_v47, %v3496_v3 }
0x1649   : > { %v3500_v50 = vpop.permute.xlu0 %3499 }
0x164a   : > { %v3504_v51 = vsel %vm1564_vm5, %v3503_v48, %v3500_v50 }
0x164b   : > { %v3505_v52 = vpack.c.bf16 %v3504_v51, %v3504_v51 }
0x164d   : > { %5375 = vmatmul.mubr.msk.bf16.vlgmr.msra.gmra.mxu1 %vm837_vm1, %v3505_v52 }
0x164e   : > { %5390 = vmatprep.mubr.msk.bf16.mxu1 %vm5700_vm0, %v5699_v1  ;;  %5387 = vmatpush3.bf16.msra.mxu1 %v5545_v5 }
0x164f   : > { %5388 = vmatprep.subr.bf16.mxu1 %v5699_v1 }
0x170d   : > { %v3568_v54 = vpop.f32.mrf.mxu1 }
0x170e   : > { %v3569_v55 = vadd.f32 %v4980_v53, %v3568_v54 }
0x170f   : > { %v5376_v56 = vpop.f32.mrf.mxu1 }
0x1710   : > { %v3574_v57 = vadd.f32 %v3569_v55, %v6226_v27  ;;  %v5546_v27 = vld [vmem:[%s6683_s26 + $0x10] sm:$0xff]  }
0x1711   : > { %v3571_v58 = vpop.f32.mrf.mxu1  ;;  %5389 = vmatpush3.bf16.msra.mxu1 %v5546_v27 }
0x1712   : > { %v3579_v59 = vsel %vm837_vm1, %v3574_v57, 0.0  ;;  %5404 = vmatprep.subr.mxu1 %v5699_v1 }
0x1713   : > { %3580 = vadd.xlane.f32.xlu1 %v3579_v59  ;;  %v5377_v61 = vpop.f32.mrf.mxu1 }
0x1714   : > { %5391 = vmatmul.mubr.msk.bf16.vlgmr.msra.gmra.mxu1 %vm837_vm1, %v6047_v49  ;;  %v4987_v49 = vld [vmem:[%s6707_s9 + $0x1] ss:$0 sm:$0xff] }
0x1715   : > { %5406 = vmatprep.mubr.msk.f32.mxu1 %vm5700_vm0, %v5699_v1 }
0x179c   : > { %v3581_v62 = vpop.xlane.xlu1 %3580 }
0x179d   : > { %v3582_v63 = vmul.f32 0.03125, %v3581_v62 }
0x179f   : > { %v3583_v2 = vsub.f32 %v3574_v57, %v3582_v63 }
0x17a1   : > { %v3584_v0 = vmul.f32 %v3583_v2, %v3583_v2 }
0x17a3   : > { %v3585_v4 = vsel %vm837_vm1, %v3584_v0, 0.0 }
0x17a4   : > { %3586 = vadd.xlane.f32.xlu0 %v3585_v4 }
0x17d4   : > { %v3734_v18 = vpop.f32.mrf.mxu1 }
0x17d5   : > { %v6368_v19 = vadd.f32 %v5002_v16, %v3734_v18 }
0x17d6   : > { %v5392_v20 = vpop.f32.mrf.mxu1 }
0x17d7   : > { %3906 = vrot.lane.b32.xlu0 %v6368_v19, %s6688_s7 }
0x17d8   : > { %v3737_v21 = vpop.f32.mrf.mxu1 }
0x17da   : > { %v5393_v22 = vpop.f32.mrf.mxu1 }
0x182d   : > { %v3587_v9 = vpop.xlane.xlu0 %3586 }
0x182e   : > { %v3588_v17 = vmul.f32 0.03125, %v3587_v9 }
0x1830   : > { %v3589_v10 = vadd.f32 1e-05, %v3588_v17 }
0x1832   : > { %5613 = vrsqrt.f32 %v3589_v10 }
0x183f   : > { %v5614_v11 = vpop.eup %5613 }
0x1840   : > { %v3591_v13 = vmul.f32 %v5614_v11, %v3583_v2 }
0x1842   : > { %v3598_v14 = vmul.f32 %v4986_v12, %v3591_v13 }
0x1844   : > { %v6358_v15 = vadd.f32 %v4987_v49, %v3598_v14 }
0x1846   : > { %v3606_v7 = vpack.c.bf16 %v6358_v15, %v6358_v15 }
0x1848   : > { %5383 = vmatmul.mubr.msk.bf16.vlgmr.msra.gmra.mxu0 %vm837_vm1, %v3606_v7 }
0x1849   : > { %5396 = vmatprep.mubr.msk.f32.mxu0 %vm5700_vm0, %v5699_v1  ;;  %5395 = vmatpush3.xpose.msk.msra.mxu0 %vm884_vm2, %v6368_v19  ;;  %v3907_v23 = vpop.permute.xlu0 %3906 }
0x184a   : > { %5399 = vmatprep.subr.mxu0 %v5699_v1  ;;  %5405 = vmatpush3.xpose.msk.msra.mxu1 %vm884_vm2, %v3907_v23 }
0x184b   : > { %5414 = vmatprep.subr.mxu1 %v5699_v1 }
0x1908   : > { %v3669_v25 = vpop.f32.mrf.mxu0 }
0x1909   : > { %v3670_v26 = vadd.f32 %v4993_v24, %v3669_v25 }
0x190a   : > { %v5384_v28 = vpop.f32.mrf.mxu0 }
0x190b   : > { %4070 = vrot.lane.b32.xlu0 %v3670_v26, %s6689_s25  ;;  %3904 = vrot.lane.b32.xlu1 %v3670_v26, %s6688_s7 }
0x190c   : > { %5397 = vmatmul.mubr.msk.f32.vlgmr.msra.gmra.mxu0 %vm884_vm2, %v3670_v26  ;;  %v3672_v29 = vpop.f32.mrf.mxu0 }
0x190d   : > { %5401 = vmatprep.mubr.msk.f32.mxu0 %vm5700_vm0, %v5699_v1 }
0x190e   : > { %v5385_v30 = vpop.f32.mrf.mxu0 }
0x190f   : > { %4236 = vrot.lane.b32.xlu0 %v3670_v26, %s6690_s2  ;;  %4072 = vrot.lane.b32.xlu1 %v6368_v19, %s6689_s25  ;;  %s6713_s25 = sld [smem:[#allocation6_spill]] }
0x1913   : > { %4238 = vrot.lane.b32.xlu1 %v6368_v19, %s6690_s2  ;;  %s6710_s2 = sld [smem:[#allocation26_spill]] }
0x1919   : > { %v5549_v28 = vld [vmem:[%s6710_s2 + $0x18] sm:$0xff]   ;;  %v5550_v29 = vld [vmem:[%s6710_s2 + $0x10] sm:$0xff]   ;;  %s6714_s2 = sld [smem:[#allocation9_spill]] }
0x191f   : > { %s5066_s8 = sshll.u32 %s6714_s2, 7  ;;  %s5715_s2 = smov [#allocation2]  }
0x197d   : > { %v3905_v31 = vpop.permute.xlu1 %3904  ;;  %v4071_v33 = vpop.permute.xlu0 %4070 }
0x197e   : > { %5407 = vmatmul.mubr.msk.f32.vlgmr.msra.gmra.mxu1 %vm884_vm2, %v3905_v31 }
0x197f   : > { %5416 = vmatprep.mubr.msk.f32.mxu1 %vm5700_vm0, %v5699_v1 }
0x1981   : > { %v4073_v32 = vpop.permute.xlu1 %4072  ;;  %v4237_v35 = vpop.permute.xlu0 %4236 }
0x1982   : > { %5415 = vmatpush3.xpose.msk.msra.mxu1 %vm884_vm2, %v4073_v32 }
0x1983   : > { %5424 = vmatprep.subr.mxu1 %v5699_v1 }
0x1985   : > { %5417 = vmatmul.mubr.msk.f32.vlgmr.msra.gmra.mxu1 %vm884_vm2, %v4071_v33  ;;  %v4239_v34 = vpop.permute.xlu1 %4238 }
0x1986   : > { %5425 = vmatpush3.xpose.msk.msra.mxu1 %vm884_vm2, %v4239_v34  ;;  %5426 = vmatprep.mubr.msk.f32.mxu1 %vm5700_vm0, %v5699_v1 }
0x1987   : > { %5434 = vmatprep.subr.bf16.mxu1 %v5699_v1 }
0x1989   : > { %5427 = vmatmul.mubr.msk.f32.vlgmr.msra.gmra.mxu1 %vm884_vm2, %v4237_v35 }
0x198a   : > { %5438 = vmatprep.mubr.msk.bf16.mxu1 %vm5700_vm0, %v5699_v1  ;;  %5435 = vmatpush3.bf16.msra.mxu1 %v5549_v28 }
0x198b   : > { %5436 = vmatprep.subr.bf16.mxu1 %v5699_v1 }
0x198e   : > { %5437 = vmatpush3.bf16.msra.mxu1 %v5550_v29 }
0x198f   : > { %5450 = vmatprep.subr.bf16.mxu1 %v5699_v1 }
0x19cc   : > { %v3812_v37 = vpop.f32.mrf.mxu0 }
0x19cd   : > { %v3816_v38 = vmul.f32 0.35355338, %v3812_v37 }
0x19ce   : > { %v5398_v36 = vpop.f32.mrf.mxu0 }
0x19cf   : > { %v3817_v39 = vsel %vm884_vm2, %v3816_v38, -inf }
0x19d0   : > { %3818 = vmax.xlane.f32.xlu1 %v3817_v39 }
0x1a3e   : > { %v3978_v40 = vpop.f32.mrf.mxu1 }
0x1a3f   : > { %v3982_v41 = vmul.f32 0.35355338, %v3978_v40 }
0x1a40   : > { %v5408_v60 = vpop.f32.mrf.mxu1 }
0x1a41   : > { %v3983_v42 = vsel %vm884_vm2, %v3982_v41, -inf }
0x1a42   : > { %3984 = vmax.xlane.f32.xlu0 %v3983_v42 }
0x1a45   : > { %v4144_v43 = vpop.f32.mrf.mxu1 }
0x1a46   : > { %v4148_v44 = vmul.f32 0.35355338, %v4144_v43 }
0x1a47   : > { %v5418_v45 = vpop.f32.mrf.mxu1 }
0x1a48   : > { %v4149_v46 = vsel %vm884_vm2, %v4148_v44, -inf }
0x1a49   : > { %4150 = vmax.xlane.f32.xlu0 %v4149_v46  ;;  %v4310_v3 = vpop.f32.mrf.mxu1 }
0x1a4a   : > { %v4314_v47 = vmul.f32 0.35355338, %v4310_v3 }
0x1a4b   : > { %v5428_v48 = vpop.f32.mrf.mxu1 }
0x1a4c   : > { %v4315_v50 = vsel %vm884_vm2, %v4314_v47, -inf }
0x1a4d   : > { %4316 = vmax.xlane.f32.xlu1 %v4315_v50 }
0x1a59   : > { %v3819_v51 = vpop.xlane.xlu1 %3818 }
0x1a5a   : > { %v3820_v52 = vsub.f32 %v3816_v38, %v3819_v51 }
0x1a5c   : > { %v3821_v53 = vmul.f32 1.442695, %v3820_v52 }
0x1a5e   : > { %5615 = vpow2.f32 %v3821_v53  ;;  %3994 = vrot.lane.b32.xlu1 %v6368_v19, %s6695_s27  ;;  %s6716_s27 = sld [smem:[#allocation29_spill]] }
0x1a6b   : > { %v5616_v54 = vpop.eup %5615 }
0x1a6c   : > { %v3823_v55 = vsel %vm884_vm2, %v5616_v54, 0.0 }
0x1a6d   : > { %3824 = vadd.xlane.f32.xlu0 %v3823_v55  ;;  %v5551_v55 = vld [vmem:[%s6586_s16 + $0x18] sm:$0xff]  }
0x1a83   : > { %3828 = vrot.lane.b32.xlu0 %v6368_v19, %s6692_s28 }
0x1acb   : > { %v3985_v56 = vpop.xlane.xlu0 %3984 }
0x1acc   : > { %v3986_v57 = vsub.f32 %v3982_v41, %v3985_v56  ;;  %v5553_v56 = vld [vmem:[%s6588_s18 + $0x38] sm:$0xff]  }
0x1ace   : > { %v3987_v58 = vmul.f32 1.442695, %v3986_v57  ;;  %v5554_v57 = vld [vmem:[%s6588_s18 + $0x30] sm:$0xff]  }
0x1ad0   : > { %5617 = vpow2.f32 %v3987_v58 }
0x1ad2   : > { %v4151_v59 = vpop.xlane.xlu0 %4150 }
0x1ad3   : > { %v4152_v61 = vsub.f32 %v4148_v44, %v4151_v59 }
0x1ad5   : > { %v4153_v62 = vmul.f32 1.442695, %v4152_v61 }
0x1ad6   : > { %v4317_v63 = vpop.xlane.xlu1 %4316 }
0x1ad7   : > { %5619 = vpow2.f32 %v4153_v62  ;;  %v4318_v2 = vsub.f32 %v4314_v47, %v4317_v63  ;;  %v5029_v63 = vld [vmem:[%s6584_s14 + $0x1] ss:$0 sm:$0xff] }
0x1ad9   : > { %v4319_v0 = vmul.f32 1.442695, %v4318_v2 }
0x1ada   : > { %v3995_v13 = vpop.permute.xlu1 %3994 }
0x1adb   : > { %5621 = vpow2.f32 %v4319_v0  ;;  %v5030_v0 = vld [vmem:[%s6585_s15 + $0x1] ss:$0 sm:$0xff] }
0x1add   : > { %v5618_v4 = vpop.eup %5617 }
0x1ade   : > { %v3989_v5 = vsel %vm884_vm2, %v5618_v4, 0.0 }
0x1adf   : > { %3990 = vadd.xlane.f32.xlu1 %v3989_v5 }
0x1ae4   : > { %v5620_v27 = vpop.eup %5619 }
0x1ae5   : > { %v4155_v6 = vsel %vm884_vm2, %v5620_v27, 0.0 }
0x1ae6   : > { %4156 = vadd.xlane.f32.xlu0 %v4155_v6  ;;  %v5555_v6 = vld [vmem:[%s6588_s18 + $0x28] sm:$0xff]  }
0x1ae8   : > { %v5622_v8 = vpop.eup %5621 }
0x1ae9   : > { %v4321_v9 = vsel %vm884_vm2, %v5622_v8, 0.0 }
0x1aea   : > { %4322 = vadd.xlane.f32.xlu1 %v4321_v9  ;;  %v5036_v9 = vld [vmem:[%s6587_s17 + $0x1] ss:$0 sm:$0xff] }
0x1af6   : > { %v3825_v17 = vpop.xlane.xlu0 %3824 }
0x1af7   : > { %5623 = vrcp.f32 %v3825_v17 }
0x1afa   : > { %v3829_v10 = vpop.permute.xlu0 %3828 }
0x1afb   : > { %5400 = vmatpush3.msra.mxu0 %v3829_v10  ;;  %4160 = vrot.lane.b32.xlu1 %v6368_v19, %s6693_s6 }
0x1afc   : > { %4326 = vrot.lane.b32.xlu0 %v6368_v19, %s6694_s4  ;;  %5409 = vmatprep.subr.mxu0 %v5699_v1  ;;  %s6711_s4 = sld [smem:[#allocation27_spill]] }
0x1b02   : > { %v5023_v42 = vld [vmem:[%s6711_s4 + $0x1] ss:$0 sm:$0xff] }
0x1b04   : > { %v5624_v11 = vpop.eup %5623 }
0x1b05   : > { %v3827_v12 = vmul.f32 %v5624_v11, %v5616_v54 }
0x1b07   : > { %5402 = vmatmul.mubr.msk.f32.vlgmr.msra.gmra.mxu0 %vm884_vm2, %v3827_v12 }
0x1b08   : > { %5410 = vmatpush3.msra.mxu0 %v3995_v13  ;;  %5411 = vmatprep.mubr.msk.f32.mxu0 %vm5700_vm0, %v5699_v1 }
0x1b09   : > { %5419 = vmatprep.subr.mxu0 %v5699_v1 }
0x1b68   : > { %v3991_v49 = vpop.xlane.xlu1 %3990 }
0x1b69   : > { %5625 = vrcp.f32 %v3991_v49 }
0x1b6f   : > { %v4157_v14 = vpop.xlane.xlu0 %4156 }
0x1b70   : > { %5627 = vrcp.f32 %v4157_v14 }
0x1b73   : > { %v4323_v7 = vpop.xlane.xlu1 %4322  ;;  %v4327_v22 = vpop.permute.xlu0 %4326 }
0x1b74   : > { %5629 = vrcp.f32 %v4323_v7  ;;  %v5049_v7 = vld [vmem:[%s6589_s19 + $0x1] ss:$0 sm:$0xff] }
0x1b76   : > { %v5626_v16 = vpop.eup %5625 }
0x1b77   : > { %v4161_v18 = vpop.permute.xlu1 %4160  ;;  %v3993_v19 = vmul.f32 %v5626_v16, %v5618_v4 }
0x1b79   : > { %5412 = vmatmul.mubr.msk.f32.vlgmr.msra.gmra.mxu0 %vm884_vm2, %v3993_v19 }
0x1b7a   : > { %5420 = vmatpush3.msra.mxu0 %v4161_v18  ;;  %5421 = vmatprep.mubr.msk.f32.mxu0 %vm5700_vm0, %v5699_v1 }
0x1b7b   : > { %5429 = vmatprep.subr.mxu0 %v5699_v1 }
0x1b7d   : > { %v5628_v20 = vpop.eup %5627 }
0x1b7e   : > { %v4159_v21 = vmul.f32 %v5628_v20, %v5620_v27 }
0x1b80   : > { %5422 = vmatmul.mubr.msk.f32.vlgmr.msra.gmra.mxu0 %vm884_vm2, %v4159_v21 }
0x1b81   : > { %v5630_v23 = vpop.eup %5629  ;;  %5430 = vmatpush3.msra.mxu0 %v4327_v22  ;;  %5431 = vmatprep.mubr.msk.f32.mxu0 %vm5700_vm0, %v5699_v1 }
0x1b82   : > { %v4325_v24 = vmul.f32 %v5630_v23, %v5622_v8  ;;  %5442 = vmatprep.subr.bf16.mxu0 %v5699_v1  ;;  %v5556_v8 = vld [vmem:[%s6588_s18 + $0x20] sm:$0xff]  }
0x1b84   : > { %5432 = vmatmul.mubr.msk.f32.vlgmr.msra.gmra.mxu0 %vm884_vm2, %v4325_v24 }
0x1b85   : > { %5446 = vmatprep.mubr.msk.bf16.mxu0 %vm5700_vm0, %v5699_v1  ;;  %5443 = vmatpush3.bf16.msra.mxu0 %v5551_v55 }
0x1b86   : > { %5444 = vmatprep.subr.bf16.mxu0 %v5699_v1 }
0x1bc7   : > { %v3900_v25 = vpop.f32.mrf.mxu0 }
0x1bc9   : > { %v5403_v26 = vpop.f32.mrf.mxu0 }
0x1c39   : > { %v4066_v30 = vpop.f32.mrf.mxu0 }
0x1c3a   : > { %4403 = vrot.lane.b32.xlu1 %v4066_v30, %s6697_s10 }
0x1c3b   : > { %v5413_v31 = vpop.f32.mrf.mxu0 }
0x1c40   : > { %v4232_v32 = vpop.f32.mrf.mxu0 }
0x1c41   : > { %4407 = vrot.lane.b32.xlu0 %v4232_v32, %s6698_s11  ;;  %s6715_s11 = sld [smem:[#allocation28_spill]] }
0x1c42   : > { %v5423_v33 = vpop.f32.mrf.mxu0 }
0x1c44   : > { %v4398_v34 = vpop.f32.mrf.mxu0 }
0x1c45   : > { %4411 = vrot.lane.b32.xlu1 %v4398_v34, %s6699_s22  ;;  %v5057_v34 = vld [vmem:[%s6590_s20 + $0x1] ss:$0 sm:$0xff]  ;;  %s793_s22 = sand.u32 1, %s6713_s25  }
0x1c46   : > { %v5433_v35 = vpop.f32.mrf.mxu0  ;;  %s4891_s9 = sshll.u32 %s793_s22, 3  ;;  %s4803_s25 = scalar_lea.sflag [#allocation3], %s793_s22 }
0x1c47   : > { %s795_s12 = scalar_lea.vmem [#allocation2], %s4891_s9 }
0x1c48   : > { %s4816_s7 = sshll.u32 %s795_s12, 4  ;;  %s6531_s7 = int_to_ptr.vmem [resolvable:$true] %s4816_s7 }
0x1c49   : > { %s5637_s4 = scalar_lea.vmem %s6531_s7, 128 }
0x1c4a   : > { %p5638_p11 = scmp.ne.s32.totalorder %s6531_s7, %s5637_s4 }
0x1c4c   : > { %p5639_p12 = pnand %p5638_p11, %p5889_p5 }
0x1c4e   : > { %p5640_p13 = pneg %p5639_p12 }
0x1cac   : > { %v4404_v37 = vpop.permute.xlu1 %4403 }
0x1cad   : > { %v4414_v36 = vsel %vm884_vm2, %v3900_v25, %v4404_v37  ;;  %v5058_v37 = vld [vmem:[%s6591_s21 + $0x1] ss:$0 sm:$0xff] }
0x1cb3   : > { %v4408_v38 = vpop.permute.xlu0 %4407 }
0x1cb4   : > { %v4415_v39 = vsel %vm1562_vm4, %v4414_v36, %v4408_v38 }
0x1cb7   : > { %v4412_v40 = vpop.permute.xlu1 %4411 }
0x1cb8   : > { %v4416_v41 = vsel %vm1564_vm5, %v4415_v39, %v4412_v40 }
0x1cb9   : > { %v4417_v60 = vpack.c.bf16 %v4416_v41, %v4416_v41 }
0x1cbb   : > { %5439 = vmatmul.mubr.msk.bf16.vlgmr.msra.gmra.mxu1 %vm837_vm1, %v4417_v60 }
0x1cbc   : > { %5458 = vmatprep.mubr.msk.bf16.mxu1 %vm5700_vm0, %v5699_v1  ;;  %5451 = vmatpush3.bf16.msra.mxu1 %v5553_v56 }
0x1cbd   : > { %5452 = vmatprep.subr.bf16.mxu1 %v5699_v1 }
0x1cc0   : > { %5453 = vmatpush3.bf16.msra.mxu1 %v5554_v57 }
0x1cc1   : > { %5454 = vmatprep.subr.bf16.mxu1 %v5699_v1 }
0x1cc4   : > { %5455 = vmatpush3.bf16.msra.mxu1 %v5555_v6 }
0x1cc5   : > { %5456 = vmatprep.subr.bf16.mxu1 %v5699_v1 }
0x1cc8   : > { %5457 = vmatpush3.bf16.msra.mxu1 %v5556_v8 }
0x1d7b   : > { %v4480_v43 = vpop.f32.mrf.mxu1 }
0x1d7c   : > { %v4481_v44 = vadd.f32 %v5023_v42, %v4480_v43 }
0x1d7d   : > { %v5440_v45 = vpop.f32.mrf.mxu1 }
0x1d7e   : > { %v4486_v46 = vadd.f32 %v4481_v44, %v6358_v15  ;;  %v5552_v15 = vld [vmem:[%s6586_s16 + $0x10] sm:$0xff]   ;;  %v5557_v44 = vld [vmem:[%s6712_s0 + $0x8] sm:$0xff]   ;;  %v5558_v45 = vld [vmem:[%s6712_s0] sm:$0xff]  }
0x1d7f   : > { %v4483_v3 = vpop.f32.mrf.mxu1  ;;  %5445 = vmatpush3.bf16.msra.mxu0 %v5552_v15 }
0x1d80   : > { %v4491_v47 = vsel %vm837_vm1, %v4486_v46, 0.0  ;;  %5462 = vmatprep.subr.bf16.mxu0 %v5699_v1 }
0x1d81   : > { %4492 = vadd.xlane.f32.xlu0 %v4491_v47  ;;  %v5441_v48 = vpop.f32.mrf.mxu1 }
0x1e0a   : > { %v4493_v50 = vpop.xlane.xlu0 %4492 }
0x1e0b   : > { %v4494_v51 = vmul.f32 0.03125, %v4493_v50  ;;  %v5059_v50 = vld [vmem:[%s6715_s11] ss:$0 sm:$0xff]  ;;  %s6719_s11 = sld [smem:[#allocation32_spill]] }
0x1e0d   : > { %v4495_v52 = vsub.f32 %v4486_v46, %v4494_v51 }
0x1e0f   : > { %v4496_v53 = vmul.f32 %v4495_v52, %v4495_v52 }
0x1e11   : > { %v4497_v54 = vsel %vm837_vm1, %v4496_v53, 0.0  ;;  %s6529_s10 = scalar_lea.hbm %s6719_s11, %s5066_s8 }
0x1e12   : > { %4498 = vadd.xlane.f32.xlu1 %v4497_v54 }
0x1e9b   : > { %v4499_v58 = vpop.xlane.xlu1 %4498 }
0x1e9c   : > { %v4500_v59 = vmul.f32 0.03125, %v4499_v58 }
0x1e9e   : > { %v4501_v61 = vadd.f32 1e-05, %v4500_v59 }
0x1ea0   : > { %5631 = vrsqrt.f32 %v4501_v61 }
0x1ead   : > { %v5632_v62 = vpop.eup %5631 }
0x1eae   : > { %v4503_v2 = vmul.f32 %v5632_v62, %v4495_v52  ;;  %v5060_v52 = vld [vmem:[%s6716_s27] ss:$0 sm:$0xff]  ;;  %s5641_s27 = sshll.u32 %s5715_s2, 4  ;;  %s5642_s27 = int_to_ptr.vmem [resolvable:$false] %s5641_s27 }
0x1eaf   : > { %s5643_s9 = scalar_lea.vmem %s5642_s27, 256  ;;  %p5644_p0 = scmp.lt.s32.totalorder %s6531_s7, %s5642_s27 }
0x1eb0   : > { %v4510_v4 = vmul.f32 %v5029_v63, %v4503_v2  ;;  %p5645_p1 = scmp.lt.s32.totalorder %s5643_s9, %s5637_s4 }
0x1eb2   : > { %v4517_v5 = vadd.f32 %v5030_v0, %v4510_v4  ;;  %p5646_p2 = por %p5645_p1, %p5644_p0 }
0x1eb4   : > { %v4518_v27 = vpack.c.bf16 %v4517_v5, %v4517_v5  ;;  %p5647_p3 = pnand %p5646_p2, %p5640_p13 }
0x1eb6   : > { %5447 = vmatmul.mubr.msk.bf16.vlgmr.msra.gmra.mxu0 %vm837_vm1, %v4518_v27 }
0x1eb7   : > { %5466 = vmatprep.mubr.msk.bf16.mxu0 %vm5700_vm0, %v5699_v1  ;;  %5463 = vmatpush3.bf16.msra.mxu0 %v5557_v44 }
0x1eb8   : > { %5464 = vmatprep.subr.bf16.mxu0 %v5699_v1  ;;  %v5061_v1 = vld [vmem:[%s6718_s13] ss:$0 sm:$0xff] }
0x1ebb   : > { %5465 = vmatpush3.bf16.msra.mxu0 %v5558_v45 }
0x1f76   : > { %v4581_v17 = vpop.f32.mrf.mxu0 }
0x1f77   : > { %v4582_v10 = vadd.f32 %v5036_v9, %v4581_v17 }
0x1f78   : > { %v5448_v11 = vpop.f32.mrf.mxu0 }
0x1f79   : > { %v4587_v12 = vmax.f32 %v4582_v10, 0.0 }
0x1f7a   : > { %v4584_v13 = vpop.f32.mrf.mxu0 }
0x1f7b   : > { %v4588_v49 = vpack.c.bf16 %v4587_v12, %v4587_v12 }
0x1f7c   : > { %v5449_v14 = vpop.f32.mrf.mxu0 }
0x1f7d   : > { %5459 = vmatmul.mubr.msk.bf16.vlgmr.msra.gmra.mxu1 %vm2680_vm6, %v4588_v49 }
0x203d   : > { %v4667_v16 = vpop.f32.mrf.mxu1 }
0x203e   : > { %v4668_v18 = vadd.f32 %v5049_v7, %v4667_v16 }
0x203f   : > { %v5460_v19 = vpop.f32.mrf.mxu1 }
0x2040   : > { %v4673_v20 = vadd.f32 %v4668_v18, %v4517_v5 }
0x2041   : > { %v4670_v21 = vpop.f32.mrf.mxu1 }
0x2042   : > { %v4678_v22 = vsel %vm837_vm1, %v4673_v20, 0.0 }
0x2043   : > { %4679 = vadd.xlane.f32.xlu0 %v4678_v22  ;;  %v5461_v23 = vpop.f32.mrf.mxu1 }
0x20cc   : > { %v4680_v24 = vpop.xlane.xlu0 %4679 }
0x20cd   : > { %v4681_v25 = vmul.f32 0.03125, %v4680_v24 }
0x20cf   : > { %v4682_v26 = vsub.f32 %v4673_v20, %v4681_v25 }
0x20d1   : > { %v4683_v28 = vmul.f32 %v4682_v26, %v4682_v26 }
0x20d3   : > { %v4684_v29 = vsel %vm837_vm1, %v4683_v28, 0.0 }
0x20d4   : > { %4685 = vadd.xlane.f32.xlu0 %v4684_v29 }
0x215d   : > { %v4686_v30 = vpop.xlane.xlu0 %4685 }
0x215e   : > { %v4687_v31 = vmul.f32 0.03125, %v4686_v30 }
0x2160   : > { %v4688_v32 = vadd.f32 1e-05, %v4687_v31 }
0x2162   : > { %5633 = vrsqrt.f32 %v4688_v32 }
0x216f   : > { %v5634_v33 = vpop.eup %5633 }
0x2170   : > { %v4690_v35 = vmul.f32 %v5634_v33, %v4682_v26 }
0x2172   : > { %v4697_v38 = vmul.f32 %v5057_v34, %v4690_v35 }
0x2174   : > { %v4704_v36 = vadd.f32 %v5058_v37, %v4697_v38 }
0x2176   : > { %v4707_v39 = vsel %vm837_vm1, %v4704_v36, 0.0 }
0x2177   : > { %4708 = vadd.xlane.f32.xlu1 %v4707_v39 }
0x2200   : > { %v4709_v40 = vpop.xlane.xlu1 %4708 }
0x2201   : > { %v4710_v41 = vmul.f32 0.03125, %v4709_v40 }
0x2203   : > { %v4711_v60 = vsub.f32 %v4704_v36, %v4710_v41 }
0x2205   : > { %v4712_v42 = vmul.f32 %v4711_v60, %v4711_v60 }
0x2207   : > { %v4713_v43 = vsel %vm837_vm1, %v4712_v42, 0.0 }
0x2208   : > { %4714 = vadd.xlane.f32.xlu0 %v4713_v43 }
0x2291   : > { %v4715_v46 = vpop.xlane.xlu0 %4714 }
0x2292   : > { %v4716_v3 = vmul.f32 0.03125, %v4715_v46 }
0x2294   : > { %v4717_v47 = vadd.f32 1e-05, %v4716_v3 }
0x2296   : > { %5635 = vrsqrt.f32 %v4717_v47 }
0x22a3   : > { %v5636_v48 = vpop.eup %5635 }
0x22a4   : > { %v4719_v51 = vmul.f32 %v5636_v48, %v4711_v60 }
0x22a6   : > { %v4726_v53 = vmul.f32 %v5059_v50, %v4719_v51 }
0x22a8   : > { %v4733_v54 = vadd.f32 %v5060_v52, %v4726_v53 }
0x22aa   : > { %v4734_v55 = vpack.c.bf16 %v4733_v54, %v4733_v54 }
0x22ac   : > { %5467 = vmatmul.mubr.msk.bf16.vlgmr.msra.gmra.mxu0 %vm837_vm1, %v4734_v55 }
0x236c   : > { %v4795_v15 = vpop.f32.mrf.mxu0 }
0x236d   : > { %v4796_v56 = vadd.f32 %v5061_v1, %v4795_v15 }
0x236e   : > { %v5468_v57 = vpop.f32.mrf.mxu0 }
0x236f   : > { %4801 = vst [vmem:[%s795_s12] sm:$0xff] %v4796_v56 }
0x2370   : > { %v4798_v58 = vpop.f32.mrf.mxu0 }
0x2371   : > { %5650 = shalt.err (!%p5647_p3)
}
0x2372   : > { %s5651_s29 = scalar_lea.hbm %s6529_s10, 128  ;;  %s5655_s13 = scalar_lea.hbm %s6719_s11, 256 }
0x2373   : > { %p5652_p4 = scmp.ne.s32.totalorder %s6529_s10, %s5651_s29  ;;  %p5656_p9 = scmp.lt.s32.totalorder %s6529_s10, %s6719_s11 }
0x2374   : > { %p5657_p10 = scmp.lt.s32.totalorder %s5655_s13, %s5651_s29 }
0x2375   : > { %p5653_p7 = pnand %p5652_p4, %p5889_p5 }
0x2376   : > { %p5658_p11 = por %p5657_p10, %p5656_p9 }
0x2377   : > { %p5654_p8 = pneg %p5653_p7 }
0x2379   : > { %p5659_p12 = pnand %p5658_p11, %p5654_p8 }
0x237b   : > { %5662 = shalt.err (!%p5659_p12)
}
0x237c   : > { %5470 = dma.vmem_to_hbm [thread:$0]  (%p5889_p5), %s6531_s7, 128, %s6529_s10, %s4803_s25   ;;  %v5469_v59 = vpop.f32.mrf.mxu0 }
0x237d PF: > { %s6720_s28 = sld [smem:[#allocation8_spill]] }
0x237e   : > { %s6721_s6 = sld [smem:[#allocation5_spill]] }
0x2383   : > { %p5476_p13 = scmp.ge.s32.totalorder %s6720_s28, 2 }
0x2384   : > { %s4828_s2 = sand.u32 1, %s6721_s6  }
0x2385   : > { %p5473_p0 = pnand %p5476_p13, %p5893_p6  ;;  %s4829_s27 = scalar_lea.sflag [#allocation3], %s4828_s2 }
0x2387   : > { %p5474_p1 = pneg %p5473_p0 }
0x2389   : > { %5680 = dma.done.wait (%p5474_p1), %s4829_s27, 128  }
0x238a   : > { %5682 = vsyncadd (%p5474_p1), %s4829_s27, 4294967168  ;;  %s6723_s28 = sld [smem:[#allocation10_spill]] }
0x238b   : > { %s6724_s27 = sld [smem:[#allocation6_spill]] }
0x238c   : > { %s6725_s3 = sld [smem:[#allocation7_spill]] }
0x238d   : > { %s6726_s7 = sld [smem:[#allocation11_spill]] }
0x2390   : > { %p36_p2 = scmp.ge.s32.totalorder %s6723_s28, 4  }
0x2392   :  { %38 = sbr.rel (!%p36_p2) target bundleno = 23 (0x17), region = 182 }
0x2397   :  { %4834 = vsyncpa [#allocation3], 1 }
0x2398   :  { %4836 = vsyncpa [#allocation3 + $0x1], 1 }

</bundles_post_ra>
